<compile_context>
chip_gen: v6e
topology: v6e:2x2x1
jax: 0.10.0
libtpu: 0.0.40
codegen_flags: <defaults>
</compile_context>

<pallas_src>
import functools

import jax
import jax.numpy as jnp
from jax import lax
from jax.experimental import pallas as pl
from jax.experimental.pallas import tpu as pltpu


def _round_up(x, m):
    return ((x + m - 1) // m) * m


# ----------------------------------------------------------------------------
# Pallas kernel: one bidirectional LSTM per grid step (grid axis = modality)
# ----------------------------------------------------------------------------
def _bilstm_kernel(T, bsp, H, x_ref, wx_ref, b_ref, whh_ref, out_ref, g_scr):
    """One bidirectional single-layer LSTM (this grid step's modality).

    x_ref  : (T*bsp, Dp)   bf16, time-major flattened, batch padded to bsp
    wx_ref : (Dp, 8H)      bf16, [W_ih_fwd^T | W_ih_rev^T]
    b_ref  : (1, 8H)       f32,  [b_ih_f + b_hh_f | b_ih_r + b_hh_r]
    whh_ref: (H, 8H)       bf16, [W_hh_fwd^T | W_hh_rev^T]
    out_ref: (T, bsp, 2H)  f32,  lanes [0:H] = forward h, [H:2H] = reverse h
    g_scr  : (T*bsp, 8H)   f32 VMEM scratch for the input-projection result
    PyTorch gate order inside each 4H block: [i, f, g, o].
    """
    H4 = 4 * H

    def sigmoid(x):
        # exact identity sigmoid(x) = 0.5*(1 + tanh(x/2)); single EUP push.
        return 0.5 * (jnp.tanh(0.5 * x) + 1.0)

    def cell(gates, c_prev):
        if_gates = sigmoid(gates[:, 0:2 * H])     # i|f in one transcendental op
        i = if_gates[:, 0:H]
        f = if_gates[:, H:2 * H]
        g = jnp.tanh(gates[:, 2 * H:3 * H])
        o = sigmoid(gates[:, 3 * H:H4])
        c = f * c_prev + i * g
        h = o * jnp.tanh(c)
        return h, c

    # Input projection for every timestep and both directions: one bf16 MXU
    # matmul; result is spilled explicitly to VMEM scratch (not held in vregs).
    g_scr[...] = (jnp.dot(x_ref[...], wx_ref[...],
                          preferred_element_type=jnp.float32)
                  + b_ref[...])

    z = jnp.zeros((bsp, H), jnp.float32)
    hf, cf = z, z          # forward-direction state
    hr, cr = z, z          # reverse-direction state

    # Fully unrolled recurrence (T is small and static); all slice starts are
    # static multiples of bsp=8 -> sublane-aligned loads, unmasked stores.
    for t in range(T):
        tr = T - 1 - t
        gf = g_scr[t * bsp:(t + 1) * bsp, 0:H4]          # fwd gates, step t
        gr = g_scr[tr * bsp:(tr + 1) * bsp, H4:2 * H4]   # rev gates, step tr

        hf, cf = cell(
            gf + jnp.dot(hf.astype(jnp.bfloat16), whh_ref[:, 0:H4],
                         preferred_element_type=jnp.float32), cf)
        hr, cr = cell(
            gr + jnp.dot(hr.astype(jnp.bfloat16), whh_ref[:, H4:2 * H4],
                         preferred_element_type=jnp.float32), cr)

        out_ref[t, :, 0:H] = hf
        out_ref[tr, :, H:2 * H] = hr


# ----------------------------------------------------------------------------
# Wrapper (parameter prep / layout plumbing in plain JAX — tiny arrays)
# ----------------------------------------------------------------------------
def lstm_a_v_forward(a_fea, v_fea, params):
    """a_fea: (bs, T, a_dim), v_fea: (bs, T, v_dim) -> two (bs, T, 2H) f32."""
    bs, T, a_dim = a_fea.shape
    bs2, T2, v_dim = v_fea.shape
    assert bs == bs2 and T == T2
    H = params["audio"]["whh_f"].shape[1]
    H8 = 8 * H

    bsp = _round_up(bs, 8)                               # pad batch to sublane tile
    d_pad = max(_round_up(a_dim, 128), _round_up(v_dim, 128))

    def prep_x(x, d):
        # pad batch and feature dims, time-major flatten, cast to bf16
        x = jnp.pad(x, ((0, bsp - bs), (0, 0), (0, d_pad - d)))
        x = jnp.transpose(x, (1, 0, 2)).reshape(T * bsp, d_pad)
        return x.astype(jnp.bfloat16)

    def prep_w(p, d):
        wx = jnp.concatenate([p["wih_f"].T, p["wih_r"].T], axis=1)          # (d, 8H)
        wx = jnp.pad(wx, ((0, d_pad - d), (0, 0))).astype(jnp.bfloat16)     # (Dp, 8H)
        b = jnp.concatenate([p["bih_f"] + p["bhh_f"],
                             p["bih_r"] + p["bhh_r"]]).reshape(1, H8)
        whh = jnp.concatenate([p["whh_f"].T, p["whh_r"].T],
                              axis=1).astype(jnp.bfloat16)                  # (H, 8H)
        return wx, b.astype(jnp.float32), whh

    xa = prep_x(a_fea, a_dim)
    xv = prep_x(v_fea, v_dim)
    wxa, ba, whha = prep_w(params["audio"], a_dim)
    wxv, bv, whhv = prep_w(params["video"], v_dim)

    x_stack = jnp.stack([xa, xv])          # (2, T*bsp, Dp)  bf16
    wx_stack = jnp.stack([wxa, wxv])       # (2, Dp, 8H)     bf16
    b_stack = jnp.stack([ba, bv])          # (2, 1, 8H)      f32
    whh_stack = jnp.stack([whha, whhv])    # (2, H, 8H)      bf16

    kernel = functools.partial(_bilstm_kernel, T, bsp, H)

    out = pl.pallas_call(
        kernel,
        out_shape=jax.ShapeDtypeStruct((2, T, bsp, 2 * H), jnp.float32),
        grid=(2,),
        in_specs=[
            pl.BlockSpec((None, T * bsp, d_pad), lambda m: (m, 0, 0)),
            pl.BlockSpec((None, d_pad, H8), lambda m: (m, 0, 0)),
            pl.BlockSpec((None, 1, H8), lambda m: (m, 0, 0)),
            pl.BlockSpec((None, H, H8), lambda m: (m, 0, 0)),
        ],
        out_specs=pl.BlockSpec((None, T, bsp, 2 * H), lambda m: (m, 0, 0, 0)),
        scratch_shapes=[pltpu.VMEM((T * bsp, H8), jnp.float32)],
        compiler_params=pltpu.CompilerParams(
            dimension_semantics=("parallel",)),
    )(x_stack, wx_stack, b_stack, whh_stack)

    # (2, T, bsp, 2H) -> drop batch padding, back to PyTorch (bs, T, 2H) layout.
    out = jnp.transpose(out[:, :, :bs, :], (0, 2, 1, 3))
    return out[0], out[1]
    # TODO(synk): the (unused) final (h_n, c_n) tuples returned internally by
    # nn.LSTM are not materialized since the module's forward() discards them.


# ----------------------------------------------------------------------------
# Pure-JAX reference (f32, HIGHEST precision) for the correctness check
# ----------------------------------------------------------------------------
def _ref_lstm_dir(x, wih, whh, bih, bhh, reverse):
    bs, T, _ = x.shape
    H = whh.shape[1]

    def cell(carry, xt):
        h, c = carry
        gates = (jnp.dot(xt, wih.T, precision=lax.Precision.HIGHEST) + bih
                 + jnp.dot(h, whh.T, precision=lax.Precision.HIGHEST) + bhh)
        i = jax.nn.sigmoid(gates[:, 0:H])
        f = jax.nn.sigmoid(gates[:, H:2 * H])
        g = jnp.tanh(gates[:, 2 * H:3 * H])
        o = jax.nn.sigmoid(gates[:, 3 * H:4 * H])
        c = f * c + i * g
        h = o * jnp.tanh(c)
        return (h, c), h

    xs = jnp.transpose(x, (1, 0, 2))
    if reverse:
        xs = xs[::-1]
    init = (jnp.zeros((bs, H), jnp.float32), jnp.zeros((bs, H), jnp.float32))
    _, hs = lax.scan(cell, init, xs)
    if reverse:
        hs = hs[::-1]
    return jnp.transpose(hs, (1, 0, 2))


def reference_forward(a_fea, v_fea, params):
    def bilstm(x, p):
        fwd = _ref_lstm_dir(x, p["wih_f"], p["whh_f"], p["bih_f"], p["bhh_f"], False)
        rev = _ref_lstm_dir(x, p["wih_r"], p["whh_r"], p["bih_r"], p["bhh_r"], True)
        return jnp.concatenate([fwd, rev], axis=-1)
    return bilstm(a_fea, params["audio"]), bilstm(v_fea, params["video"])


# ----------------------------------------------------------------------------
# Main
# ----------------------------------------------------------------------------
if __name__ == "__main__":
    key = jax.random.PRNGKey(0)

    # Module defaults: hidden_dim=128, seg_num=10; a_dim == hidden_dim keeps
    # the original module's init_hidden() shape quirk consistent.
    bs, T, H = 2, 10, 128
    a_dim, v_dim = 128, 256

    def init_lstm_params(k, D, Hh):
        ks = jax.random.split(k, 8)
        bound = 1.0 / (Hh ** 0.5)

        def u(kk, shape):
            return jax.random.uniform(kk, shape, jnp.float32, -bound, bound)

        return dict(
            wih_f=u(ks[0], (4 * Hh, D)), whh_f=u(ks[1], (4 * Hh, Hh)),
            bih_f=u(ks[2], (4 * Hh,)),   bhh_f=u(ks[3], (4 * Hh,)),
            wih_r=u(ks[4], (4 * Hh, D)), whh_r=u(ks[5], (4 * Hh, Hh)),
            bih_r=u(ks[6], (4 * Hh,)),   bhh_r=u(ks[7], (4 * Hh,)),
        )

    ka, kv, kxa, kxv = jax.random.split(key, 4)
    params = {"audio": init_lstm_params(ka, a_dim, H),
              "video": init_lstm_params(kv, v_dim, H)}
    a_fea = jax.random.normal(kxa, (bs, T, a_dim), jnp.float32)
    v_fea = jax.random.normal(kxv, (bs, T, v_dim), jnp.float32)

    out_a, out_v = jax.jit(lstm_a_v_forward)(a_fea, v_fea, params)
    out_a = jax.block_until_ready(out_a)
    out_v = jax.block_until_ready(out_v)

    ref_a, ref_v = jax.jit(reference_forward)(a_fea, v_fea, params)
    ref_a = jax.block_until_ready(ref_a)
    ref_v = jax.block_until_ready(ref_v)

    assert out_a.shape == (bs, T, 2 * H), out_a.shape
    assert out_v.shape == (bs, T, 2 * H), out_v.shape
    # Kernel matmuls use bf16 MXU inputs (f32 accumulation); tolerance sized
    # for bf16 vs. the f32 HIGHEST-precision reference over T=10 steps.
    ok = (jnp.allclose(out_a, ref_a, atol=1e-2, rtol=1e-2)
          and jnp.allclose(out_v, ref_v, atol=1e-2, rtol=1e-2))
    if not ok:
        raise AssertionError(
            "mismatch: audio max abs err = "
            f"{float(jnp.max(jnp.abs(out_a - ref_a)))}, "
            f"video max abs err = {float(jnp.max(jnp.abs(out_v - ref_v)))}")
    print("KERNEL_OK")
</pallas_src>

<mosaic_0001>
module attributes {stable_mosaic.version = 11 : i64} {
  func.func @_bilstm_kernel(%arg0: i32, %arg1: memref<1x80x256xbf16, #tpu.memory_space<vmem>>, %arg2: memref<1x256x1024xbf16, #tpu.memory_space<vmem>>, %arg3: memref<1x1x1024xf32, #tpu.memory_space<vmem>>, %arg4: memref<1x128x1024xbf16, #tpu.memory_space<vmem>>, %arg5: memref<1x10x8x256xf32, #tpu.memory_space<vmem>>, %arg6: memref<80x1024xf32, #tpu.memory_space<vmem>>) attributes {dimension_semantics = [#tpu.dimension_semantics<parallel>], iteration_bounds = array<i64: 2>, scalar_prefetch = 0 : i64, scratch_operands = 1 : i64, tpu.core_type = #tpu.core_type<tc>, window_params = [{transform_indices = @transform_0, window_bounds = array<i64: 1, 80, 256>}, {transform_indices = @transform_1, window_bounds = array<i64: 1, 256, 1024>}, {transform_indices = @transform_2, window_bounds = array<i64: 1, 1, 1024>}, {transform_indices = @transform_3, window_bounds = array<i64: 1, 128, 1024>}, {transform_indices = @transform_4, window_bounds = array<i64: 1, 10, 8, 256>}]} {
    %c0 = arith.constant 0 : index
    %c0_0 = arith.constant 0 : index
    %c0_1 = arith.constant 0 : index
    %0 = vector.load %arg1[%c0, %c0_0, %c0_1] : memref<1x80x256xbf16, #tpu.memory_space<vmem>>, vector<1x80x256xbf16>
    %1 = vector.shape_cast %0 : vector<1x80x256xbf16> to vector<80x256xbf16>
    %c0_2 = arith.constant 0 : index
    %c0_3 = arith.constant 0 : index
    %c0_4 = arith.constant 0 : index
    %2 = vector.load %arg2[%c0_2, %c0_3, %c0_4] : memref<1x256x1024xbf16, #tpu.memory_space<vmem>>, vector<1x256x1024xbf16>
    %3 = vector.shape_cast %2 : vector<1x256x1024xbf16> to vector<256x1024xbf16>
    %cst = arith.constant dense<0.000000e+00> : vector<80x1024xf32>
    %4 = tpu.matmul %1, %3, %cst {dimension_numbers = #tpu.dot_dimension_numbers<[1], [0], [0], [1], [0, 0, 1, 1], [], []>} : vector<80x256xbf16>, vector<256x1024xbf16>, vector<80x1024xf32> -> vector<80x1024xf32>
    %c0_5 = arith.constant 0 : index
    %c0_6 = arith.constant 0 : index
    %c0_7 = arith.constant 0 : index
    %5 = vector.load %arg3[%c0_5, %c0_6, %c0_7] : memref<1x1x1024xf32, #tpu.memory_space<vmem>>, vector<1x1x1024xf32>
    %6 = vector.shape_cast %5 : vector<1x1x1024xf32> to vector<1x1024xf32>
    %7 = vector.broadcast %6 : vector<1x1024xf32> to vector<80x1024xf32>
    %8 = arith.addf %4, %7 : vector<80x1024xf32>
    %c0_8 = arith.constant 0 : index
    %c0_9 = arith.constant 0 : index
    %9 = vector.load %arg6[%c0_8, %c0_9] : memref<80x1024xf32, #tpu.memory_space<vmem>>, vector<80x1024xf32>
    tpu.vector_store %arg6[%c0_8, %c0_9], %8 {strides = array<i32>} : memref<80x1024xf32, #tpu.memory_space<vmem>>, vector<80x1024xf32>,
    %cst_10 = arith.constant 0.000000e+00 : f32
    %10 = vector.broadcast %cst_10 : f32 to vector<8x128xf32>
    %c0_11 = arith.constant 0 : index
    %c0_12 = arith.constant 0 : index
    %11 = vector.load %arg6[%c0_11, %c0_12] : memref<80x1024xf32, #tpu.memory_space<vmem>>, vector<8x512xf32>
    %c72 = arith.constant 72 : index
    %c512 = arith.constant 512 : index
    %12 = vector.load %arg6[%c72, %c512] : memref<80x1024xf32, #tpu.memory_space<vmem>>, vector<8x512xf32>
    %13 = arith.truncf %10 : vector<8x128xf32> to vector<8x128xbf16>
    %c0_13 = arith.constant 0 : index
    %c0_14 = arith.constant 0 : index
    %c0_15 = arith.constant 0 : index
    %14 = vector.load %arg4[%c0_13, %c0_14, %c0_15] : memref<1x128x1024xbf16, #tpu.memory_space<vmem>>, vector<1x128x512xbf16>
    %15 = vector.shape_cast %14 : vector<1x128x512xbf16> to vector<128x512xbf16>
    %cst_16 = arith.constant dense<0.000000e+00> : vector<8x512xf32>
    %16 = tpu.matmul %13, %15, %cst_16 {dimension_numbers = #tpu.dot_dimension_numbers<[1], [0], [0], [1], [0, 0, 1, 1], [], []>} : vector<8x128xbf16>, vector<128x512xbf16>, vector<8x512xf32> -> vector<8x512xf32>
    %17 = arith.addf %11, %16 : vector<8x512xf32>
    %18 = vector.extract_strided_slice %17 {offsets = [0, 0], sizes = [8, 256], strides = [1, 1]} : vector<8x512xf32> to vector<8x256xf32>
    %cst_17 = arith.constant 5.000000e-01 : f32
    %19 = vector.broadcast %cst_17 : f32 to vector<8x256xf32>
    %20 = arith.mulf %19, %18 : vector<8x256xf32>
    %21 = math.tanh %20 : vector<8x256xf32>
    %cst_18 = arith.constant 1.000000e+00 : f32
    %22 = vector.broadcast %cst_18 : f32 to vector<8x256xf32>
    %23 = arith.addf %21, %22 : vector<8x256xf32>
    %cst_19 = arith.constant 5.000000e-01 : f32
    %24 = vector.broadcast %cst_19 : f32 to vector<8x256xf32>
    %25 = arith.mulf %24, %23 : vector<8x256xf32>
    %26 = vector.extract_strided_slice %25 {offsets = [0, 0], sizes = [8, 128], strides = [1, 1]} : vector<8x256xf32> to vector<8x128xf32>
    %27 = vector.extract_strided_slice %25 {offsets = [0, 128], sizes = [8, 128], strides = [1, 1]} : vector<8x256xf32> to vector<8x128xf32>
    %28 = vector.extract_strided_slice %17 {offsets = [0, 256], sizes = [8, 128], strides = [1, 1]} : vector<8x512xf32> to vector<8x128xf32>
    %29 = math.tanh %28 : vector<8x128xf32>
    %30 = vector.extract_strided_slice %17 {offsets = [0, 384], sizes = [8, 128], strides = [1, 1]} : vector<8x512xf32> to vector<8x128xf32>
    %cst_20 = arith.constant 5.000000e-01 : f32
    %31 = vector.broadcast %cst_20 : f32 to vector<8x128xf32>
    %32 = arith.mulf %31, %30 : vector<8x128xf32>
    %33 = math.tanh %32 : vector<8x128xf32>
    %cst_21 = arith.constant 1.000000e+00 : f32
    %34 = vector.broadcast %cst_21 : f32 to vector<8x128xf32>
    %35 = arith.addf %33, %34 : vector<8x128xf32>
    %cst_22 = arith.constant 5.000000e-01 : f32
    %36 = vector.broadcast %cst_22 : f32 to vector<8x128xf32>
    %37 = arith.mulf %36, %35 : vector<8x128xf32>
    %38 = arith.mulf %27, %10 : vector<8x128xf32>
    %39 = arith.mulf %26, %29 : vector<8x128xf32>
    %40 = arith.addf %38, %39 : vector<8x128xf32>
    %41 = math.tanh %40 : vector<8x128xf32>
    %42 = arith.mulf %37, %41 : vector<8x128xf32>
    %43 = arith.truncf %10 : vector<8x128xf32> to vector<8x128xbf16>
    %c0_23 = arith.constant 0 : index
    %c0_24 = arith.constant 0 : index
    %c512_25 = arith.constant 512 : index
    %44 = vector.load %arg4[%c0_23, %c0_24, %c512_25] : memref<1x128x1024xbf16, #tpu.memory_space<vmem>>, vector<1x128x512xbf16>
    %45 = vector.shape_cast %44 : vector<1x128x512xbf16> to vector<128x512xbf16>
    %cst_26 = arith.constant dense<0.000000e+00> : vector<8x512xf32>
    %46 = tpu.matmul %43, %45, %cst_26 {dimension_numbers = #tpu.dot_dimension_numbers<[1], [0], [0], [1], [0, 0, 1, 1], [], []>} : vector<8x128xbf16>, vector<128x512xbf16>, vector<8x512xf32> -> vector<8x512xf32>
    %47 = arith.addf %12, %46 : vector<8x512xf32>
    %48 = vector.extract_strided_slice %47 {offsets = [0, 0], sizes = [8, 256], strides = [1, 1]} : vector<8x512xf32> to vector<8x256xf32>
    %cst_27 = arith.constant 5.000000e-01 : f32
    %49 = vector.broadcast %cst_27 : f32 to vector<8x256xf32>
    %50 = arith.mulf %49, %48 : vector<8x256xf32>
    %51 = math.tanh %50 : vector<8x256xf32>
    %cst_28 = arith.constant 1.000000e+00 : f32
    %52 = vector.broadcast %cst_28 : f32 to vector<8x256xf32>
    %53 = arith.addf %51, %52 : vector<8x256xf32>
    %cst_29 = arith.constant 5.000000e-01 : f32
    %54 = vector.broadcast %cst_29 : f32 to vector<8x256xf32>
    %55 = arith.mulf %54, %53 : vector<8x256xf32>
    %56 = vector.extract_strided_slice %55 {offsets = [0, 0], sizes = [8, 128], strides = [1, 1]} : vector<8x256xf32> to vector<8x128xf32>
    %57 = vector.extract_strided_slice %55 {offsets = [0, 128], sizes = [8, 128], strides = [1, 1]} : vector<8x256xf32> to vector<8x128xf32>
    %58 = vector.extract_strided_slice %47 {offsets = [0, 256], sizes = [8, 128], strides = [1, 1]} : vector<8x512xf32> to vector<8x128xf32>
    %59 = math.tanh %58 : vector<8x128xf32>
    %60 = vector.extract_strided_slice %47 {offsets = [0, 384], sizes = [8, 128], strides = [1, 1]} : vector<8x512xf32> to vector<8x128xf32>
    %cst_30 = arith.constant 5.000000e-01 : f32
    %61 = vector.broadcast %cst_30 : f32 to vector<8x128xf32>
    %62 = arith.mulf %61, %60 : vector<8x128xf32>
    %63 = math.tanh %62 : vector<8x128xf32>
    %cst_31 = arith.constant 1.000000e+00 : f32
    %64 = vector.broadcast %cst_31 : f32 to vector<8x128xf32>
    %65 = arith.addf %63, %64 : vector<8x128xf32>
    %cst_32 = arith.constant 5.000000e-01 : f32
    %66 = vector.broadcast %cst_32 : f32 to vector<8x128xf32>
    %67 = arith.mulf %66, %65 : vector<8x128xf32>
    %68 = arith.mulf %57, %10 : vector<8x128xf32>
    %69 = arith.mulf %56, %59 : vector<8x128xf32>
    %70 = arith.addf %68, %69 : vector<8x128xf32>
    %71 = math.tanh %70 : vector<8x128xf32>
    %72 = arith.mulf %67, %71 : vector<8x128xf32>
    %c0_33 = arith.constant 0 : index
    %c0_34 = arith.constant 0 : index
    %c0_35 = arith.constant 0 : index
    %c0_36 = arith.constant 0 : index
    %73 = vector.load %arg5[%c0_33, %c0_34, %c0_35, %c0_36] : memref<1x10x8x256xf32, #tpu.memory_space<vmem>>, vector<1x1x8x128xf32>
    %74 = vector.shape_cast %73 : vector<1x1x8x128xf32> to vector<8x128xf32>
    %75 = vector.shape_cast %42 : vector<8x128xf32> to vector<1x1x8x128xf32>
    tpu.vector_store %arg5[%c0_33, %c0_34, %c0_35, %c0_36], %75 {strides = array<i32>} : memref<1x10x8x256xf32, #tpu.memory_space<vmem>>, vector<1x1x8x128xf32>,
    %c0_37 = arith.constant 0 : index
    %c9 = arith.constant 9 : index
    %c0_38 = arith.constant 0 : index
    %c128 = arith.constant 128 : index
    %76 = vector.load %arg5[%c0_37, %c9, %c0_38, %c128] : memref<1x10x8x256xf32, #tpu.memory_space<vmem>>, vector<1x1x8x128xf32>
    %77 = vector.shape_cast %76 : vector<1x1x8x128xf32> to vector<8x128xf32>
    %78 = vector.shape_cast %72 : vector<8x128xf32> to vector<1x1x8x128xf32>
    tpu.vector_store %arg5[%c0_37, %c9, %c0_38, %c128], %78 {strides = array<i32>} : memref<1x10x8x256xf32, #tpu.memory_space<vmem>>, vector<1x1x8x128xf32>,
    %c8 = arith.constant 8 : index
    %c0_39 = arith.constant 0 : index
    %79 = vector.load %arg6[%c8, %c0_39] : memref<80x1024xf32, #tpu.memory_space<vmem>>, vector<8x512xf32>
    %c64 = arith.constant 64 : index
    %c512_40 = arith.constant 512 : index
    %80 = vector.load %arg6[%c64, %c512_40] : memref<80x1024xf32, #tpu.memory_space<vmem>>, vector<8x512xf32>
    %81 = arith.truncf %42 : vector<8x128xf32> to vector<8x128xbf16>
    %c0_41 = arith.constant 0 : index
    %c0_42 = arith.constant 0 : index
    %c0_43 = arith.constant 0 : index
    %82 = vector.load %arg4[%c0_41, %c0_42, %c0_43] : memref<1x128x1024xbf16, #tpu.memory_space<vmem>>, vector<1x128x512xbf16>
    %83 = vector.shape_cast %82 : vector<1x128x512xbf16> to vector<128x512xbf16>
    %cst_44 = arith.constant dense<0.000000e+00> : vector<8x512xf32>
    %84 = tpu.matmul %81, %83, %cst_44 {dimension_numbers = #tpu.dot_dimension_numbers<[1], [0], [0], [1], [0, 0, 1, 1], [], []>} : vector<8x128xbf16>, vector<128x512xbf16>, vector<8x512xf32> -> vector<8x512xf32>
    %85 = arith.addf %79, %84 : vector<8x512xf32>
    %86 = vector.extract_strided_slice %85 {offsets = [0, 0], sizes = [8, 256], strides = [1, 1]} : vector<8x512xf32> to vector<8x256xf32>
    %cst_45 = arith.constant 5.000000e-01 : f32
    %87 = vector.broadcast %cst_45 : f32 to vector<8x256xf32>
    %88 = arith.mulf %87, %86 : vector<8x256xf32>
    %89 = math.tanh %88 : vector<8x256xf32>
    %cst_46 = arith.constant 1.000000e+00 : f32
    %90 = vector.broadcast %cst_46 : f32 to vector<8x256xf32>
    %91 = arith.addf %89, %90 : vector<8x256xf32>
    %cst_47 = arith.constant 5.000000e-01 : f32
    %92 = vector.broadcast %cst_47 : f32 to vector<8x256xf32>
    %93 = arith.mulf %92, %91 : vector<8x256xf32>
    %94 = vector.extract_strided_slice %93 {offsets = [0, 0], sizes = [8, 128], strides = [1, 1]} : vector<8x256xf32> to vector<8x128xf32>
    %95 = vector.extract_strided_slice %93 {offsets = [0, 128], sizes = [8, 128], strides = [1, 1]} : vector<8x256xf32> to vector<8x128xf32>
    %96 = vector.extract_strided_slice %85 {offsets = [0, 256], sizes = [8, 128], strides = [1, 1]} : vector<8x512xf32> to vector<8x128xf32>
    %97 = math.tanh %96 : vector<8x128xf32>
    %98 = vector.extract_strided_slice %85 {offsets = [0, 384], sizes = [8, 128], strides = [1, 1]} : vector<8x512xf32> to vector<8x128xf32>
    %cst_48 = arith.constant 5.000000e-01 : f32
    %99 = vector.broadcast %cst_48 : f32 to vector<8x128xf32>
    %100 = arith.mulf %99, %98 : vector<8x128xf32>
    %101 = math.tanh %100 : vector<8x128xf32>
    %cst_49 = arith.constant 1.000000e+00 : f32
    %102 = vector.broadcast %cst_49 : f32 to vector<8x128xf32>
    %103 = arith.addf %101, %102 : vector<8x128xf32>
    %cst_50 = arith.constant 5.000000e-01 : f32
    %104 = vector.broadcast %cst_50 : f32 to vector<8x128xf32>
    %105 = arith.mulf %104, %103 : vector<8x128xf32>
    %106 = arith.mulf %95, %40 : vector<8x128xf32>
    %107 = arith.mulf %94, %97 : vector<8x128xf32>
    %108 = arith.addf %106, %107 : vector<8x128xf32>
    %109 = math.tanh %108 : vector<8x128xf32>
    %110 = arith.mulf %105, %109 : vector<8x128xf32>
    %111 = arith.truncf %72 : vector<8x128xf32> to vector<8x128xbf16>
    %c0_51 = arith.constant 0 : index
    %c0_52 = arith.constant 0 : index
    %c512_53 = arith.constant 512 : index
    %112 = vector.load %arg4[%c0_51, %c0_52, %c512_53] : memref<1x128x1024xbf16, #tpu.memory_space<vmem>>, vector<1x128x512xbf16>
    %113 = vector.shape_cast %112 : vector<1x128x512xbf16> to vector<128x512xbf16>
    %cst_54 = arith.constant dense<0.000000e+00> : vector<8x512xf32>
    %114 = tpu.matmul %111, %113, %cst_54 {dimension_numbers = #tpu.dot_dimension_numbers<[1], [0], [0], [1], [0, 0, 1, 1], [], []>} : vector<8x128xbf16>, vector<128x512xbf16>, vector<8x512xf32> -> vector<8x512xf32>
    %115 = arith.addf %80, %114 : vector<8x512xf32>
    %116 = vector.extract_strided_slice %115 {offsets = [0, 0], sizes = [8, 256], strides = [1, 1]} : vector<8x512xf32> to vector<8x256xf32>
    %cst_55 = arith.constant 5.000000e-01 : f32
    %117 = vector.broadcast %cst_55 : f32 to vector<8x256xf32>
    %118 = arith.mulf %117, %116 : vector<8x256xf32>
    %119 = math.tanh %118 : vector<8x256xf32>
    %cst_56 = arith.constant 1.000000e+00 : f32
    %120 = vector.broadcast %cst_56 : f32 to vector<8x256xf32>
    %121 = arith.addf %119, %120 : vector<8x256xf32>
    %cst_57 = arith.constant 5.000000e-01 : f32
    %122 = vector.broadcast %cst_57 : f32 to vector<8x256xf32>
    %123 = arith.mulf %122, %121 : vector<8x256xf32>
    %124 = vector.extract_strided_slice %123 {offsets = [0, 0], sizes = [8, 128], strides = [1, 1]} : vector<8x256xf32> to vector<8x128xf32>
    %125 = vector.extract_strided_slice %123 {offsets = [0, 128], sizes = [8, 128], strides = [1, 1]} : vector<8x256xf32> to vector<8x128xf32>
    %126 = vector.extract_strided_slice %115 {offsets = [0, 256], sizes = [8, 128], strides = [1, 1]} : vector<8x512xf32> to vector<8x128xf32>
    %127 = math.tanh %126 : vector<8x128xf32>
    %128 = vector.extract_strided_slice %115 {offsets = [0, 384], sizes = [8, 128], strides = [1, 1]} : vector<8x512xf32> to vector<8x128xf32>
    %cst_58 = arith.constant 5.000000e-01 : f32
    %129 = vector.broadcast %cst_58 : f32 to vector<8x128xf32>
    %130 = arith.mulf %129, %128 : vector<8x128xf32>
    %131 = math.tanh %130 : vector<8x128xf32>
    %cst_59 = arith.constant 1.000000e+00 : f32
    %132 = vector.broadcast %cst_59 : f32 to vector<8x128xf32>
    %133 = arith.addf %131, %132 : vector<8x128xf32>
    %cst_60 = arith.constant 5.000000e-01 : f32
    %134 = vector.broadcast %cst_60 : f32 to vector<8x128xf32>
    %135 = arith.mulf %134, %133 : vector<8x128xf32>
    %136 = arith.mulf %125, %70 : vector<8x128xf32>
    %137 = arith.mulf %124, %127 : vector<8x128xf32>
    %138 = arith.addf %136, %137 : vector<8x128xf32>
    %139 = math.tanh %138 : vector<8x128xf32>
    %140 = arith.mulf %135, %139 : vector<8x128xf32>
    %c0_61 = arith.constant 0 : index
    %c1 = arith.constant 1 : index
    %c0_62 = arith.constant 0 : index
    %c0_63 = arith.constant 0 : index
    %141 = vector.load %arg5[%c0_61, %c1, %c0_62, %c0_63] : memref<1x10x8x256xf32, #tpu.memory_space<vmem>>, vector<1x1x8x128xf32>
    %142 = vector.shape_cast %141 : vector<1x1x8x128xf32> to vector<8x128xf32>
    %143 = vector.shape_cast %110 : vector<8x128xf32> to vector<1x1x8x128xf32>
    tpu.vector_store %arg5[%c0_61, %c1, %c0_62, %c0_63], %143 {strides = array<i32>} : memref<1x10x8x256xf32, #tpu.memory_space<vmem>>, vector<1x1x8x128xf32>,
    %c0_64 = arith.constant 0 : index
    %c8_65 = arith.constant 8 : index
    %c0_66 = arith.constant 0 : index
    %c128_67 = arith.constant 128 : index
    %144 = vector.load %arg5[%c0_64, %c8_65, %c0_66, %c128_67] : memref<1x10x8x256xf32, #tpu.memory_space<vmem>>, vector<1x1x8x128xf32>
    %145 = vector.shape_cast %144 : vector<1x1x8x128xf32> to vector<8x128xf32>
    %146 = vector.shape_cast %140 : vector<8x128xf32> to vector<1x1x8x128xf32>
    tpu.vector_store %arg5[%c0_64, %c8_65, %c0_66, %c128_67], %146 {strides = array<i32>} : memref<1x10x8x256xf32, #tpu.memory_space<vmem>>, vector<1x1x8x128xf32>,
    %c16 = arith.constant 16 : index
    %c0_68 = arith.constant 0 : index
    %147 = vector.load %arg6[%c16, %c0_68] : memref<80x1024xf32, #tpu.memory_space<vmem>>, vector<8x512xf32>
    %c56 = arith.constant 56 : index
    %c512_69 = arith.constant 512 : index
    %148 = vector.load %arg6[%c56, %c512_69] : memref<80x1024xf32, #tpu.memory_space<vmem>>, vector<8x512xf32>
    %149 = arith.truncf %110 : vector<8x128xf32> to vector<8x128xbf16>
    %c0_70 = arith.constant 0 : index
    %c0_71 = arith.constant 0 : index
    %c0_72 = arith.constant 0 : index
    %150 = vector.load %arg4[%c0_70, %c0_71, %c0_72] : memref<1x128x1024xbf16, #tpu.memory_space<vmem>>, vector<1x128x512xbf16>
    %151 = vector.shape_cast %150 : vector<1x128x512xbf16> to vector<128x512xbf16>
    %cst_73 = arith.constant dense<0.000000e+00> : vector<8x512xf32>
    %152 = tpu.matmul %149, %151, %cst_73 {dimension_numbers = #tpu.dot_dimension_numbers<[1], [0], [0], [1], [0, 0, 1, 1], [], []>} : vector<8x128xbf16>, vector<128x512xbf16>, vector<8x512xf32> -> vector<8x512xf32>
    %153 = arith.addf %147, %152 : vector<8x512xf32>
    %154 = vector.extract_strided_slice %153 {offsets = [0, 0], sizes = [8, 256], strides = [1, 1]} : vector<8x512xf32> to vector<8x256xf32>
    %cst_74 = arith.constant 5.000000e-01 : f32
    %155 = vector.broadcast %cst_74 : f32 to vector<8x256xf32>
    %156 = arith.mulf %155, %154 : vector<8x256xf32>
    %157 = math.tanh %156 : vector<8x256xf32>
    %cst_75 = arith.constant 1.000000e+00 : f32
    %158 = vector.broadcast %cst_75 : f32 to vector<8x256xf32>
    %159 = arith.addf %157, %158 : vector<8x256xf32>
    %cst_76 = arith.constant 5.000000e-01 : f32
    %160 = vector.broadcast %cst_76 : f32 to vector<8x256xf32>
    %161 = arith.mulf %160, %159 : vector<8x256xf32>
    %162 = vector.extract_strided_slice %161 {offsets = [0, 0], sizes = [8, 128], strides = [1, 1]} : vector<8x256xf32> to vector<8x128xf32>
    %163 = vector.extract_strided_slice %161 {offsets = [0, 128], sizes = [8, 128], strides = [1, 1]} : vector<8x256xf32> to vector<8x128xf32>
    %164 = vector.extract_strided_slice %153 {offsets = [0, 256], sizes = [8, 128], strides = [1, 1]} : vector<8x512xf32> to vector<8x128xf32>
    %165 = math.tanh %164 : vector<8x128xf32>
    %166 = vector.extract_strided_slice %153 {offsets = [0, 384], sizes = [8, 128], strides = [1, 1]} : vector<8x512xf32> to vector<8x128xf32>
    %cst_77 = arith.constant 5.000000e-01 : f32
    %167 = vector.broadcast %cst_77 : f32 to vector<8x128xf32>
    %168 = arith.mulf %167, %166 : vector<8x128xf32>
    %169 = math.tanh %168 : vector<8x128xf32>
    %cst_78 = arith.constant 1.000000e+00 : f32
    %170 = vector.broadcast %cst_78 : f32 to vector<8x128xf32>
    %171 = arith.addf %169, %170 : vector<8x128xf32>
    %cst_79 = arith.constant 5.000000e-01 : f32
    %172 = vector.broadcast %cst_79 : f32 to vector<8x128xf32>
    %173 = arith.mulf %172, %171 : vector<8x128xf32>
    %174 = arith.mulf %163, %108 : vector<8x128xf32>
    %175 = arith.mulf %162, %165 : vector<8x128xf32>
    %176 = arith.addf %174, %175 : vector<8x128xf32>
    %177 = math.tanh %176 : vector<8x128xf32>
    %178 = arith.mulf %173, %177 : vector<8x128xf32>
    %179 = arith.truncf %140 : vector<8x128xf32> to vector<8x128xbf16>
    %c0_80 = arith.constant 0 : index
    %c0_81 = arith.constant 0 : index
    %c512_82 = arith.constant 512 : index
    %180 = vector.load %arg4[%c0_80, %c0_81, %c512_82] : memref<1x128x1024xbf16, #tpu.memory_space<vmem>>, vector<1x128x512xbf16>
    %181 = vector.shape_cast %180 : vector<1x128x512xbf16> to vector<128x512xbf16>
    %cst_83 = arith.constant dense<0.000000e+00> : vector<8x512xf32>
    %182 = tpu.matmul %179, %181, %cst_83 {dimension_numbers = #tpu.dot_dimension_numbers<[1], [0], [0], [1], [0, 0, 1, 1], [], []>} : vector<8x128xbf16>, vector<128x512xbf16>, vector<8x512xf32> -> vector<8x512xf32>
    %183 = arith.addf %148, %182 : vector<8x512xf32>
    %184 = vector.extract_strided_slice %183 {offsets = [0, 0], sizes = [8, 256], strides = [1, 1]} : vector<8x512xf32> to vector<8x256xf32>
    %cst_84 = arith.constant 5.000000e-01 : f32
    %185 = vector.broadcast %cst_84 : f32 to vector<8x256xf32>
    %186 = arith.mulf %185, %184 : vector<8x256xf32>
    %187 = math.tanh %186 : vector<8x256xf32>
    %cst_85 = arith.constant 1.000000e+00 : f32
    %188 = vector.broadcast %cst_85 : f32 to vector<8x256xf32>
    %189 = arith.addf %187, %188 : vector<8x256xf32>
    %cst_86 = arith.constant 5.000000e-01 : f32
    %190 = vector.broadcast %cst_86 : f32 to vector<8x256xf32>
    %191 = arith.mulf %190, %189 : vector<8x256xf32>
    %192 = vector.extract_strided_slice %191 {offsets = [0, 0], sizes = [8, 128], strides = [1, 1]} : vector<8x256xf32> to vector<8x128xf32>
    %193 = vector.extract_strided_slice %191 {offsets = [0, 128], sizes = [8, 128], strides = [1, 1]} : vector<8x256xf32> to vector<8x128xf32>
    %194 = vector.extract_strided_slice %183 {offsets = [0, 256], sizes = [8, 128], strides = [1, 1]} : vector<8x512xf32> to vector<8x128xf32>
    %195 = math.tanh %194 : vector<8x128xf32>
    %196 = vector.extract_strided_slice %183 {offsets = [0, 384], sizes = [8, 128], strides = [1, 1]} : vector<8x512xf32> to vector<8x128xf32>
    %cst_87 = arith.constant 5.000000e-01 : f32
    %197 = vector.broadcast %cst_87 : f32 to vector<8x128xf32>
    %198 = arith.mulf %197, %196 : vector<8x128xf32>
    %199 = math.tanh %198 : vector<8x128xf32>
    %cst_88 = arith.constant 1.000000e+00 : f32
    %200 = vector.broadcast %cst_88 : f32 to vector<8x128xf32>
    %201 = arith.addf %199, %200 : vector<8x128xf32>
    %cst_89 = arith.constant 5.000000e-01 : f32
    %202 = vector.broadcast %cst_89 : f32 to vector<8x128xf32>
    %203 = arith.mulf %202, %201 : vector<8x128xf32>
    %204 = arith.mulf %193, %138 : vector<8x128xf32>
    %205 = arith.mulf %192, %195 : vector<8x128xf32>
    %206 = arith.addf %204, %205 : vector<8x128xf32>
    %207 = math.tanh %206 : vector<8x128xf32>
    %208 = arith.mulf %203, %207 : vector<8x128xf32>
    %c0_90 = arith.constant 0 : index
    %c2 = arith.constant 2 : index
    %c0_91 = arith.constant 0 : index
    %c0_92 = arith.constant 0 : index
    %209 = vector.load %arg5[%c0_90, %c2, %c0_91, %c0_92] : memref<1x10x8x256xf32, #tpu.memory_space<vmem>>, vector<1x1x8x128xf32>
    %210 = vector.shape_cast %209 : vector<1x1x8x128xf32> to vector<8x128xf32>
    %211 = vector.shape_cast %178 : vector<8x128xf32> to vector<1x1x8x128xf32>
    tpu.vector_store %arg5[%c0_90, %c2, %c0_91, %c0_92], %211 {strides = array<i32>} : memref<1x10x8x256xf32, #tpu.memory_space<vmem>>, vector<1x1x8x128xf32>,
    %c0_93 = arith.constant 0 : index
    %c7 = arith.constant 7 : index
    %c0_94 = arith.constant 0 : index
    %c128_95 = arith.constant 128 : index
    %212 = vector.load %arg5[%c0_93, %c7, %c0_94, %c128_95] : memref<1x10x8x256xf32, #tpu.memory_space<vmem>>, vector<1x1x8x128xf32>
    %213 = vector.shape_cast %212 : vector<1x1x8x128xf32> to vector<8x128xf32>
    %214 = vector.shape_cast %208 : vector<8x128xf32> to vector<1x1x8x128xf32>
    tpu.vector_store %arg5[%c0_93, %c7, %c0_94, %c128_95], %214 {strides = array<i32>} : memref<1x10x8x256xf32, #tpu.memory_space<vmem>>, vector<1x1x8x128xf32>,
    %c24 = arith.constant 24 : index
    %c0_96 = arith.constant 0 : index
    %215 = vector.load %arg6[%c24, %c0_96] : memref<80x1024xf32, #tpu.memory_space<vmem>>, vector<8x512xf32>
    %c48 = arith.constant 48 : index
    %c512_97 = arith.constant 512 : index
    %216 = vector.load %arg6[%c48, %c512_97] : memref<80x1024xf32, #tpu.memory_space<vmem>>, vector<8x512xf32>
    %217 = arith.truncf %178 : vector<8x128xf32> to vector<8x128xbf16>
    %c0_98 = arith.constant 0 : index
    %c0_99 = arith.constant 0 : index
    %c0_100 = arith.constant 0 : index
    %218 = vector.load %arg4[%c0_98, %c0_99, %c0_100] : memref<1x128x1024xbf16, #tpu.memory_space<vmem>>, vector<1x128x512xbf16>
    %219 = vector.shape_cast %218 : vector<1x128x512xbf16> to vector<128x512xbf16>
    %cst_101 = arith.constant dense<0.000000e+00> : vector<8x512xf32>
    %220 = tpu.matmul %217, %219, %cst_101 {dimension_numbers = #tpu.dot_dimension_numbers<[1], [0], [0], [1], [0, 0, 1, 1], [], []>} : vector<8x128xbf16>, vector<128x512xbf16>, vector<8x512xf32> -> vector<8x512xf32>
    %221 = arith.addf %215, %220 : vector<8x512xf32>
    %222 = vector.extract_strided_slice %221 {offsets = [0, 0], sizes = [8, 256], strides = [1, 1]} : vector<8x512xf32> to vector<8x256xf32>
    %cst_102 = arith.constant 5.000000e-01 : f32
    %223 = vector.broadcast %cst_102 : f32 to vector<8x256xf32>
    %224 = arith.mulf %223, %222 : vector<8x256xf32>
    %225 = math.tanh %224 : vector<8x256xf32>
    %cst_103 = arith.constant 1.000000e+00 : f32
    %226 = vector.broadcast %cst_103 : f32 to vector<8x256xf32>
    %227 = arith.addf %225, %226 : vector<8x256xf32>
    %cst_104 = arith.constant 5.000000e-01 : f32
    %228 = vector.broadcast %cst_104 : f32 to vector<8x256xf32>
    %229 = arith.mulf %228, %227 : vector<8x256xf32>
    %230 = vector.extract_strided_slice %229 {offsets = [0, 0], sizes = [8, 128], strides = [1, 1]} : vector<8x256xf32> to vector<8x128xf32>
    %231 = vector.extract_strided_slice %229 {offsets = [0, 128], sizes = [8, 128], strides = [1, 1]} : vector<8x256xf32> to vector<8x128xf32>
    %232 = vector.extract_strided_slice %221 {offsets = [0, 256], sizes = [8, 128], strides = [1, 1]} : vector<8x512xf32> to vector<8x128xf32>
    %233 = math.tanh %232 : vector<8x128xf32>
    %234 = vector.extract_strided_slice %221 {offsets = [0, 384], sizes = [8, 128], strides = [1, 1]} : vector<8x512xf32> to vector<8x128xf32>
    %cst_105 = arith.constant 5.000000e-01 : f32
    %235 = vector.broadcast %cst_105 : f32 to vector<8x128xf32>
    %236 = arith.mulf %235, %234 : vector<8x128xf32>
    %237 = math.tanh %236 : vector<8x128xf32>
    %cst_106 = arith.constant 1.000000e+00 : f32
    %238 = vector.broadcast %cst_106 : f32 to vector<8x128xf32>
    %239 = arith.addf %237, %238 : vector<8x128xf32>
    %cst_107 = arith.constant 5.000000e-01 : f32
    %240 = vector.broadcast %cst_107 : f32 to vector<8x128xf32>
    %241 = arith.mulf %240, %239 : vector<8x128xf32>
    %242 = arith.mulf %231, %176 : vector<8x128xf32>
    %243 = arith.mulf %230, %233 : vector<8x128xf32>
    %244 = arith.addf %242, %243 : vector<8x128xf32>
    %245 = math.tanh %244 : vector<8x128xf32>
    %246 = arith.mulf %241, %245 : vector<8x128xf32>
    %247 = arith.truncf %208 : vector<8x128xf32> to vector<8x128xbf16>
    %c0_108 = arith.constant 0 : index
    %c0_109 = arith.constant 0 : index
    %c512_110 = arith.constant 512 : index
    %248 = vector.load %arg4[%c0_108, %c0_109, %c512_110] : memref<1x128x1024xbf16, #tpu.memory_space<vmem>>, vector<1x128x512xbf16>
    %249 = vector.shape_cast %248 : vector<1x128x512xbf16> to vector<128x512xbf16>
    %cst_111 = arith.constant dense<0.000000e+00> : vector<8x512xf32>
    %250 = tpu.matmul %247, %249, %cst_111 {dimension_numbers = #tpu.dot_dimension_numbers<[1], [0], [0], [1], [0, 0, 1, 1], [], []>} : vector<8x128xbf16>, vector<128x512xbf16>, vector<8x512xf32> -> vector<8x512xf32>
    %251 = arith.addf %216, %250 : vector<8x512xf32>
    %252 = vector.extract_strided_slice %251 {offsets = [0, 0], sizes = [8, 256], strides = [1, 1]} : vector<8x512xf32> to vector<8x256xf32>
    %cst_112 = arith.constant 5.000000e-01 : f32
    %253 = vector.broadcast %cst_112 : f32 to vector<8x256xf32>
    %254 = arith.mulf %253, %252 : vector<8x256xf32>
    %255 = math.tanh %254 : vector<8x256xf32>
    %cst_113 = arith.constant 1.000000e+00 : f32
    %256 = vector.broadcast %cst_113 : f32 to vector<8x256xf32>
    %257 = arith.addf %255, %256 : vector<8x256xf32>
    %cst_114 = arith.constant 5.000000e-01 : f32
    %258 = vector.broadcast %cst_114 : f32 to vector<8x256xf32>
    %259 = arith.mulf %258, %257 : vector<8x256xf32>
    %260 = vector.extract_strided_slice %259 {offsets = [0, 0], sizes = [8, 128], strides = [1, 1]} : vector<8x256xf32> to vector<8x128xf32>
    %261 = vector.extract_strided_slice %259 {offsets = [0, 128], sizes = [8, 128], strides = [1, 1]} : vector<8x256xf32> to vector<8x128xf32>
    %262 = vector.extract_strided_slice %251 {offsets = [0, 256], sizes = [8, 128], strides = [1, 1]} : vector<8x512xf32> to vector<8x128xf32>
    %263 = math.tanh %262 : vector<8x128xf32>
    %264 = vector.extract_strided_slice %251 {offsets = [0, 384], sizes = [8, 128], strides = [1, 1]} : vector<8x512xf32> to vector<8x128xf32>
    %cst_115 = arith.constant 5.000000e-01 : f32
    %265 = vector.broadcast %cst_115 : f32 to vector<8x128xf32>
    %266 = arith.mulf %265, %264 : vector<8x128xf32>
    %267 = math.tanh %266 : vector<8x128xf32>
    %cst_116 = arith.constant 1.000000e+00 : f32
    %268 = vector.broadcast %cst_116 : f32 to vector<8x128xf32>
    %269 = arith.addf %267, %268 : vector<8x128xf32>
    %cst_117 = arith.constant 5.000000e-01 : f32
    %270 = vector.broadcast %cst_117 : f32 to vector<8x128xf32>
    %271 = arith.mulf %270, %269 : vector<8x128xf32>
    %272 = arith.mulf %261, %206 : vector<8x128xf32>
    %273 = arith.mulf %260, %263 : vector<8x128xf32>
    %274 = arith.addf %272, %273 : vector<8x128xf32>
    %275 = math.tanh %274 : vector<8x128xf32>
    %276 = arith.mulf %271, %275 : vector<8x128xf32>
    %c0_118 = arith.constant 0 : index
    %c3 = arith.constant 3 : index
    %c0_119 = arith.constant 0 : index
    %c0_120 = arith.constant 0 : index
    %277 = vector.load %arg5[%c0_118, %c3, %c0_119, %c0_120] : memref<1x10x8x256xf32, #tpu.memory_space<vmem>>, vector<1x1x8x128xf32>
    %278 = vector.shape_cast %277 : vector<1x1x8x128xf32> to vector<8x128xf32>
    %279 = vector.shape_cast %246 : vector<8x128xf32> to vector<1x1x8x128xf32>
    tpu.vector_store %arg5[%c0_118, %c3, %c0_119, %c0_120], %279 {strides = array<i32>} : memref<1x10x8x256xf32, #tpu.memory_space<vmem>>, vector<1x1x8x128xf32>,
    %c0_121 = arith.constant 0 : index
    %c6 = arith.constant 6 : index
    %c0_122 = arith.constant 0 : index
    %c128_123 = arith.constant 128 : index
    %280 = vector.load %arg5[%c0_121, %c6, %c0_122, %c128_123] : memref<1x10x8x256xf32, #tpu.memory_space<vmem>>, vector<1x1x8x128xf32>
    %281 = vector.shape_cast %280 : vector<1x1x8x128xf32> to vector<8x128xf32>
    %282 = vector.shape_cast %276 : vector<8x128xf32> to vector<1x1x8x128xf32>
    tpu.vector_store %arg5[%c0_121, %c6, %c0_122, %c128_123], %282 {strides = array<i32>} : memref<1x10x8x256xf32, #tpu.memory_space<vmem>>, vector<1x1x8x128xf32>,
    %c32 = arith.constant 32 : index
    %c0_124 = arith.constant 0 : index
    %283 = vector.load %arg6[%c32, %c0_124] : memref<80x1024xf32, #tpu.memory_space<vmem>>, vector<8x512xf32>
    %c40 = arith.constant 40 : index
    %c512_125 = arith.constant 512 : index
    %284 = vector.load %arg6[%c40, %c512_125] : memref<80x1024xf32, #tpu.memory_space<vmem>>, vector<8x512xf32>
    %285 = arith.truncf %246 : vector<8x128xf32> to vector<8x128xbf16>
    %c0_126 = arith.constant 0 : index
    %c0_127 = arith.constant 0 : index
    %c0_128 = arith.constant 0 : index
    %286 = vector.load %arg4[%c0_126, %c0_127, %c0_128] : memref<1x128x1024xbf16, #tpu.memory_space<vmem>>, vector<1x128x512xbf16>
    %287 = vector.shape_cast %286 : vector<1x128x512xbf16> to vector<128x512xbf16>
    %cst_129 = arith.constant dense<0.000000e+00> : vector<8x512xf32>
    %288 = tpu.matmul %285, %287, %cst_129 {dimension_numbers = #tpu.dot_dimension_numbers<[1], [0], [0], [1], [0, 0, 1, 1], [], []>} : vector<8x128xbf16>, vector<128x512xbf16>, vector<8x512xf32> -> vector<8x512xf32>
    %289 = arith.addf %283, %288 : vector<8x512xf32>
    %290 = vector.extract_strided_slice %289 {offsets = [0, 0], sizes = [8, 256], strides = [1, 1]} : vector<8x512xf32> to vector<8x256xf32>
    %cst_130 = arith.constant 5.000000e-01 : f32
    %291 = vector.broadcast %cst_130 : f32 to vector<8x256xf32>
    %292 = arith.mulf %291, %290 : vector<8x256xf32>
    %293 = math.tanh %292 : vector<8x256xf32>
    %cst_131 = arith.constant 1.000000e+00 : f32
    %294 = vector.broadcast %cst_131 : f32 to vector<8x256xf32>
    %295 = arith.addf %293, %294 : vector<8x256xf32>
    %cst_132 = arith.constant 5.000000e-01 : f32
    %296 = vector.broadcast %cst_132 : f32 to vector<8x256xf32>
    %297 = arith.mulf %296, %295 : vector<8x256xf32>
    %298 = vector.extract_strided_slice %297 {offsets = [0, 0], sizes = [8, 128], strides = [1, 1]} : vector<8x256xf32> to vector<8x128xf32>
    %299 = vector.extract_strided_slice %297 {offsets = [0, 128], sizes = [8, 128], strides = [1, 1]} : vector<8x256xf32> to vector<8x128xf32>
    %300 = vector.extract_strided_slice %289 {offsets = [0, 256], sizes = [8, 128], strides = [1, 1]} : vector<8x512xf32> to vector<8x128xf32>
    %301 = math.tanh %300 : vector<8x128xf32>
    %302 = vector.extract_strided_slice %289 {offsets = [0, 384], sizes = [8, 128], strides = [1, 1]} : vector<8x512xf32> to vector<8x128xf32>
    %cst_133 = arith.constant 5.000000e-01 : f32
    %303 = vector.broadcast %cst_133 : f32 to vector<8x128xf32>
    %304 = arith.mulf %303, %302 : vector<8x128xf32>
    %305 = math.tanh %304 : vector<8x128xf32>
    %cst_134 = arith.constant 1.000000e+00 : f32
    %306 = vector.broadcast %cst_134 : f32 to vector<8x128xf32>
    %307 = arith.addf %305, %306 : vector<8x128xf32>
    %cst_135 = arith.constant 5.000000e-01 : f32
    %308 = vector.broadcast %cst_135 : f32 to vector<8x128xf32>
    %309 = arith.mulf %308, %307 : vector<8x128xf32>
    %310 = arith.mulf %299, %244 : vector<8x128xf32>
    %311 = arith.mulf %298, %301 : vector<8x128xf32>
    %312 = arith.addf %310, %311 : vector<8x128xf32>
    %313 = math.tanh %312 : vector<8x128xf32>
    %314 = arith.mulf %309, %313 : vector<8x128xf32>
    %315 = arith.truncf %276 : vector<8x128xf32> to vector<8x128xbf16>
    %c0_136 = arith.constant 0 : index
    %c0_137 = arith.constant 0 : index
    %c512_138 = arith.constant 512 : index
    %316 = vector.load %arg4[%c0_136, %c0_137, %c512_138] : memref<1x128x1024xbf16, #tpu.memory_space<vmem>>, vector<1x128x512xbf16>
    %317 = vector.shape_cast %316 : vector<1x128x512xbf16> to vector<128x512xbf16>
    %cst_139 = arith.constant dense<0.000000e+00> : vector<8x512xf32>
    %318 = tpu.matmul %315, %317, %cst_139 {dimension_numbers = #tpu.dot_dimension_numbers<[1], [0], [0], [1], [0, 0, 1, 1], [], []>} : vector<8x128xbf16>, vector<128x512xbf16>, vector<8x512xf32> -> vector<8x512xf32>
    %319 = arith.addf %284, %318 : vector<8x512xf32>
    %320 = vector.extract_strided_slice %319 {offsets = [0, 0], sizes = [8, 256], strides = [1, 1]} : vector<8x512xf32> to vector<8x256xf32>
    %cst_140 = arith.constant 5.000000e-01 : f32
    %321 = vector.broadcast %cst_140 : f32 to vector<8x256xf32>
    %322 = arith.mulf %321, %320 : vector<8x256xf32>
    %323 = math.tanh %322 : vector<8x256xf32>
    %cst_141 = arith.constant 1.000000e+00 : f32
    %324 = vector.broadcast %cst_141 : f32 to vector<8x256xf32>
    %325 = arith.addf %323, %324 : vector<8x256xf32>
    %cst_142 = arith.constant 5.000000e-01 : f32
    %326 = vector.broadcast %cst_142 : f32 to vector<8x256xf32>
    %327 = arith.mulf %326, %325 : vector<8x256xf32>
    %328 = vector.extract_strided_slice %327 {offsets = [0, 0], sizes = [8, 128], strides = [1, 1]} : vector<8x256xf32> to vector<8x128xf32>
    %329 = vector.extract_strided_slice %327 {offsets = [0, 128], sizes = [8, 128], strides = [1, 1]} : vector<8x256xf32> to vector<8x128xf32>
    %330 = vector.extract_strided_slice %319 {offsets = [0, 256], sizes = [8, 128], strides = [1, 1]} : vector<8x512xf32> to vector<8x128xf32>
    %331 = math.tanh %330 : vector<8x128xf32>
    %332 = vector.extract_strided_slice %319 {offsets = [0, 384], sizes = [8, 128], strides = [1, 1]} : vector<8x512xf32> to vector<8x128xf32>
    %cst_143 = arith.constant 5.000000e-01 : f32
    %333 = vector.broadcast %cst_143 : f32 to vector<8x128xf32>
    %334 = arith.mulf %333, %332 : vector<8x128xf32>
    %335 = math.tanh %334 : vector<8x128xf32>
    %cst_144 = arith.constant 1.000000e+00 : f32
    %336 = vector.broadcast %cst_144 : f32 to vector<8x128xf32>
    %337 = arith.addf %335, %336 : vector<8x128xf32>
    %cst_145 = arith.constant 5.000000e-01 : f32
    %338 = vector.broadcast %cst_145 : f32 to vector<8x128xf32>
    %339 = arith.mulf %338, %337 : vector<8x128xf32>
    %340 = arith.mulf %329, %274 : vector<8x128xf32>
    %341 = arith.mulf %328, %331 : vector<8x128xf32>
    %342 = arith.addf %340, %341 : vector<8x128xf32>
    %343 = math.tanh %342 : vector<8x128xf32>
    %344 = arith.mulf %339, %343 : vector<8x128xf32>
    %c0_146 = arith.constant 0 : index
    %c4 = arith.constant 4 : index
    %c0_147 = arith.constant 0 : index
    %c0_148 = arith.constant 0 : index
    %345 = vector.load %arg5[%c0_146, %c4, %c0_147, %c0_148] : memref<1x10x8x256xf32, #tpu.memory_space<vmem>>, vector<1x1x8x128xf32>
    %346 = vector.shape_cast %345 : vector<1x1x8x128xf32> to vector<8x128xf32>
    %347 = vector.shape_cast %314 : vector<8x128xf32> to vector<1x1x8x128xf32>
    tpu.vector_store %arg5[%c0_146, %c4, %c0_147, %c0_148], %347 {strides = array<i32>} : memref<1x10x8x256xf32, #tpu.memory_space<vmem>>, vector<1x1x8x128xf32>,
    %c0_149 = arith.constant 0 : index
    %c5 = arith.constant 5 : index
    %c0_150 = arith.constant 0 : index
    %c128_151 = arith.constant 128 : index
    %348 = vector.load %arg5[%c0_149, %c5, %c0_150, %c128_151] : memref<1x10x8x256xf32, #tpu.memory_space<vmem>>, vector<1x1x8x128xf32>
    %349 = vector.shape_cast %348 : vector<1x1x8x128xf32> to vector<8x128xf32>
    %350 = vector.shape_cast %344 : vector<8x128xf32> to vector<1x1x8x128xf32>
    tpu.vector_store %arg5[%c0_149, %c5, %c0_150, %c128_151], %350 {strides = array<i32>} : memref<1x10x8x256xf32, #tpu.memory_space<vmem>>, vector<1x1x8x128xf32>,
    %c40_152 = arith.constant 40 : index
    %c0_153 = arith.constant 0 : index
    %351 = vector.load %arg6[%c40_152, %c0_153] : memref<80x1024xf32, #tpu.memory_space<vmem>>, vector<8x512xf32>
    %c32_154 = arith.constant 32 : index
    %c512_155 = arith.constant 512 : index
    %352 = vector.load %arg6[%c32_154, %c512_155] : memref<80x1024xf32, #tpu.memory_space<vmem>>, vector<8x512xf32>
    %353 = arith.truncf %314 : vector<8x128xf32> to vector<8x128xbf16>
    %c0_156 = arith.constant 0 : index
    %c0_157 = arith.constant 0 : index
    %c0_158 = arith.constant 0 : index
    %354 = vector.load %arg4[%c0_156, %c0_157, %c0_158] : memref<1x128x1024xbf16, #tpu.memory_space<vmem>>, vector<1x128x512xbf16>
    %355 = vector.shape_cast %354 : vector<1x128x512xbf16> to vector<128x512xbf16>
    %cst_159 = arith.constant dense<0.000000e+00> : vector<8x512xf32>
    %356 = tpu.matmul %353, %355, %cst_159 {dimension_numbers = #tpu.dot_dimension_numbers<[1], [0], [0], [1], [0, 0, 1, 1], [], []>} : vector<8x128xbf16>, vector<128x512xbf16>, vector<8x512xf32> -> vector<8x512xf32>
    %357 = arith.addf %351, %356 : vector<8x512xf32>
    %358 = vector.extract_strided_slice %357 {offsets = [0, 0], sizes = [8, 256], strides = [1, 1]} : vector<8x512xf32> to vector<8x256xf32>
    %cst_160 = arith.constant 5.000000e-01 : f32
    %359 = vector.broadcast %cst_160 : f32 to vector<8x256xf32>
    %360 = arith.mulf %359, %358 : vector<8x256xf32>
    %361 = math.tanh %360 : vector<8x256xf32>
    %cst_161 = arith.constant 1.000000e+00 : f32
    %362 = vector.broadcast %cst_161 : f32 to vector<8x256xf32>
    %363 = arith.addf %361, %362 : vector<8x256xf32>
    %cst_162 = arith.constant 5.000000e-01 : f32
    %364 = vector.broadcast %cst_162 : f32 to vector<8x256xf32>
    %365 = arith.mulf %364, %363 : vector<8x256xf32>
    %366 = vector.extract_strided_slice %365 {offsets = [0, 0], sizes = [8, 128], strides = [1, 1]} : vector<8x256xf32> to vector<8x128xf32>
    %367 = vector.extract_strided_slice %365 {offsets = [0, 128], sizes = [8, 128], strides = [1, 1]} : vector<8x256xf32> to vector<8x128xf32>
    %368 = vector.extract_strided_slice %357 {offsets = [0, 256], sizes = [8, 128], strides = [1, 1]} : vector<8x512xf32> to vector<8x128xf32>
    %369 = math.tanh %368 : vector<8x128xf32>
    %370 = vector.extract_strided_slice %357 {offsets = [0, 384], sizes = [8, 128], strides = [1, 1]} : vector<8x512xf32> to vector<8x128xf32>
    %cst_163 = arith.constant 5.000000e-01 : f32
    %371 = vector.broadcast %cst_163 : f32 to vector<8x128xf32>
    %372 = arith.mulf %371, %370 : vector<8x128xf32>
    %373 = math.tanh %372 : vector<8x128xf32>
    %cst_164 = arith.constant 1.000000e+00 : f32
    %374 = vector.broadcast %cst_164 : f32 to vector<8x128xf32>
    %375 = arith.addf %373, %374 : vector<8x128xf32>
    %cst_165 = arith.constant 5.000000e-01 : f32
    %376 = vector.broadcast %cst_165 : f32 to vector<8x128xf32>
    %377 = arith.mulf %376, %375 : vector<8x128xf32>
    %378 = arith.mulf %367, %312 : vector<8x128xf32>
    %379 = arith.mulf %366, %369 : vector<8x128xf32>
    %380 = arith.addf %378, %379 : vector<8x128xf32>
    %381 = math.tanh %380 : vector<8x128xf32>
    %382 = arith.mulf %377, %381 : vector<8x128xf32>
    %383 = arith.truncf %344 : vector<8x128xf32> to vector<8x128xbf16>
    %c0_166 = arith.constant 0 : index
    %c0_167 = arith.constant 0 : index
    %c512_168 = arith.constant 512 : index
    %384 = vector.load %arg4[%c0_166, %c0_167, %c512_168] : memref<1x128x1024xbf16, #tpu.memory_space<vmem>>, vector<1x128x512xbf16>
    %385 = vector.shape_cast %384 : vector<1x128x512xbf16> to vector<128x512xbf16>
    %cst_169 = arith.constant dense<0.000000e+00> : vector<8x512xf32>
    %386 = tpu.matmul %383, %385, %cst_169 {dimension_numbers = #tpu.dot_dimension_numbers<[1], [0], [0], [1], [0, 0, 1, 1], [], []>} : vector<8x128xbf16>, vector<128x512xbf16>, vector<8x512xf32> -> vector<8x512xf32>
    %387 = arith.addf %352, %386 : vector<8x512xf32>
    %388 = vector.extract_strided_slice %387 {offsets = [0, 0], sizes = [8, 256], strides = [1, 1]} : vector<8x512xf32> to vector<8x256xf32>
    %cst_170 = arith.constant 5.000000e-01 : f32
    %389 = vector.broadcast %cst_170 : f32 to vector<8x256xf32>
    %390 = arith.mulf %389, %388 : vector<8x256xf32>
    %391 = math.tanh %390 : vector<8x256xf32>
    %cst_171 = arith.constant 1.000000e+00 : f32
    %392 = vector.broadcast %cst_171 : f32 to vector<8x256xf32>
    %393 = arith.addf %391, %392 : vector<8x256xf32>
    %cst_172 = arith.constant 5.000000e-01 : f32
    %394 = vector.broadcast %cst_172 : f32 to vector<8x256xf32>
    %395 = arith.mulf %394, %393 : vector<8x256xf32>
    %396 = vector.extract_strided_slice %395 {offsets = [0, 0], sizes = [8, 128], strides = [1, 1]} : vector<8x256xf32> to vector<8x128xf32>
    %397 = vector.extract_strided_slice %395 {offsets = [0, 128], sizes = [8, 128], strides = [1, 1]} : vector<8x256xf32> to vector<8x128xf32>
    %398 = vector.extract_strided_slice %387 {offsets = [0, 256], sizes = [8, 128], strides = [1, 1]} : vector<8x512xf32> to vector<8x128xf32>
    %399 = math.tanh %398 : vector<8x128xf32>
    %400 = vector.extract_strided_slice %387 {offsets = [0, 384], sizes = [8, 128], strides = [1, 1]} : vector<8x512xf32> to vector<8x128xf32>
    %cst_173 = arith.constant 5.000000e-01 : f32
    %401 = vector.broadcast %cst_173 : f32 to vector<8x128xf32>
    %402 = arith.mulf %401, %400 : vector<8x128xf32>
    %403 = math.tanh %402 : vector<8x128xf32>
    %cst_174 = arith.constant 1.000000e+00 : f32
    %404 = vector.broadcast %cst_174 : f32 to vector<8x128xf32>
    %405 = arith.addf %403, %404 : vector<8x128xf32>
    %cst_175 = arith.constant 5.000000e-01 : f32
    %406 = vector.broadcast %cst_175 : f32 to vector<8x128xf32>
    %407 = arith.mulf %406, %405 : vector<8x128xf32>
    %408 = arith.mulf %397, %342 : vector<8x128xf32>
    %409 = arith.mulf %396, %399 : vector<8x128xf32>
    %410 = arith.addf %408, %409 : vector<8x128xf32>
    %411 = math.tanh %410 : vector<8x128xf32>
    %412 = arith.mulf %407, %411 : vector<8x128xf32>
    %c0_176 = arith.constant 0 : index
    %c5_177 = arith.constant 5 : index
    %c0_178 = arith.constant 0 : index
    %c0_179 = arith.constant 0 : index
    %413 = vector.load %arg5[%c0_176, %c5_177, %c0_178, %c0_179] : memref<1x10x8x256xf32, #tpu.memory_space<vmem>>, vector<1x1x8x128xf32>
    %414 = vector.shape_cast %413 : vector<1x1x8x128xf32> to vector<8x128xf32>
    %415 = vector.shape_cast %382 : vector<8x128xf32> to vector<1x1x8x128xf32>
    tpu.vector_store %arg5[%c0_176, %c5_177, %c0_178, %c0_179], %415 {strides = array<i32>} : memref<1x10x8x256xf32, #tpu.memory_space<vmem>>, vector<1x1x8x128xf32>,
    %c0_180 = arith.constant 0 : index
    %c4_181 = arith.constant 4 : index
    %c0_182 = arith.constant 0 : index
    %c128_183 = arith.constant 128 : index
    %416 = vector.load %arg5[%c0_180, %c4_181, %c0_182, %c128_183] : memref<1x10x8x256xf32, #tpu.memory_space<vmem>>, vector<1x1x8x128xf32>
    %417 = vector.shape_cast %416 : vector<1x1x8x128xf32> to vector<8x128xf32>
    %418 = vector.shape_cast %412 : vector<8x128xf32> to vector<1x1x8x128xf32>
    tpu.vector_store %arg5[%c0_180, %c4_181, %c0_182, %c128_183], %418 {strides = array<i32>} : memref<1x10x8x256xf32, #tpu.memory_space<vmem>>, vector<1x1x8x128xf32>,
    %c48_184 = arith.constant 48 : index
    %c0_185 = arith.constant 0 : index
    %419 = vector.load %arg6[%c48_184, %c0_185] : memref<80x1024xf32, #tpu.memory_space<vmem>>, vector<8x512xf32>
    %c24_186 = arith.constant 24 : index
    %c512_187 = arith.constant 512 : index
    %420 = vector.load %arg6[%c24_186, %c512_187] : memref<80x1024xf32, #tpu.memory_space<vmem>>, vector<8x512xf32>
    %421 = arith.truncf %382 : vector<8x128xf32> to vector<8x128xbf16>
    %c0_188 = arith.constant 0 : index
    %c0_189 = arith.constant 0 : index
    %c0_190 = arith.constant 0 : index
    %422 = vector.load %arg4[%c0_188, %c0_189, %c0_190] : memref<1x128x1024xbf16, #tpu.memory_space<vmem>>, vector<1x128x512xbf16>
    %423 = vector.shape_cast %422 : vector<1x128x512xbf16> to vector<128x512xbf16>
    %cst_191 = arith.constant dense<0.000000e+00> : vector<8x512xf32>
    %424 = tpu.matmul %421, %423, %cst_191 {dimension_numbers = #tpu.dot_dimension_numbers<[1], [0], [0], [1], [0, 0, 1, 1], [], []>} : vector<8x128xbf16>, vector<128x512xbf16>, vector<8x512xf32> -> vector<8x512xf32>
    %425 = arith.addf %419, %424 : vector<8x512xf32>
    %426 = vector.extract_strided_slice %425 {offsets = [0, 0], sizes = [8, 256], strides = [1, 1]} : vector<8x512xf32> to vector<8x256xf32>
    %cst_192 = arith.constant 5.000000e-01 : f32
    %427 = vector.broadcast %cst_192 : f32 to vector<8x256xf32>
    %428 = arith.mulf %427, %426 : vector<8x256xf32>
    %429 = math.tanh %428 : vector<8x256xf32>
    %cst_193 = arith.constant 1.000000e+00 : f32
    %430 = vector.broadcast %cst_193 : f32 to vector<8x256xf32>
    %431 = arith.addf %429, %430 : vector<8x256xf32>
    %cst_194 = arith.constant 5.000000e-01 : f32
    %432 = vector.broadcast %cst_194 : f32 to vector<8x256xf32>
    %433 = arith.mulf %432, %431 : vector<8x256xf32>
    %434 = vector.extract_strided_slice %433 {offsets = [0, 0], sizes = [8, 128], strides = [1, 1]} : vector<8x256xf32> to vector<8x128xf32>
    %435 = vector.extract_strided_slice %433 {offsets = [0, 128], sizes = [8, 128], strides = [1, 1]} : vector<8x256xf32> to vector<8x128xf32>
    %436 = vector.extract_strided_slice %425 {offsets = [0, 256], sizes = [8, 128], strides = [1, 1]} : vector<8x512xf32> to vector<8x128xf32>
    %437 = math.tanh %436 : vector<8x128xf32>
    %438 = vector.extract_strided_slice %425 {offsets = [0, 384], sizes = [8, 128], strides = [1, 1]} : vector<8x512xf32> to vector<8x128xf32>
    %cst_195 = arith.constant 5.000000e-01 : f32
    %439 = vector.broadcast %cst_195 : f32 to vector<8x128xf32>
    %440 = arith.mulf %439, %438 : vector<8x128xf32>
    %441 = math.tanh %440 : vector<8x128xf32>
    %cst_196 = arith.constant 1.000000e+00 : f32
    %442 = vector.broadcast %cst_196 : f32 to vector<8x128xf32>
    %443 = arith.addf %441, %442 : vector<8x128xf32>
    %cst_197 = arith.constant 5.000000e-01 : f32
    %444 = vector.broadcast %cst_197 : f32 to vector<8x128xf32>
    %445 = arith.mulf %444, %443 : vector<8x128xf32>
    %446 = arith.mulf %435, %380 : vector<8x128xf32>
    %447 = arith.mulf %434, %437 : vector<8x128xf32>
    %448 = arith.addf %446, %447 : vector<8x128xf32>
    %449 = math.tanh %448 : vector<8x128xf32>
    %450 = arith.mulf %445, %449 : vector<8x128xf32>
    %451 = arith.truncf %412 : vector<8x128xf32> to vector<8x128xbf16>
    %c0_198 = arith.constant 0 : index
    %c0_199 = arith.constant 0 : index
    %c512_200 = arith.constant 512 : index
    %452 = vector.load %arg4[%c0_198, %c0_199, %c512_200] : memref<1x128x1024xbf16, #tpu.memory_space<vmem>>, vector<1x128x512xbf16>
    %453 = vector.shape_cast %452 : vector<1x128x512xbf16> to vector<128x512xbf16>
    %cst_201 = arith.constant dense<0.000000e+00> : vector<8x512xf32>
    %454 = tpu.matmul %451, %453, %cst_201 {dimension_numbers = #tpu.dot_dimension_numbers<[1], [0], [0], [1], [0, 0, 1, 1], [], []>} : vector<8x128xbf16>, vector<128x512xbf16>, vector<8x512xf32> -> vector<8x512xf32>
    %455 = arith.addf %420, %454 : vector<8x512xf32>
    %456 = vector.extract_strided_slice %455 {offsets = [0, 0], sizes = [8, 256], strides = [1, 1]} : vector<8x512xf32> to vector<8x256xf32>
    %cst_202 = arith.constant 5.000000e-01 : f32
    %457 = vector.broadcast %cst_202 : f32 to vector<8x256xf32>
    %458 = arith.mulf %457, %456 : vector<8x256xf32>
    %459 = math.tanh %458 : vector<8x256xf32>
    %cst_203 = arith.constant 1.000000e+00 : f32
    %460 = vector.broadcast %cst_203 : f32 to vector<8x256xf32>
    %461 = arith.addf %459, %460 : vector<8x256xf32>
    %cst_204 = arith.constant 5.000000e-01 : f32
    %462 = vector.broadcast %cst_204 : f32 to vector<8x256xf32>
    %463 = arith.mulf %462, %461 : vector<8x256xf32>
    %464 = vector.extract_strided_slice %463 {offsets = [0, 0], sizes = [8, 128], strides = [1, 1]} : vector<8x256xf32> to vector<8x128xf32>
    %465 = vector.extract_strided_slice %463 {offsets = [0, 128], sizes = [8, 128], strides = [1, 1]} : vector<8x256xf32> to vector<8x128xf32>
    %466 = vector.extract_strided_slice %455 {offsets = [0, 256], sizes = [8, 128], strides = [1, 1]} : vector<8x512xf32> to vector<8x128xf32>
    %467 = math.tanh %466 : vector<8x128xf32>
    %468 = vector.extract_strided_slice %455 {offsets = [0, 384], sizes = [8, 128], strides = [1, 1]} : vector<8x512xf32> to vector<8x128xf32>
    %cst_205 = arith.constant 5.000000e-01 : f32
    %469 = vector.broadcast %cst_205 : f32 to vector<8x128xf32>
    %470 = arith.mulf %469, %468 : vector<8x128xf32>
    %471 = math.tanh %470 : vector<8x128xf32>
    %cst_206 = arith.constant 1.000000e+00 : f32
    %472 = vector.broadcast %cst_206 : f32 to vector<8x128xf32>
    %473 = arith.addf %471, %472 : vector<8x128xf32>
    %cst_207 = arith.constant 5.000000e-01 : f32
    %474 = vector.broadcast %cst_207 : f32 to vector<8x128xf32>
    %475 = arith.mulf %474, %473 : vector<8x128xf32>
    %476 = arith.mulf %465, %410 : vector<8x128xf32>
    %477 = arith.mulf %464, %467 : vector<8x128xf32>
    %478 = arith.addf %476, %477 : vector<8x128xf32>
    %479 = math.tanh %478 : vector<8x128xf32>
    %480 = arith.mulf %475, %479 : vector<8x128xf32>
    %c0_208 = arith.constant 0 : index
    %c6_209 = arith.constant 6 : index
    %c0_210 = arith.constant 0 : index
    %c0_211 = arith.constant 0 : index
    %481 = vector.load %arg5[%c0_208, %c6_209, %c0_210, %c0_211] : memref<1x10x8x256xf32, #tpu.memory_space<vmem>>, vector<1x1x8x128xf32>
    %482 = vector.shape_cast %481 : vector<1x1x8x128xf32> to vector<8x128xf32>
    %483 = vector.shape_cast %450 : vector<8x128xf32> to vector<1x1x8x128xf32>
    tpu.vector_store %arg5[%c0_208, %c6_209, %c0_210, %c0_211], %483 {strides = array<i32>} : memref<1x10x8x256xf32, #tpu.memory_space<vmem>>, vector<1x1x8x128xf32>,
    %c0_212 = arith.constant 0 : index
    %c3_213 = arith.constant 3 : index
    %c0_214 = arith.constant 0 : index
    %c128_215 = arith.constant 128 : index
    %484 = vector.load %arg5[%c0_212, %c3_213, %c0_214, %c128_215] : memref<1x10x8x256xf32, #tpu.memory_space<vmem>>, vector<1x1x8x128xf32>
    %485 = vector.shape_cast %484 : vector<1x1x8x128xf32> to vector<8x128xf32>
    %486 = vector.shape_cast %480 : vector<8x128xf32> to vector<1x1x8x128xf32>
    tpu.vector_store %arg5[%c0_212, %c3_213, %c0_214, %c128_215], %486 {strides = array<i32>} : memref<1x10x8x256xf32, #tpu.memory_space<vmem>>, vector<1x1x8x128xf32>,
    %c56_216 = arith.constant 56 : index
    %c0_217 = arith.constant 0 : index
    %487 = vector.load %arg6[%c56_216, %c0_217] : memref<80x1024xf32, #tpu.memory_space<vmem>>, vector<8x512xf32>
    %c16_218 = arith.constant 16 : index
    %c512_219 = arith.constant 512 : index
    %488 = vector.load %arg6[%c16_218, %c512_219] : memref<80x1024xf32, #tpu.memory_space<vmem>>, vector<8x512xf32>
    %489 = arith.truncf %450 : vector<8x128xf32> to vector<8x128xbf16>
    %c0_220 = arith.constant 0 : index
    %c0_221 = arith.constant 0 : index
    %c0_222 = arith.constant 0 : index
    %490 = vector.load %arg4[%c0_220, %c0_221, %c0_222] : memref<1x128x1024xbf16, #tpu.memory_space<vmem>>, vector<1x128x512xbf16>
    %491 = vector.shape_cast %490 : vector<1x128x512xbf16> to vector<128x512xbf16>
    %cst_223 = arith.constant dense<0.000000e+00> : vector<8x512xf32>
    %492 = tpu.matmul %489, %491, %cst_223 {dimension_numbers = #tpu.dot_dimension_numbers<[1], [0], [0], [1], [0, 0, 1, 1], [], []>} : vector<8x128xbf16>, vector<128x512xbf16>, vector<8x512xf32> -> vector<8x512xf32>
    %493 = arith.addf %487, %492 : vector<8x512xf32>
    %494 = vector.extract_strided_slice %493 {offsets = [0, 0], sizes = [8, 256], strides = [1, 1]} : vector<8x512xf32> to vector<8x256xf32>
    %cst_224 = arith.constant 5.000000e-01 : f32
    %495 = vector.broadcast %cst_224 : f32 to vector<8x256xf32>
    %496 = arith.mulf %495, %494 : vector<8x256xf32>
    %497 = math.tanh %496 : vector<8x256xf32>
    %cst_225 = arith.constant 1.000000e+00 : f32
    %498 = vector.broadcast %cst_225 : f32 to vector<8x256xf32>
    %499 = arith.addf %497, %498 : vector<8x256xf32>
    %cst_226 = arith.constant 5.000000e-01 : f32
    %500 = vector.broadcast %cst_226 : f32 to vector<8x256xf32>
    %501 = arith.mulf %500, %499 : vector<8x256xf32>
    %502 = vector.extract_strided_slice %501 {offsets = [0, 0], sizes = [8, 128], strides = [1, 1]} : vector<8x256xf32> to vector<8x128xf32>
    %503 = vector.extract_strided_slice %501 {offsets = [0, 128], sizes = [8, 128], strides = [1, 1]} : vector<8x256xf32> to vector<8x128xf32>
    %504 = vector.extract_strided_slice %493 {offsets = [0, 256], sizes = [8, 128], strides = [1, 1]} : vector<8x512xf32> to vector<8x128xf32>
    %505 = math.tanh %504 : vector<8x128xf32>
    %506 = vector.extract_strided_slice %493 {offsets = [0, 384], sizes = [8, 128], strides = [1, 1]} : vector<8x512xf32> to vector<8x128xf32>
    %cst_227 = arith.constant 5.000000e-01 : f32
    %507 = vector.broadcast %cst_227 : f32 to vector<8x128xf32>
    %508 = arith.mulf %507, %506 : vector<8x128xf32>
    %509 = math.tanh %508 : vector<8x128xf32>
    %cst_228 = arith.constant 1.000000e+00 : f32
    %510 = vector.broadcast %cst_228 : f32 to vector<8x128xf32>
    %511 = arith.addf %509, %510 : vector<8x128xf32>
    %cst_229 = arith.constant 5.000000e-01 : f32
    %512 = vector.broadcast %cst_229 : f32 to vector<8x128xf32>
    %513 = arith.mulf %512, %511 : vector<8x128xf32>
    %514 = arith.mulf %503, %448 : vector<8x128xf32>
    %515 = arith.mulf %502, %505 : vector<8x128xf32>
    %516 = arith.addf %514, %515 : vector<8x128xf32>
    %517 = math.tanh %516 : vector<8x128xf32>
    %518 = arith.mulf %513, %517 : vector<8x128xf32>
    %519 = arith.truncf %480 : vector<8x128xf32> to vector<8x128xbf16>
    %c0_230 = arith.constant 0 : index
    %c0_231 = arith.constant 0 : index
    %c512_232 = arith.constant 512 : index
    %520 = vector.load %arg4[%c0_230, %c0_231, %c512_232] : memref<1x128x1024xbf16, #tpu.memory_space<vmem>>, vector<1x128x512xbf16>
    %521 = vector.shape_cast %520 : vector<1x128x512xbf16> to vector<128x512xbf16>
    %cst_233 = arith.constant dense<0.000000e+00> : vector<8x512xf32>
    %522 = tpu.matmul %519, %521, %cst_233 {dimension_numbers = #tpu.dot_dimension_numbers<[1], [0], [0], [1], [0, 0, 1, 1], [], []>} : vector<8x128xbf16>, vector<128x512xbf16>, vector<8x512xf32> -> vector<8x512xf32>
    %523 = arith.addf %488, %522 : vector<8x512xf32>
    %524 = vector.extract_strided_slice %523 {offsets = [0, 0], sizes = [8, 256], strides = [1, 1]} : vector<8x512xf32> to vector<8x256xf32>
    %cst_234 = arith.constant 5.000000e-01 : f32
    %525 = vector.broadcast %cst_234 : f32 to vector<8x256xf32>
    %526 = arith.mulf %525, %524 : vector<8x256xf32>
    %527 = math.tanh %526 : vector<8x256xf32>
    %cst_235 = arith.constant 1.000000e+00 : f32
    %528 = vector.broadcast %cst_235 : f32 to vector<8x256xf32>
    %529 = arith.addf %527, %528 : vector<8x256xf32>
    %cst_236 = arith.constant 5.000000e-01 : f32
    %530 = vector.broadcast %cst_236 : f32 to vector<8x256xf32>
    %531 = arith.mulf %530, %529 : vector<8x256xf32>
    %532 = vector.extract_strided_slice %531 {offsets = [0, 0], sizes = [8, 128], strides = [1, 1]} : vector<8x256xf32> to vector<8x128xf32>
    %533 = vector.extract_strided_slice %531 {offsets = [0, 128], sizes = [8, 128], strides = [1, 1]} : vector<8x256xf32> to vector<8x128xf32>
    %534 = vector.extract_strided_slice %523 {offsets = [0, 256], sizes = [8, 128], strides = [1, 1]} : vector<8x512xf32> to vector<8x128xf32>
    %535 = math.tanh %534 : vector<8x128xf32>
    %536 = vector.extract_strided_slice %523 {offsets = [0, 384], sizes = [8, 128], strides = [1, 1]} : vector<8x512xf32> to vector<8x128xf32>
    %cst_237 = arith.constant 5.000000e-01 : f32
    %537 = vector.broadcast %cst_237 : f32 to vector<8x128xf32>
    %538 = arith.mulf %537, %536 : vector<8x128xf32>
    %539 = math.tanh %538 : vector<8x128xf32>
    %cst_238 = arith.constant 1.000000e+00 : f32
    %540 = vector.broadcast %cst_238 : f32 to vector<8x128xf32>
    %541 = arith.addf %539, %540 : vector<8x128xf32>
    %cst_239 = arith.constant 5.000000e-01 : f32
    %542 = vector.broadcast %cst_239 : f32 to vector<8x128xf32>
    %543 = arith.mulf %542, %541 : vector<8x128xf32>
    %544 = arith.mulf %533, %478 : vector<8x128xf32>
    %545 = arith.mulf %532, %535 : vector<8x128xf32>
    %546 = arith.addf %544, %545 : vector<8x128xf32>
    %547 = math.tanh %546 : vector<8x128xf32>
    %548 = arith.mulf %543, %547 : vector<8x128xf32>
    %c0_240 = arith.constant 0 : index
    %c7_241 = arith.constant 7 : index
    %c0_242 = arith.constant 0 : index
    %c0_243 = arith.constant 0 : index
    %549 = vector.load %arg5[%c0_240, %c7_241, %c0_242, %c0_243] : memref<1x10x8x256xf32, #tpu.memory_space<vmem>>, vector<1x1x8x128xf32>
    %550 = vector.shape_cast %549 : vector<1x1x8x128xf32> to vector<8x128xf32>
    %551 = vector.shape_cast %518 : vector<8x128xf32> to vector<1x1x8x128xf32>
    tpu.vector_store %arg5[%c0_240, %c7_241, %c0_242, %c0_243], %551 {strides = array<i32>} : memref<1x10x8x256xf32, #tpu.memory_space<vmem>>, vector<1x1x8x128xf32>,
    %c0_244 = arith.constant 0 : index
    %c2_245 = arith.constant 2 : index
    %c0_246 = arith.constant 0 : index
    %c128_247 = arith.constant 128 : index
    %552 = vector.load %arg5[%c0_244, %c2_245, %c0_246, %c128_247] : memref<1x10x8x256xf32, #tpu.memory_space<vmem>>, vector<1x1x8x128xf32>
    %553 = vector.shape_cast %552 : vector<1x1x8x128xf32> to vector<8x128xf32>
    %554 = vector.shape_cast %548 : vector<8x128xf32> to vector<1x1x8x128xf32>
    tpu.vector_store %arg5[%c0_244, %c2_245, %c0_246, %c128_247], %554 {strides = array<i32>} : memref<1x10x8x256xf32, #tpu.memory_space<vmem>>, vector<1x1x8x128xf32>,
    %c64_248 = arith.constant 64 : index
    %c0_249 = arith.constant 0 : index
    %555 = vector.load %arg6[%c64_248, %c0_249] : memref<80x1024xf32, #tpu.memory_space<vmem>>, vector<8x512xf32>
    %c8_250 = arith.constant 8 : index
    %c512_251 = arith.constant 512 : index
    %556 = vector.load %arg6[%c8_250, %c512_251] : memref<80x1024xf32, #tpu.memory_space<vmem>>, vector<8x512xf32>
    %557 = arith.truncf %518 : vector<8x128xf32> to vector<8x128xbf16>
    %c0_252 = arith.constant 0 : index
    %c0_253 = arith.constant 0 : index
    %c0_254 = arith.constant 0 : index
    %558 = vector.load %arg4[%c0_252, %c0_253, %c0_254] : memref<1x128x1024xbf16, #tpu.memory_space<vmem>>, vector<1x128x512xbf16>
    %559 = vector.shape_cast %558 : vector<1x128x512xbf16> to vector<128x512xbf16>
    %cst_255 = arith.constant dense<0.000000e+00> : vector<8x512xf32>
    %560 = tpu.matmul %557, %559, %cst_255 {dimension_numbers = #tpu.dot_dimension_numbers<[1], [0], [0], [1], [0, 0, 1, 1], [], []>} : vector<8x128xbf16>, vector<128x512xbf16>, vector<8x512xf32> -> vector<8x512xf32>
    %561 = arith.addf %555, %560 : vector<8x512xf32>
    %562 = vector.extract_strided_slice %561 {offsets = [0, 0], sizes = [8, 256], strides = [1, 1]} : vector<8x512xf32> to vector<8x256xf32>
    %cst_256 = arith.constant 5.000000e-01 : f32
    %563 = vector.broadcast %cst_256 : f32 to vector<8x256xf32>
    %564 = arith.mulf %563, %562 : vector<8x256xf32>
    %565 = math.tanh %564 : vector<8x256xf32>
    %cst_257 = arith.constant 1.000000e+00 : f32
    %566 = vector.broadcast %cst_257 : f32 to vector<8x256xf32>
    %567 = arith.addf %565, %566 : vector<8x256xf32>
    %cst_258 = arith.constant 5.000000e-01 : f32
    %568 = vector.broadcast %cst_258 : f32 to vector<8x256xf32>
    %569 = arith.mulf %568, %567 : vector<8x256xf32>
    %570 = vector.extract_strided_slice %569 {offsets = [0, 0], sizes = [8, 128], strides = [1, 1]} : vector<8x256xf32> to vector<8x128xf32>
    %571 = vector.extract_strided_slice %569 {offsets = [0, 128], sizes = [8, 128], strides = [1, 1]} : vector<8x256xf32> to vector<8x128xf32>
    %572 = vector.extract_strided_slice %561 {offsets = [0, 256], sizes = [8, 128], strides = [1, 1]} : vector<8x512xf32> to vector<8x128xf32>
    %573 = math.tanh %572 : vector<8x128xf32>
    %574 = vector.extract_strided_slice %561 {offsets = [0, 384], sizes = [8, 128], strides = [1, 1]} : vector<8x512xf32> to vector<8x128xf32>
    %cst_259 = arith.constant 5.000000e-01 : f32
    %575 = vector.broadcast %cst_259 : f32 to vector<8x128xf32>
    %576 = arith.mulf %575, %574 : vector<8x128xf32>
    %577 = math.tanh %576 : vector<8x128xf32>
    %cst_260 = arith.constant 1.000000e+00 : f32
    %578 = vector.broadcast %cst_260 : f32 to vector<8x128xf32>
    %579 = arith.addf %577, %578 : vector<8x128xf32>
    %cst_261 = arith.constant 5.000000e-01 : f32
    %580 = vector.broadcast %cst_261 : f32 to vector<8x128xf32>
    %581 = arith.mulf %580, %579 : vector<8x128xf32>
    %582 = arith.mulf %571, %516 : vector<8x128xf32>
    %583 = arith.mulf %570, %573 : vector<8x128xf32>
    %584 = arith.addf %582, %583 : vector<8x128xf32>
    %585 = math.tanh %584 : vector<8x128xf32>
    %586 = arith.mulf %581, %585 : vector<8x128xf32>
    %587 = arith.truncf %548 : vector<8x128xf32> to vector<8x128xbf16>
    %c0_262 = arith.constant 0 : index
    %c0_263 = arith.constant 0 : index
    %c512_264 = arith.constant 512 : index
    %588 = vector.load %arg4[%c0_262, %c0_263, %c512_264] : memref<1x128x1024xbf16, #tpu.memory_space<vmem>>, vector<1x128x512xbf16>
    %589 = vector.shape_cast %588 : vector<1x128x512xbf16> to vector<128x512xbf16>
    %cst_265 = arith.constant dense<0.000000e+00> : vector<8x512xf32>
    %590 = tpu.matmul %587, %589, %cst_265 {dimension_numbers = #tpu.dot_dimension_numbers<[1], [0], [0], [1], [0, 0, 1, 1], [], []>} : vector<8x128xbf16>, vector<128x512xbf16>, vector<8x512xf32> -> vector<8x512xf32>
    %591 = arith.addf %556, %590 : vector<8x512xf32>
    %592 = vector.extract_strided_slice %591 {offsets = [0, 0], sizes = [8, 256], strides = [1, 1]} : vector<8x512xf32> to vector<8x256xf32>
    %cst_266 = arith.constant 5.000000e-01 : f32
    %593 = vector.broadcast %cst_266 : f32 to vector<8x256xf32>
    %594 = arith.mulf %593, %592 : vector<8x256xf32>
    %595 = math.tanh %594 : vector<8x256xf32>
    %cst_267 = arith.constant 1.000000e+00 : f32
    %596 = vector.broadcast %cst_267 : f32 to vector<8x256xf32>
    %597 = arith.addf %595, %596 : vector<8x256xf32>
    %cst_268 = arith.constant 5.000000e-01 : f32
    %598 = vector.broadcast %cst_268 : f32 to vector<8x256xf32>
    %599 = arith.mulf %598, %597 : vector<8x256xf32>
    %600 = vector.extract_strided_slice %599 {offsets = [0, 0], sizes = [8, 128], strides = [1, 1]} : vector<8x256xf32> to vector<8x128xf32>
    %601 = vector.extract_strided_slice %599 {offsets = [0, 128], sizes = [8, 128], strides = [1, 1]} : vector<8x256xf32> to vector<8x128xf32>
    %602 = vector.extract_strided_slice %591 {offsets = [0, 256], sizes = [8, 128], strides = [1, 1]} : vector<8x512xf32> to vector<8x128xf32>
    %603 = math.tanh %602 : vector<8x128xf32>
    %604 = vector.extract_strided_slice %591 {offsets = [0, 384], sizes = [8, 128], strides = [1, 1]} : vector<8x512xf32> to vector<8x128xf32>
    %cst_269 = arith.constant 5.000000e-01 : f32
    %605 = vector.broadcast %cst_269 : f32 to vector<8x128xf32>
    %606 = arith.mulf %605, %604 : vector<8x128xf32>
    %607 = math.tanh %606 : vector<8x128xf32>
    %cst_270 = arith.constant 1.000000e+00 : f32
    %608 = vector.broadcast %cst_270 : f32 to vector<8x128xf32>
    %609 = arith.addf %607, %608 : vector<8x128xf32>
    %cst_271 = arith.constant 5.000000e-01 : f32
    %610 = vector.broadcast %cst_271 : f32 to vector<8x128xf32>
    %611 = arith.mulf %610, %609 : vector<8x128xf32>
    %612 = arith.mulf %601, %546 : vector<8x128xf32>
    %613 = arith.mulf %600, %603 : vector<8x128xf32>
    %614 = arith.addf %612, %613 : vector<8x128xf32>
    %615 = math.tanh %614 : vector<8x128xf32>
    %616 = arith.mulf %611, %615 : vector<8x128xf32>
    %c0_272 = arith.constant 0 : index
    %c8_273 = arith.constant 8 : index
    %c0_274 = arith.constant 0 : index
    %c0_275 = arith.constant 0 : index
    %617 = vector.load %arg5[%c0_272, %c8_273, %c0_274, %c0_275] : memref<1x10x8x256xf32, #tpu.memory_space<vmem>>, vector<1x1x8x128xf32>
    %618 = vector.shape_cast %617 : vector<1x1x8x128xf32> to vector<8x128xf32>
    %619 = vector.shape_cast %586 : vector<8x128xf32> to vector<1x1x8x128xf32>
    tpu.vector_store %arg5[%c0_272, %c8_273, %c0_274, %c0_275], %619 {strides = array<i32>} : memref<1x10x8x256xf32, #tpu.memory_space<vmem>>, vector<1x1x8x128xf32>,
    %c0_276 = arith.constant 0 : index
    %c1_277 = arith.constant 1 : index
    %c0_278 = arith.constant 0 : index
    %c128_279 = arith.constant 128 : index
    %620 = vector.load %arg5[%c0_276, %c1_277, %c0_278, %c128_279] : memref<1x10x8x256xf32, #tpu.memory_space<vmem>>, vector<1x1x8x128xf32>
    %621 = vector.shape_cast %620 : vector<1x1x8x128xf32> to vector<8x128xf32>
    %622 = vector.shape_cast %616 : vector<8x128xf32> to vector<1x1x8x128xf32>
    tpu.vector_store %arg5[%c0_276, %c1_277, %c0_278, %c128_279], %622 {strides = array<i32>} : memref<1x10x8x256xf32, #tpu.memory_space<vmem>>, vector<1x1x8x128xf32>,
    %c72_280 = arith.constant 72 : index
    %c0_281 = arith.constant 0 : index
    %623 = vector.load %arg6[%c72_280, %c0_281] : memref<80x1024xf32, #tpu.memory_space<vmem>>, vector<8x512xf32>
    %c0_282 = arith.constant 0 : index
    %c512_283 = arith.constant 512 : index
    %624 = vector.load %arg6[%c0_282, %c512_283] : memref<80x1024xf32, #tpu.memory_space<vmem>>, vector<8x512xf32>
    %625 = arith.truncf %586 : vector<8x128xf32> to vector<8x128xbf16>
    %c0_284 = arith.constant 0 : index
    %c0_285 = arith.constant 0 : index
    %c0_286 = arith.constant 0 : index
    %626 = vector.load %arg4[%c0_284, %c0_285, %c0_286] : memref<1x128x1024xbf16, #tpu.memory_space<vmem>>, vector<1x128x512xbf16>
    %627 = vector.shape_cast %626 : vector<1x128x512xbf16> to vector<128x512xbf16>
    %cst_287 = arith.constant dense<0.000000e+00> : vector<8x512xf32>
    %628 = tpu.matmul %625, %627, %cst_287 {dimension_numbers = #tpu.dot_dimension_numbers<[1], [0], [0], [1], [0, 0, 1, 1], [], []>} : vector<8x128xbf16>, vector<128x512xbf16>, vector<8x512xf32> -> vector<8x512xf32>
    %629 = arith.addf %623, %628 : vector<8x512xf32>
    %630 = vector.extract_strided_slice %629 {offsets = [0, 0], sizes = [8, 256], strides = [1, 1]} : vector<8x512xf32> to vector<8x256xf32>
    %cst_288 = arith.constant 5.000000e-01 : f32
    %631 = vector.broadcast %cst_288 : f32 to vector<8x256xf32>
    %632 = arith.mulf %631, %630 : vector<8x256xf32>
    %633 = math.tanh %632 : vector<8x256xf32>
    %cst_289 = arith.constant 1.000000e+00 : f32
    %634 = vector.broadcast %cst_289 : f32 to vector<8x256xf32>
    %635 = arith.addf %633, %634 : vector<8x256xf32>
    %cst_290 = arith.constant 5.000000e-01 : f32
    %636 = vector.broadcast %cst_290 : f32 to vector<8x256xf32>
    %637 = arith.mulf %636, %635 : vector<8x256xf32>
    %638 = vector.extract_strided_slice %637 {offsets = [0, 0], sizes = [8, 128], strides = [1, 1]} : vector<8x256xf32> to vector<8x128xf32>
    %639 = vector.extract_strided_slice %637 {offsets = [0, 128], sizes = [8, 128], strides = [1, 1]} : vector<8x256xf32> to vector<8x128xf32>
    %640 = vector.extract_strided_slice %629 {offsets = [0, 256], sizes = [8, 128], strides = [1, 1]} : vector<8x512xf32> to vector<8x128xf32>
    %641 = math.tanh %640 : vector<8x128xf32>
    %642 = vector.extract_strided_slice %629 {offsets = [0, 384], sizes = [8, 128], strides = [1, 1]} : vector<8x512xf32> to vector<8x128xf32>
    %cst_291 = arith.constant 5.000000e-01 : f32
    %643 = vector.broadcast %cst_291 : f32 to vector<8x128xf32>
    %644 = arith.mulf %643, %642 : vector<8x128xf32>
    %645 = math.tanh %644 : vector<8x128xf32>
    %cst_292 = arith.constant 1.000000e+00 : f32
    %646 = vector.broadcast %cst_292 : f32 to vector<8x128xf32>
    %647 = arith.addf %645, %646 : vector<8x128xf32>
    %cst_293 = arith.constant 5.000000e-01 : f32
    %648 = vector.broadcast %cst_293 : f32 to vector<8x128xf32>
    %649 = arith.mulf %648, %647 : vector<8x128xf32>
    %650 = arith.mulf %639, %584 : vector<8x128xf32>
    %651 = arith.mulf %638, %641 : vector<8x128xf32>
    %652 = arith.addf %650, %651 : vector<8x128xf32>
    %653 = math.tanh %652 : vector<8x128xf32>
    %654 = arith.mulf %649, %653 : vector<8x128xf32>
    %655 = arith.truncf %616 : vector<8x128xf32> to vector<8x128xbf16>
    %c0_294 = arith.constant 0 : index
    %c0_295 = arith.constant 0 : index
    %c512_296 = arith.constant 512 : index
    %656 = vector.load %arg4[%c0_294, %c0_295, %c512_296] : memref<1x128x1024xbf16, #tpu.memory_space<vmem>>, vector<1x128x512xbf16>
    %657 = vector.shape_cast %656 : vector<1x128x512xbf16> to vector<128x512xbf16>
    %cst_297 = arith.constant dense<0.000000e+00> : vector<8x512xf32>
    %658 = tpu.matmul %655, %657, %cst_297 {dimension_numbers = #tpu.dot_dimension_numbers<[1], [0], [0], [1], [0, 0, 1, 1], [], []>} : vector<8x128xbf16>, vector<128x512xbf16>, vector<8x512xf32> -> vector<8x512xf32>
    %659 = arith.addf %624, %658 : vector<8x512xf32>
    %660 = vector.extract_strided_slice %659 {offsets = [0, 0], sizes = [8, 256], strides = [1, 1]} : vector<8x512xf32> to vector<8x256xf32>
    %cst_298 = arith.constant 5.000000e-01 : f32
    %661 = vector.broadcast %cst_298 : f32 to vector<8x256xf32>
    %662 = arith.mulf %661, %660 : vector<8x256xf32>
    %663 = math.tanh %662 : vector<8x256xf32>
    %cst_299 = arith.constant 1.000000e+00 : f32
    %664 = vector.broadcast %cst_299 : f32 to vector<8x256xf32>
    %665 = arith.addf %663, %664 : vector<8x256xf32>
    %cst_300 = arith.constant 5.000000e-01 : f32
    %666 = vector.broadcast %cst_300 : f32 to vector<8x256xf32>
    %667 = arith.mulf %666, %665 : vector<8x256xf32>
    %668 = vector.extract_strided_slice %667 {offsets = [0, 0], sizes = [8, 128], strides = [1, 1]} : vector<8x256xf32> to vector<8x128xf32>
    %669 = vector.extract_strided_slice %667 {offsets = [0, 128], sizes = [8, 128], strides = [1, 1]} : vector<8x256xf32> to vector<8x128xf32>
    %670 = vector.extract_strided_slice %659 {offsets = [0, 256], sizes = [8, 128], strides = [1, 1]} : vector<8x512xf32> to vector<8x128xf32>
    %671 = math.tanh %670 : vector<8x128xf32>
    %672 = vector.extract_strided_slice %659 {offsets = [0, 384], sizes = [8, 128], strides = [1, 1]} : vector<8x512xf32> to vector<8x128xf32>
    %cst_301 = arith.constant 5.000000e-01 : f32
    %673 = vector.broadcast %cst_301 : f32 to vector<8x128xf32>
    %674 = arith.mulf %673, %672 : vector<8x128xf32>
    %675 = math.tanh %674 : vector<8x128xf32>
    %cst_302 = arith.constant 1.000000e+00 : f32
    %676 = vector.broadcast %cst_302 : f32 to vector<8x128xf32>
    %677 = arith.addf %675, %676 : vector<8x128xf32>
    %cst_303 = arith.constant 5.000000e-01 : f32
    %678 = vector.broadcast %cst_303 : f32 to vector<8x128xf32>
    %679 = arith.mulf %678, %677 : vector<8x128xf32>
    %680 = arith.mulf %669, %614 : vector<8x128xf32>
    %681 = arith.mulf %668, %671 : vector<8x128xf32>
    %682 = arith.addf %680, %681 : vector<8x128xf32>
    %683 = math.tanh %682 : vector<8x128xf32>
    %684 = arith.mulf %679, %683 : vector<8x128xf32>
    %c0_304 = arith.constant 0 : index
    %c9_305 = arith.constant 9 : index
    %c0_306 = arith.constant 0 : index
    %c0_307 = arith.constant 0 : index
    %685 = vector.load %arg5[%c0_304, %c9_305, %c0_306, %c0_307] : memref<1x10x8x256xf32, #tpu.memory_space<vmem>>, vector<1x1x8x128xf32>
    %686 = vector.shape_cast %685 : vector<1x1x8x128xf32> to vector<8x128xf32>
    %687 = vector.shape_cast %654 : vector<8x128xf32> to vector<1x1x8x128xf32>
    tpu.vector_store %arg5[%c0_304, %c9_305, %c0_306, %c0_307], %687 {strides = array<i32>} : memref<1x10x8x256xf32, #tpu.memory_space<vmem>>, vector<1x1x8x128xf32>,
    %c0_308 = arith.constant 0 : index
    %c0_309 = arith.constant 0 : index
    %c0_310 = arith.constant 0 : index
    %c128_311 = arith.constant 128 : index
    %688 = vector.load %arg5[%c0_308, %c0_309, %c0_310, %c128_311] : memref<1x10x8x256xf32, #tpu.memory_space<vmem>>, vector<1x1x8x128xf32>
    %689 = vector.shape_cast %688 : vector<1x1x8x128xf32> to vector<8x128xf32>
    %690 = vector.shape_cast %684 : vector<8x128xf32> to vector<1x1x8x128xf32>
    tpu.vector_store %arg5[%c0_308, %c0_309, %c0_310, %c128_311], %690 {strides = array<i32>} : memref<1x10x8x256xf32, #tpu.memory_space<vmem>>, vector<1x1x8x128xf32>,
    return
  }
  func.func @transform_0(%arg0: i32) -> (i32, i32, i32) {
    %c0_i32 = arith.constant 0 : i32
    %c0_i32_0 = arith.constant 0 : i32
    %c0_i32_1 = arith.constant 0 : i32
    return %arg0, %c0_i32, %c0_i32_0 : i32, i32, i32
  }
  func.func @transform_1(%arg0: i32) -> (i32, i32, i32) {
    %c0_i32 = arith.constant 0 : i32
    %c0_i32_0 = arith.constant 0 : i32
    %c0_i32_1 = arith.constant 0 : i32
    return %arg0, %c0_i32, %c0_i32_0 : i32, i32, i32
  }
  func.func @transform_2(%arg0: i32) -> (i32, i32, i32) {
    %c0_i32 = arith.constant 0 : i32
    %c0_i32_0 = arith.constant 0 : i32
    %c0_i32_1 = arith.constant 0 : i32
    return %arg0, %c0_i32, %c0_i32_0 : i32, i32, i32
  }
  func.func @transform_3(%arg0: i32) -> (i32, i32, i32) {
    %c0_i32 = arith.constant 0 : i32
    %c0_i32_0 = arith.constant 0 : i32
    %c0_i32_1 = arith.constant 0 : i32
    return %arg0, %c0_i32, %c0_i32_0 : i32, i32, i32
  }
  func.func @transform_4(%arg0: i32) -> (i32, i32, i32, i32) {
    %c0_i32 = arith.constant 0 : i32
    %c0_i32_0 = arith.constant 0 : i32
    %c0_i32_1 = arith.constant 0 : i32
    %c0_i32_2 = arith.constant 0 : i32
    return %arg0, %c0_i32, %c0_i32_0, %c0_i32_1 : i32, i32, i32, i32
  }
}

</mosaic_0001>

<bundles_post_ra>
// kernel: lstm_a_v_forward.1
= control target key start
LH: loop header
LB: loop body
LE: loop exit
PB: predicated region body
PF: predicated region fallthrough
CT: control target
= control target key end

     0   :  { %s8748_s15 = smov 0   ;;  %s11067_s0 = inlined_call_operand.vmem [shape: bf16[2,80,256], index: 0, kind: input, shape index: {}]   ;;  %s11068_s1 = inlined_call_operand.vmem [shape: bf16[2,256,1024], index: 1, kind: input, shape index: {}]   ;;  %s11069_s2 = inlined_call_operand.vmem [shape: f32[2,1,1024], index: 2, kind: input, shape index: {}]   ;;  %s11070_s3 = inlined_call_operand.vmem [shape: bf16[2,128,1024], index: 3, kind: input, shape index: {}]   ;;  %s11071_s4 = inlined_call_operand.vmem [shape: f32[2,10,8,256], index: 4, kind: output, shape index: {}]  }
   0x1 LB: > { %s7676_s16 = sadd.s32 4294967295, %s8720_s15   ;;  %p7680_p0 = scmp.ge.s32.totalorder %s8720_s15, 1  ;;  %s8720_s15 = sphi %s8748_s15, %s14_s15  }
   0x2   : > { %p191_p1 = scmp.lt.s32.totalorder %s8720_s15, 3 }
   0x4   : > { %p192_p2 = pnand %p7680_p0, %p191_p1 }
   0x6   : > { %195 = sbr.rel (%p192_p2) target bundleno = 2609 (0xa31), region = 36 }
   0xb   : > { %p231_p3 = scmp.lt.s32.totalorder %s7676_s16, 1 }
   0xd   : > { %s11375_s16 = smov (!%p231_p3, %s7676_s16), 1 }
   0xe   : > { %s8486_s17 = sshll.u32 %s11375_s16, 10  ;;  %s8488_s21 = smul.u32 80, %s11375_s16 }
   0xf   : > { %s8762_s20 = scalar_lea.vmem %s11068_s1, %s8486_s17  ;;  %s8487_s25 = sshll.u32 %s11375_s16, 9 }
  0x10   : > { %v322_v0 = vld [vmem:[%s8762_s20 + $0x1c0] sm:$0xff]  ;;  %v323_v2 = vld [vmem:[%s8762_s20 + $0x1c8] sm:$0xff]  ;;  %s8796_s24 = scalar_lea.vmem %s11067_s0, %s8488_s21  ;;  %s8954_s28 = scalar_lea.vmem %s11070_s3, %s8487_s25 }
  0x11   : > { %v326_v1 = vld [vmem:[%s8762_s20 + $0x1e0] sm:$0xff]  ;;  %v327_v4 = vld [vmem:[%s8762_s20 + $0x1e8] sm:$0xff]  ;;  %s7684_s29 = sshll.u32 %s11375_s16, 3  ;;  %s8489_s7 = smul.u32 160, %s11375_s16 }
  0x12   : > { %v7755_v3 = vcombine.high %v322_v0, %v326_v1  ;;  %v7754_v5 = vcombine.low %v322_v0, %v326_v1  ;;  %v314_v6 = vld [vmem:[%s8762_s20 + $0x180] sm:$0xff]  ;;  %v7757_v8 = vcombine.high %v323_v2, %v327_v4  ;;  %v7756_v9 = vcombine.low %v323_v2, %v327_v4  ;;  %v315_v11 = vld [vmem:[%s8762_s20 + $0x188] sm:$0xff]  ;;  %s244_s6 = scalar_lea.vmem %s11069_s2, %s7684_s29 }
  0x13   : > { %v318_v7 = vld [vmem:[%s8762_s20 + $0x1a0] sm:$0xff]  ;;  %v319_v12 = vld [vmem:[%s8762_s20 + $0x1a8] sm:$0xff]  ;;  %s9552_s10 = scalar_lea.vmem %s11071_s4, %s8489_s7 }
  0x14   : > { %v7747_v10 = vcombine.high %v314_v6, %v318_v7  ;;  %v306_v13 = vld [vmem:[%s8762_s20 + $0x140] sm:$0xff]  ;;  %1126 = vmatprep.subr.bf16.mxu0 %v7755_v3  ;;  %v7749_v14 = vcombine.high %v315_v11, %v319_v12  ;;  %v307_v16 = vld [vmem:[%s8762_s20 + $0x148] sm:$0xff]  ;;  %1209 = vmatprep.subr.bf16.mxu1 %v7757_v8  ;;  %v7746_v18 = vcombine.low %v314_v6, %v318_v7 }
  0x15   : > { %v310_v15 = vld [vmem:[%s8762_s20 + $0x160] sm:$0xff]  ;;  %v311_v17 = vld [vmem:[%s8762_s20 + $0x168] sm:$0xff]  ;;  %1127 = vmatpush1.bf16.msra.mxu0 %v7754_v5  ;;  %1210 = vmatpush1.bf16.msra.mxu1 %v7756_v9  ;;  %v7748_v19 = vcombine.low %v315_v11, %v319_v12 }
  0x16   : > { %1128 = vmatprep.subr.bf16.mxu0 %v7747_v10  ;;  %v7739_v20 = vcombine.high %v306_v13, %v310_v15  ;;  %1211 = vmatprep.subr.bf16.mxu1 %v7749_v14  ;;  %v7741_v21 = vcombine.high %v307_v16, %v311_v17  ;;  %v298_v22 = vld [vmem:[%s8762_s20 + $0x100] sm:$0xff]  ;;  %v299_v24 = vld [vmem:[%s8762_s20 + $0x108] sm:$0xff]  ;;  %v7738_v26 = vcombine.low %v306_v13, %v310_v15 }
  0x17   : > { %v302_v23 = vld [vmem:[%s8762_s20 + $0x120] sm:$0xff]  ;;  %v303_v25 = vld [vmem:[%s8762_s20 + $0x128] sm:$0xff]  ;;  %v7740_v27 = vcombine.low %v307_v16, %v311_v17 }
  0x18   : > { %v7731_v28 = vcombine.high %v298_v22, %v302_v23  ;;  %v7733_v29 = vcombine.high %v299_v24, %v303_v25  ;;  %v290_v30 = vld [vmem:[%s8762_s20 + $0xc0] sm:$0xff]  ;;  %v291_v32 = vld [vmem:[%s8762_s20 + $0xc8] sm:$0xff]  ;;  %v7730_v34 = vcombine.low %v298_v22, %v302_v23  ;;  %v7732_v35 = vcombine.low %v299_v24, %v303_v25 }
  0x19   : > { %1129 = vmatpush1.bf16.msra.mxu0 %v7746_v18  ;;  %1212 = vmatpush1.bf16.msra.mxu1 %v7748_v19  ;;  %v294_v31 = vld [vmem:[%s8762_s20 + $0xe0] sm:$0xff]  ;;  %v295_v33 = vld [vmem:[%s8762_s20 + $0xe8] sm:$0xff] }
  0x1a   : > { %1130 = vmatprep.subr.bf16.mxu0 %v7739_v20  ;;  %1213 = vmatprep.subr.bf16.mxu1 %v7741_v21  ;;  %v7723_v36 = vcombine.high %v290_v30, %v294_v31  ;;  %v7725_v37 = vcombine.high %v291_v32, %v295_v33  ;;  %v282_v38 = vld [vmem:[%s8762_s20 + $0x80] sm:$0xff]  ;;  %v283_v40 = vld [vmem:[%s8762_s20 + $0x88] sm:$0xff]  ;;  %v7722_v42 = vcombine.low %v290_v30, %v294_v31 }
  0x1b   : > { %v286_v39 = vld [vmem:[%s8762_s20 + $0xa0] sm:$0xff]  ;;  %v287_v41 = vld [vmem:[%s8762_s20 + $0xa8] sm:$0xff]  ;;  %v7724_v43 = vcombine.low %v291_v32, %v295_v33 }
  0x1c   : > { %v7715_v44 = vcombine.high %v282_v38, %v286_v39  ;;  %v7717_v45 = vcombine.high %v283_v40, %v287_v41  ;;  %v274_v46 = vld [vmem:[%s8762_s20 + $0x40] sm:$0xff]  ;;  %v275_v48 = vld [vmem:[%s8762_s20 + $0x48] sm:$0xff]  ;;  %v7714_v50 = vcombine.low %v282_v38, %v286_v39  ;;  %v7716_v51 = vcombine.low %v283_v40, %v287_v41 }
  0x1d   : > { %1131 = vmatpush1.bf16.msra.mxu0 %v7738_v26  ;;  %1214 = vmatpush1.bf16.msra.mxu1 %v7740_v27  ;;  %v278_v47 = vld [vmem:[%s8762_s20 + $0x60] sm:$0xff]  ;;  %v279_v49 = vld [vmem:[%s8762_s20 + $0x68] sm:$0xff] }
  0x1e   : > { %1132 = vmatprep.subr.bf16.mxu0 %v7731_v28  ;;  %1215 = vmatprep.subr.bf16.mxu1 %v7733_v29  ;;  %v7707_v52 = vcombine.high %v274_v46, %v278_v47  ;;  %v7709_v53 = vcombine.high %v275_v48, %v279_v49  ;;  %v266_v54 = vld [vmem:[%s8762_s20] sm:$0xff]  ;;  %v267_v57 = vld [vmem:[%s8762_s20 + $0x8] sm:$0xff]  ;;  %v7706_v59 = vcombine.low %v274_v46, %v278_v47 }
  0x1f   : > { %v270_v55 = vld [vmem:[%s8762_s20 + $0x20] sm:$0xff]  ;;  %v271_v58 = vld [vmem:[%s8762_s20 + $0x28] sm:$0xff]  ;;  %v7708_v60 = vcombine.low %v275_v48, %v279_v49 }
  0x20   : > { %v8801_v56 = vld [vmem:[%s8796_s24 + $0x4] ss:$8 sps:$4 sm:$0xff]   ;;  %v7699_v61 = vcombine.high %v266_v54, %v270_v55  ;;  %v7701_v62 = vcombine.high %v267_v57, %v271_v58  ;;  %v7698_v3 = vcombine.low %v266_v54, %v270_v55  ;;  %v7700_v4 = vcombine.low %v267_v57, %v271_v58 }
  0x21   : > { %1133 = vmatpush1.bf16.msra.mxu0 %v7730_v34  ;;  %1216 = vmatpush1.bf16.msra.mxu1 %v7732_v35  ;;  %v386_v63 = vld [vmem:[%s8762_s20 + $0x3c0] sm:$0xff]  ;;  %v387_v1 = vld [vmem:[%s8762_s20 + $0x3c8] sm:$0xff] }
  0x22   : > { %1134 = vmatprep.subr.bf16.mxu0 %v7723_v36  ;;  %1217 = vmatprep.subr.bf16.mxu1 %v7725_v37  ;;  %v390_v0 = vld [vmem:[%s8762_s20 + $0x3e0] sm:$0xff]  ;;  %v391_v2 = vld [vmem:[%s8762_s20 + $0x3e8] sm:$0xff] }
  0x23   : > { %1158 = vmatprep.mubr.bf16.mxu0 %v8801_v56  ;;  %1241 = vmatprep.mubr.bf16.mxu1 %v8801_v56  ;;  %v7819_v5 = vcombine.high %v386_v63, %v390_v0  ;;  %v7821_v6 = vcombine.high %v387_v1, %v391_v2  ;;  %v378_v7 = vld [vmem:[%s8762_s20 + $0x380] sm:$0xff]  ;;  %v379_v9 = vld [vmem:[%s8762_s20 + $0x388] sm:$0xff]  ;;  %v7818_v11 = vcombine.low %v386_v63, %v390_v0  ;;  %v324_v0 = vld [vmem:[%s8762_s20 + $0x1d0] sm:$0xff] }
  0x24   : > { %v382_v8 = vld [vmem:[%s8762_s20 + $0x3a0] sm:$0xff]  ;;  %v383_v10 = vld [vmem:[%s8762_s20 + $0x3a8] sm:$0xff]  ;;  %v7820_v12 = vcombine.low %v387_v1, %v391_v2  ;;  %v328_v1 = vld [vmem:[%s8762_s20 + $0x1f0] sm:$0xff] }
  0x25   : > { %1135 = vmatpush1.bf16.msra.mxu0 %v7722_v42  ;;  %1218 = vmatpush1.bf16.msra.mxu1 %v7724_v43  ;;  %v7811_v13 = vcombine.high %v378_v7, %v382_v8  ;;  %v7813_v14 = vcombine.high %v379_v9, %v383_v10  ;;  %v370_v15 = vld [vmem:[%s8762_s20 + $0x340] sm:$0xff]  ;;  %v371_v17 = vld [vmem:[%s8762_s20 + $0x348] sm:$0xff]  ;;  %v7810_v19 = vcombine.low %v378_v7, %v382_v8  ;;  %v325_v2 = vld [vmem:[%s8762_s20 + $0x1d8] sm:$0xff] }
  0x26   : > { %1136 = vmatprep.subr.bf16.mxu0 %v7715_v44  ;;  %1219 = vmatprep.subr.bf16.mxu1 %v7717_v45  ;;  %v374_v16 = vld [vmem:[%s8762_s20 + $0x360] sm:$0xff]  ;;  %v375_v18 = vld [vmem:[%s8762_s20 + $0x368] sm:$0xff]  ;;  %v7812_v20 = vcombine.low %v379_v9, %v383_v10  ;;  %v316_v8 = vld [vmem:[%s8762_s20 + $0x190] sm:$0xff] }
  0x27   : > { %v7803_v21 = vcombine.high %v370_v15, %v374_v16  ;;  %v7805_v22 = vcombine.high %v371_v17, %v375_v18  ;;  %v362_v23 = vld [vmem:[%s8762_s20 + $0x300] sm:$0xff]  ;;  %v363_v25 = vld [vmem:[%s8762_s20 + $0x308] sm:$0xff]  ;;  %v7802_v27 = vcombine.low %v370_v15, %v374_v16  ;;  %v7804_v28 = vcombine.low %v371_v17, %v375_v18  ;;  %v320_v9 = vld [vmem:[%s8762_s20 + $0x1b0] sm:$0xff] }
  0x28   : > { %v366_v24 = vld [vmem:[%s8762_s20 + $0x320] sm:$0xff]  ;;  %v367_v26 = vld [vmem:[%s8762_s20 + $0x328] sm:$0xff]  ;;  %v7751_v15 = vcombine.high %v316_v8, %v320_v9  ;;  %v308_v17 = vld [vmem:[%s8762_s20 + $0x150] sm:$0xff] }
  0x29   : > { %1137 = vmatpush1.bf16.msra.mxu0 %v7714_v50  ;;  %1220 = vmatpush1.bf16.msra.mxu1 %v7716_v51  ;;  %v7795_v29 = vcombine.high %v362_v23, %v366_v24  ;;  %v7797_v30 = vcombine.high %v363_v25, %v367_v26  ;;  %v354_v31 = vld [vmem:[%s8762_s20 + $0x2c0] sm:$0xff]  ;;  %v355_v33 = vld [vmem:[%s8762_s20 + $0x2c8] sm:$0xff]  ;;  %v7794_v35 = vcombine.low %v362_v23, %v366_v24  ;;  %v312_v18 = vld [vmem:[%s8762_s20 + $0x170] sm:$0xff] }
  0x2a   : > { %1138 = vmatprep.subr.bf16.mxu0 %v7707_v52  ;;  %1221 = vmatprep.subr.bf16.mxu1 %v7709_v53  ;;  %v358_v32 = vld [vmem:[%s8762_s20 + $0x2e0] sm:$0xff]  ;;  %v359_v34 = vld [vmem:[%s8762_s20 + $0x2e8] sm:$0xff]  ;;  %v7796_v36 = vcombine.low %v363_v25, %v367_v26  ;;  %v7743_v24 = vcombine.high %v308_v17, %v312_v18  ;;  %v300_v26 = vld [vmem:[%s8762_s20 + $0x110] sm:$0xff] }
  0x2b   : > { %v7787_v37 = vcombine.high %v354_v31, %v358_v32  ;;  %v7789_v38 = vcombine.high %v355_v33, %v359_v34  ;;  %v346_v39 = vld [vmem:[%s8762_s20 + $0x280] sm:$0xff]  ;;  %v347_v41 = vld [vmem:[%s8762_s20 + $0x288] sm:$0xff]  ;;  %v7786_v43 = vcombine.low %v354_v31, %v358_v32  ;;  %v7788_v44 = vcombine.low %v355_v33, %v359_v34 }
  0x2c   : > { %v350_v40 = vld [vmem:[%s8762_s20 + $0x2a0] sm:$0xff]  ;;  %v351_v42 = vld [vmem:[%s8762_s20 + $0x2a8] sm:$0xff]  ;;  %v7742_v31 = vcombine.low %v308_v17, %v312_v18  ;;  %v380_v18 = vld [vmem:[%s8762_s20 + $0x390] sm:$0xff] }
  0x2d   : > { %1139 = vmatpush1.bf16.msra.mxu0 %v7706_v59  ;;  %1222 = vmatpush1.bf16.msra.mxu1 %v7708_v60  ;;  %v7779_v45 = vcombine.high %v346_v39, %v350_v40  ;;  %v7781_v46 = vcombine.high %v347_v41, %v351_v42  ;;  %v338_v47 = vld [vmem:[%s8762_s20 + $0x240] sm:$0xff]  ;;  %v339_v49 = vld [vmem:[%s8762_s20 + $0x248] sm:$0xff]  ;;  %v7778_v51 = vcombine.low %v346_v39, %v350_v40  ;;  %v297_v39 = vld [vmem:[%s8762_s20 + $0xf8] sm:$0xff] }
  0x2e   : > { %1140 = vmatprep.subr.bf16.mxu0 %v7699_v61  ;;  %1223 = vmatprep.subr.bf16.mxu1 %v7701_v62  ;;  %v342_v48 = vld [vmem:[%s8762_s20 + $0x260] sm:$0xff]  ;;  %v343_v50 = vld [vmem:[%s8762_s20 + $0x268] sm:$0xff]  ;;  %v7780_v52 = vcombine.low %v347_v41, %v351_v42 }
  0x2f   : > { %v7771_v53 = vcombine.high %v338_v47, %v342_v48  ;;  %v7773_v54 = vcombine.high %v339_v49, %v343_v50  ;;  %v330_v55 = vld [vmem:[%s8762_s20 + $0x200] sm:$0xff]  ;;  %v331_v58 = vld [vmem:[%s8762_s20 + $0x208] sm:$0xff]  ;;  %v7770_v60 = vcombine.low %v338_v47, %v342_v48  ;;  %v7772_v61 = vcombine.low %v339_v49, %v343_v50  ;;  %v289_v47 = vld [vmem:[%s8762_s20 + $0xb8] sm:$0xff] }
  0x30   : > { %v334_v57 = vld [vmem:[%s8762_s20 + $0x220] sm:$0xff]  ;;  %v335_v59 = vld [vmem:[%s8762_s20 + $0x228] sm:$0xff] }
  0x31   : > { %1141 = vmatpush1.bf16.msra.mxu0 %v7698_v3  ;;  %1224 = vmatpush1.bf16.msra.mxu1 %v7700_v4  ;;  %v7763_v62 = vcombine.high %v330_v55, %v334_v57  ;;  %v7765_v63 = vcombine.high %v331_v58, %v335_v59  ;;  %v329_v3 = vld [vmem:[%s8762_s20 + $0x1f8] sm:$0xff]  ;;  %v7762_v4 = vcombine.low %v330_v55, %v334_v57  ;;  %v8846_v10 = vld [vmem:[%s8796_s24] ss:$8 sps:$4 sm:$0xff]  }
  0x32   : > { %1142 = vmatprep.subr.bf16.mxu0 %v7819_v5  ;;  %1225 = vmatprep.subr.bf16.mxu1 %v7821_v6  ;;  %v7764_v5 = vcombine.low %v331_v58, %v335_v59  ;;  %v7759_v6 = vcombine.high %v324_v0, %v328_v1  ;;  %v7761_v7 = vcombine.high %v325_v2, %v329_v3  ;;  %v8883_v48 = vld [vmem:[%s8796_s24 + $0x20] ss:$8 sps:$4 sm:$0xff]   ;;  %v8889_v55 = vld [vmem:[%s8796_s24 + $0x34] ss:$8 sps:$4 sm:$0xff]  }
  0x33   : > { %v277_v57 = vld [vmem:[%s8762_s20 + $0x58] sm:$0xff] }
  0x34   : > { %v281_v58 = vld [vmem:[%s8762_s20 + $0x78] sm:$0xff] }
  0x35   : > { %1143 = vmatpush2.bf16.msra.mxu0 %v7818_v11  ;;  %1226 = vmatpush2.bf16.msra.mxu1 %v7820_v12  ;;  %v317_v11 = vld [vmem:[%s8762_s20 + $0x198] sm:$0xff] }
  0x36   : > { %1144 = vmatprep.subr.bf16.mxu0 %v7811_v13  ;;  %1227 = vmatprep.subr.bf16.mxu1 %v7813_v14  ;;  %v321_v12 = vld [vmem:[%s8762_s20 + $0x1b8] sm:$0xff]  ;;  %v7758_v13 = vcombine.low %v324_v0, %v328_v1  ;;  %v7760_v14 = vcombine.low %v325_v2, %v329_v3  ;;  %v272_v0 = vld [vmem:[%s8762_s20 + $0x30] sm:$0xff] }
  0x37   : > { %v7753_v16 = vcombine.high %v317_v11, %v321_v12  ;;  %v7752_v23 = vcombine.low %v317_v11, %v321_v12  ;;  %v269_v1 = vld [vmem:[%s8762_s20 + $0x18] sm:$0xff]  ;;  %v8907_v11 = vld [vmem:[%s8796_s24 + $0x44] ss:$8 sps:$4 sm:$0xff]  }
  0x38   : > { %v273_v2 = vld [vmem:[%s8762_s20 + $0x38] sm:$0xff] }
  0x39   : > { %1145 = vmatpush2.bf16.msra.mxu0 %v7810_v19  ;;  %1228 = vmatpush2.bf16.msra.mxu1 %v7812_v20  ;;  %v8853_v19 = vld [vmem:[%s8796_s24 + $0x14] ss:$8 sps:$4 sm:$0xff]   ;;  %v8901_v3 = vld [vmem:[%s8796_s24 + $0x30] ss:$8 sps:$4 sm:$0xff]  }
  0x3a   : > { %1146 = vmatprep.subr.bf16.mxu0 %v7803_v21  ;;  %1229 = vmatprep.subr.bf16.mxu1 %v7805_v22  ;;  %v309_v20 = vld [vmem:[%s8762_s20 + $0x158] sm:$0xff]  ;;  %v7750_v22 = vcombine.low %v316_v8, %v320_v9  ;;  %v388_v8 = vld [vmem:[%s8762_s20 + $0x3d0] sm:$0xff] }
  0x3b   : > { %v313_v21 = vld [vmem:[%s8762_s20 + $0x178] sm:$0xff]  ;;  %v392_v9 = vld [vmem:[%s8762_s20 + $0x3f0] sm:$0xff] }
  0x3c   : > { %v7745_v25 = vcombine.high %v309_v20, %v313_v21  ;;  %v7744_v32 = vcombine.low %v309_v20, %v313_v21  ;;  %v389_v12 = vld [vmem:[%s8762_s20 + $0x3d8] sm:$0xff]  ;;  %v384_v20 = vld [vmem:[%s8762_s20 + $0x3b0] sm:$0xff] }
  0x3d   : > { %1147 = vmatpush2.bf16.msra.mxu0 %v7802_v27  ;;  %1230 = vmatpush2.bf16.msra.mxu1 %v7804_v28  ;;  %v304_v27 = vld [vmem:[%s8762_s20 + $0x130] sm:$0xff]  ;;  %v301_v28 = vld [vmem:[%s8762_s20 + $0x118] sm:$0xff] }
  0x3e   : > { %1148 = vmatprep.subr.bf16.mxu0 %v7795_v29  ;;  %1231 = vmatprep.subr.bf16.mxu1 %v7797_v30  ;;  %v305_v29 = vld [vmem:[%s8762_s20 + $0x138] sm:$0xff]  ;;  %v7735_v33 = vcombine.high %v300_v26, %v304_v27  ;;  %v7734_v40 = vcombine.low %v300_v26, %v304_v27  ;;  %v7815_v26 = vcombine.high %v380_v18, %v384_v20 }
  0x3f   : > { %v8865_v30 = vld [vmem:[%s8796_s24 + $0x10] ss:$8 sps:$4 sm:$0xff]   ;;  %v7737_v34 = vcombine.high %v301_v28, %v305_v29  ;;  %v7736_v41 = vcombine.low %v301_v28, %v305_v29 }
  0x40   : > { %v381_v21 = vld [vmem:[%s8762_s20 + $0x398] sm:$0xff]  ;;  %v372_v28 = vld [vmem:[%s8762_s20 + $0x350] sm:$0xff] }
  0x41   : > { %1149 = vmatpush2.bf16.msra.mxu0 %v7794_v35  ;;  %1232 = vmatpush2.bf16.msra.mxu1 %v7796_v36  ;;  %v292_v35 = vld [vmem:[%s8762_s20 + $0xd0] sm:$0xff] }
  0x42   : > { %1150 = vmatprep.subr.bf16.mxu0 %v7787_v37  ;;  %1233 = vmatprep.subr.bf16.mxu1 %v7789_v38  ;;  %v296_v36 = vld [vmem:[%s8762_s20 + $0xf0] sm:$0xff]  ;;  %v8871_v37 = vld [vmem:[%s8796_s24 + $0x24] ss:$8 sps:$4 sm:$0xff]   ;;  %v293_v38 = vld [vmem:[%s8762_s20 + $0xd8] sm:$0xff] }
  0x43   : > { %v7727_v42 = vcombine.high %v292_v35, %v296_v36  ;;  %v7726_v49 = vcombine.low %v292_v35, %v296_v36  ;;  %v7728_v50 = vcombine.low %v293_v38, %v297_v39  ;;  %v376_v29 = vld [vmem:[%s8762_s20 + $0x370] sm:$0xff] }
  0x44   : > { %v7807_v35 = vcombine.high %v372_v28, %v376_v29 }
  0x45   : > { %1151 = vmatpush2.bf16.msra.mxu0 %v7786_v43  ;;  %1234 = vmatpush2.bf16.msra.mxu1 %v7788_v44  ;;  %v7729_v43 = vcombine.high %v293_v38, %v297_v39  ;;  %v284_v44 = vld [vmem:[%s8762_s20 + $0x90] sm:$0xff] }
  0x46   : > { %1152 = vmatprep.subr.bf16.mxu0 %v7779_v45  ;;  %1235 = vmatprep.subr.bf16.mxu1 %v7781_v46  ;;  %v288_v45 = vld [vmem:[%s8762_s20 + $0xb0] sm:$0xff]  ;;  %v285_v46 = vld [vmem:[%s8762_s20 + $0x98] sm:$0xff] }
  0x47   : > { %v7718_v59 = vcombine.low %v284_v44, %v288_v45  ;;  %v364_v38 = vld [vmem:[%s8762_s20 + $0x310] sm:$0xff] }
  0x48   : > { %v368_v39 = vld [vmem:[%s8762_s20 + $0x330] sm:$0xff] }
  0x49   : > { %1153 = vmatpush2.bf16.msra.mxu0 %v7778_v51  ;;  %1236 = vmatpush2.bf16.msra.mxu1 %v7780_v52  ;;  %v7719_v51 = vcombine.high %v284_v44, %v288_v45  ;;  %v7721_v52 = vcombine.high %v285_v46, %v289_v47  ;;  %v7799_v44 = vcombine.high %v364_v38, %v368_v39 }
  0x4a   : > { %1154 = vmatprep.subr.bf16.mxu0 %v7771_v53  ;;  %1237 = vmatprep.subr.bf16.mxu1 %v7773_v54  ;;  %v276_v53 = vld [vmem:[%s8762_s20 + $0x50] sm:$0xff] }
  0x4b   : > { %v280_v54 = vld [vmem:[%s8762_s20 + $0x70] sm:$0xff] }
  0x4d   : > { %1155 = vmatpush2.bf16.msra.mxu0 %v7770_v60  ;;  %1238 = vmatpush2.bf16.msra.mxu1 %v7772_v61  ;;  %v7720_v60 = vcombine.low %v285_v46, %v289_v47  ;;  %v7711_v61 = vcombine.high %v276_v53, %v280_v54  ;;  %v356_v46 = vld [vmem:[%s8762_s20 + $0x2d0] sm:$0xff] }
  0x4e   : > { %1156 = vmatprep.subr.bf16.mxu0 %v7763_v62  ;;  %1239 = vmatprep.subr.bf16.mxu1 %v7765_v63  ;;  %v7713_v62 = vcombine.high %v277_v57, %v281_v58  ;;  %v268_v63 = vld [vmem:[%s8762_s20 + $0x10] sm:$0xff] }
  0x4f   : > { %v360_v47 = vld [vmem:[%s8762_s20 + $0x2f0] sm:$0xff] }
  0x51   : > { %1157 = vmatpush2.bf16.msra.mxu0 %v7762_v4  ;;  %1240 = vmatpush2.bf16.msra.mxu1 %v7764_v5  ;;  %v7710_v4 = vcombine.low %v276_v53, %v280_v54  ;;  %v7712_v5 = vcombine.low %v277_v57, %v281_v58  ;;  %v348_v54 = vld [vmem:[%s8762_s20 + $0x290] sm:$0xff]  ;;  %v349_v58 = vld [vmem:[%s8762_s20 + $0x298] sm:$0xff] }
  0x52   : > { %1292 = vmatprep.subr.bf16.mxu0 %v7759_v6  ;;  %1375 = vmatprep.subr.bf16.mxu1 %v7761_v7  ;;  %v7703_v6 = vcombine.high %v268_v63, %v272_v0  ;;  %v7705_v7 = vcombine.high %v269_v1, %v273_v2  ;;  %v352_v57 = vld [vmem:[%s8762_s20 + $0x2b0] sm:$0xff] }
  0x54   : > { %1159 = vmatmul.mubr.bf16.vlgmr.msra.gmra.mxu0 %v8846_v10  ;;  %1242 = vmatmul.mubr.bf16.vlgmr.msra.gmra.mxu1 %v8846_v10 }
  0x55   : > { %1293 = vmatpush1.bf16.msra.mxu0 %v7758_v13  ;;  %1376 = vmatpush1.bf16.msra.mxu1 %v7760_v14  ;;  %v393_v13 = vld [vmem:[%s8762_s20 + $0x3f8] sm:$0xff]  ;;  %v7702_v14 = vcombine.low %v268_v63, %v272_v0  ;;  %v340_v0 = vld [vmem:[%s8762_s20 + $0x250] sm:$0xff] }
  0x56   : > { %1294 = vmatprep.subr.bf16.mxu0 %v7751_v15  ;;  %1377 = vmatprep.subr.bf16.mxu1 %v7753_v16  ;;  %v7704_v15 = vcombine.low %v269_v1, %v273_v2  ;;  %v7823_v16 = vcombine.high %v388_v8, %v392_v9  ;;  %v7825_v17 = vcombine.high %v389_v12, %v393_v13  ;;  %v344_v1 = vld [vmem:[%s8762_s20 + $0x270] sm:$0xff]  ;;  %v341_v2 = vld [vmem:[%s8762_s20 + $0x258] sm:$0xff] }
  0x57   : > { %1168 = vmatprep.mubr.bf16.mxu0 %v8853_v19  ;;  %1251 = vmatprep.mubr.bf16.mxu1 %v8853_v19 }
  0x59   : > { %1295 = vmatpush1.bf16.msra.mxu0 %v7750_v22  ;;  %1378 = vmatpush1.bf16.msra.mxu1 %v7752_v23  ;;  %v385_v22 = vld [vmem:[%s8762_s20 + $0x3b8] sm:$0xff]  ;;  %v8919_v23 = vld [vmem:[%s8796_s24 + $0x40] ss:$8 sps:$4 sm:$0xff]  }
  0x5a   : > { %1296 = vmatprep.subr.bf16.mxu0 %v7743_v24  ;;  %1379 = vmatprep.subr.bf16.mxu1 %v7745_v25  ;;  %v7822_v24 = vcombine.low %v388_v8, %v392_v9  ;;  %v7824_v25 = vcombine.low %v389_v12, %v393_v13  ;;  %v7817_v27 = vcombine.high %v381_v21, %v385_v22  ;;  %v332_v9 = vld [vmem:[%s8762_s20 + $0x210] sm:$0xff]  ;;  %v333_v13 = vld [vmem:[%s8762_s20 + $0x218] sm:$0xff] }
  0x5b   : > { %v336_v12 = vld [vmem:[%s8762_s20 + $0x230] sm:$0xff] }
  0x5c   : > { %1169 = vmatmul.mubr.bf16.gmra.mxu0 %v8865_v30  ;;  %1252 = vmatmul.mubr.bf16.gmra.mxu1 %v8865_v30 }
  0x5d   : > { %1297 = vmatpush1.bf16.msra.mxu0 %v7742_v31  ;;  %1380 = vmatpush1.bf16.msra.mxu1 %v7744_v32  ;;  %v373_v31 = vld [vmem:[%s8762_s20 + $0x358] sm:$0xff] }
  0x5e   : > { %1298 = vmatprep.subr.bf16.mxu0 %v7735_v33  ;;  %1381 = vmatprep.subr.bf16.mxu1 %v7737_v34  ;;  %v377_v32 = vld [vmem:[%s8762_s20 + $0x378] sm:$0xff]  ;;  %v7814_v33 = vcombine.low %v380_v18, %v384_v20  ;;  %v7816_v34 = vcombine.low %v381_v21, %v385_v22  ;;  %v1574_v20 = vld [vmem:[%s8954_s28 + $0x1c0] sm:$0xff]  ;;  %v1575_v22 = vld [vmem:[%s8954_s28 + $0x1c8] sm:$0xff] }
  0x5f   : > { %1178 = vmatprep.mubr.bf16.mxu0 %v8871_v37  ;;  %1261 = vmatprep.mubr.bf16.mxu1 %v8871_v37  ;;  %v7809_v36 = vcombine.high %v373_v31, %v377_v32  ;;  %v1576_v21 = vld [vmem:[%s8954_s28 + $0x1e0] sm:$0xff] }
  0x61   : > { %1299 = vmatpush1.bf16.msra.mxu0 %v7734_v40  ;;  %1382 = vmatpush1.bf16.msra.mxu1 %v7736_v41  ;;  %v365_v40 = vld [vmem:[%s8762_s20 + $0x318] sm:$0xff] }
  0x62   : > { %1300 = vmatprep.subr.bf16.mxu0 %v7727_v42  ;;  %1383 = vmatprep.subr.bf16.mxu1 %v7729_v43  ;;  %v369_v41 = vld [vmem:[%s8762_s20 + $0x338] sm:$0xff]  ;;  %v7806_v42 = vcombine.low %v372_v28, %v376_v29  ;;  %v7808_v43 = vcombine.low %v373_v31, %v377_v32  ;;  %v1570_v28 = vld [vmem:[%s8954_s28 + $0x180] sm:$0xff]  ;;  %v8966_v32 = vcombine.low %v1574_v20, %v1576_v21 }
  0x63   : > { %v7801_v45 = vcombine.high %v365_v40, %v369_v41  ;;  %v1572_v29 = vld [vmem:[%s8954_s28 + $0x1a0] sm:$0xff] }
  0x64   : > { %1179 = vmatmul.mubr.bf16.gmra.mxu0 %v8883_v48  ;;  %1262 = vmatmul.mubr.bf16.gmra.mxu1 %v8883_v48 }
  0x65   : > { %1301 = vmatpush1.bf16.msra.mxu0 %v7726_v49  ;;  %1384 = vmatpush1.bf16.msra.mxu1 %v7728_v50  ;;  %v357_v49 = vld [vmem:[%s8762_s20 + $0x2d8] sm:$0xff] }
  0x66   : > { %1302 = vmatprep.subr.bf16.mxu0 %v7719_v51  ;;  %1385 = vmatprep.subr.bf16.mxu1 %v7721_v52  ;;  %v361_v50 = vld [vmem:[%s8762_s20 + $0x2f8] sm:$0xff]  ;;  %v7798_v51 = vcombine.low %v364_v38, %v368_v39  ;;  %v7791_v52 = vcombine.high %v356_v46, %v360_v47  ;;  %v1566_v38 = vld [vmem:[%s8954_s28 + $0x140] sm:$0xff] }
  0x67   : > { %1188 = vmatprep.mubr.bf16.mxu0 %v8889_v55  ;;  %1271 = vmatprep.mubr.bf16.mxu1 %v8889_v55  ;;  %v7793_v53 = vcombine.high %v357_v49, %v361_v50  ;;  %v1568_v39 = vld [vmem:[%s8954_s28 + $0x160] sm:$0xff] }
  0x69   : > { %1303 = vmatpush1.bf16.msra.mxu0 %v7718_v59  ;;  %1386 = vmatpush1.bf16.msra.mxu1 %v7720_v60  ;;  %v353_v59 = vld [vmem:[%s8762_s20 + $0x2b8] sm:$0xff]  ;;  %v7790_v60 = vcombine.low %v356_v46, %v360_v47  ;;  %v1564_v46 = vld [vmem:[%s8954_s28 + $0x120] sm:$0xff] }
  0x6a   : > { %1304 = vmatprep.subr.bf16.mxu0 %v7711_v61  ;;  %1387 = vmatprep.subr.bf16.mxu1 %v7713_v62  ;;  %v7792_v61 = vcombine.low %v357_v49, %v361_v50  ;;  %v7783_v62 = vcombine.high %v348_v54, %v352_v57  ;;  %v7785_v63 = vcombine.high %v349_v58, %v353_v59  ;;  %v1563_v50 = vld [vmem:[%s8954_s28 + $0x108] sm:$0xff] }
  0x6b   : > { %v9001_v49 = vcombine.low %v1566_v38, %v1568_v39 }
  0x6c   : > { %1189 = vmatmul.mubr.bf16.gmra.mxu0 %v8901_v3  ;;  %1272 = vmatmul.mubr.bf16.gmra.mxu1 %v8901_v3 }
  0x6d   : > { %1305 = vmatpush1.bf16.msra.mxu0 %v7710_v4  ;;  %1388 = vmatpush1.bf16.msra.mxu1 %v7712_v5  ;;  %v345_v4 = vld [vmem:[%s8762_s20 + $0x278] sm:$0xff]  ;;  %v7782_v5 = vcombine.low %v348_v54, %v352_v57 }
  0x6e   : > { %1306 = vmatprep.subr.bf16.mxu0 %v7703_v6  ;;  %1389 = vmatprep.subr.bf16.mxu1 %v7705_v7  ;;  %v7784_v6 = vcombine.low %v349_v58, %v353_v59  ;;  %v7775_v7 = vcombine.high %v340_v0, %v344_v1  ;;  %v7777_v8 = vcombine.high %v341_v2, %v345_v4  ;;  %v1559_v58 = vld [vmem:[%s8954_s28 + $0xc8] sm:$0xff] }
  0x6f   : > { %1198 = vmatprep.mubr.bf16.mxu0 %v8907_v11  ;;  %1281 = vmatprep.mubr.bf16.mxu1 %v8907_v11  ;;  %v1561_v59 = vld [vmem:[%s8954_s28 + $0xe8] sm:$0xff] }
  0x71   : > { %1307 = vmatpush1.bf16.msra.mxu0 %v7702_v14  ;;  %1390 = vmatpush1.bf16.msra.mxu1 %v7704_v15  ;;  %v337_v14 = vld [vmem:[%s8762_s20 + $0x238] sm:$0xff]  ;;  %v7774_v15 = vcombine.low %v340_v0, %v344_v1  ;;  %v1555_v0 = vld [vmem:[%s8954_s28 + $0x88] sm:$0xff] }
  0x72   : > { %1308 = vmatprep.subr.bf16.mxu0 %v7823_v16  ;;  %1391 = vmatprep.subr.bf16.mxu1 %v7825_v17  ;;  %v7776_v16 = vcombine.low %v341_v2, %v345_v4  ;;  %v7767_v17 = vcombine.high %v332_v9, %v336_v12  ;;  %v7769_v18 = vcombine.high %v333_v13, %v337_v14  ;;  %v1557_v1 = vld [vmem:[%s8954_s28 + $0xa8] sm:$0xff] }
  0x73   : > { %v9043_v2 = vcombine.low %v1559_v58, %v1561_v59 }
  0x74   : > { %1199 = vmatmul.mubr.bf16.gmra.mxu0 %v8919_v23  ;;  %1282 = vmatmul.mubr.bf16.gmra.mxu1 %v8919_v23 }
  0x75   : > { %1309 = vmatpush2.bf16.msra.mxu0 %v7822_v24  ;;  %1392 = vmatpush2.bf16.msra.mxu1 %v7824_v25  ;;  %v1577_v24 = vld [vmem:[%s8954_s28 + $0x1e8] sm:$0xff]  ;;  %v7766_v25 = vcombine.low %v332_v9, %v336_v12 }
  0x76   : > { %1310 = vmatprep.subr.bf16.mxu0 %v7815_v26  ;;  %1393 = vmatprep.subr.bf16.mxu1 %v7817_v27  ;;  %v7768_v26 = vcombine.low %v333_v13, %v337_v14  ;;  %v8960_v27 = vcombine.high %v1574_v20, %v1576_v21  ;;  %v8964_v31 = vcombine.high %v1575_v22, %v1577_v24  ;;  %v1551_v9 = vld [vmem:[%s8954_s28 + $0x48] sm:$0xff] }
  0x77   : > { %1324 = vmatprep.mubr.bf16.mxu0 %v8801_v56  ;;  %1407 = vmatprep.mubr.bf16.mxu1 %v8801_v56  ;;  %v7800_v56 = vcombine.low %v365_v40, %v369_v41  ;;  %v8983_v41 = vcombine.low %v1570_v28, %v1572_v29  ;;  %v1553_v12 = vld [vmem:[%s8954_s28 + $0x68] sm:$0xff]  ;;  %v9065_v14 = vcombine.low %v1555_v0, %v1557_v1 }
  0x78   : > { %v9079_v20 = vcombine.low %v1551_v9, %v1553_v12 }
  0x79   : > { %1311 = vmatpush2.bf16.msra.mxu0 %v7814_v33  ;;  %1394 = vmatpush2.bf16.msra.mxu1 %v7816_v34  ;;  %v1571_v33 = vld [vmem:[%s8954_s28 + $0x188] sm:$0xff] }
  0x7a   : > { %1312 = vmatprep.subr.bf16.mxu0 %v7807_v35  ;;  %1395 = vmatprep.subr.bf16.mxu1 %v7809_v36  ;;  %v1573_v34 = vld [vmem:[%s8954_s28 + $0x1a8] sm:$0xff]  ;;  %v8971_v35 = vcombine.high %v1570_v28, %v1572_v29  ;;  %v8973_v36 = vcombine.low %v1575_v22, %v1577_v24  ;;  %v1870_v24 = vld [vmem:[%s8954_s28 + $0x1d0] sm:$0xff]  ;;  %v1873_v28 = vld [vmem:[%s8954_s28 + $0x1f8] sm:$0xff] }
  0x7b   : > { %v8979_v40 = vcombine.high %v1571_v33, %v1573_v34 }
  0x7d   : > { %1313 = vmatpush2.bf16.msra.mxu0 %v7806_v42  ;;  %1396 = vmatpush2.bf16.msra.mxu1 %v7808_v43  ;;  %v1567_v42 = vld [vmem:[%s8954_s28 + $0x148] sm:$0xff] }
  0x7e   : > { %1314 = vmatprep.subr.bf16.mxu0 %v7799_v44  ;;  %1397 = vmatprep.subr.bf16.mxu1 %v7801_v45  ;;  %v1569_v43 = vld [vmem:[%s8954_s28 + $0x168] sm:$0xff]  ;;  %v8989_v44 = vcombine.high %v1566_v38, %v1568_v39  ;;  %v1562_v45 = vld [vmem:[%s8954_s28 + $0x100] sm:$0xff]  ;;  %v1866_v38 = vld [vmem:[%s8954_s28 + $0x190] sm:$0xff] }
  0x7f   : > { %v8998_v47 = vcombine.high %v1567_v42, %v1569_v43  ;;  %v9019_v57 = vcombine.low %v1562_v45, %v1564_v46  ;;  %v1868_v39 = vld [vmem:[%s8954_s28 + $0x1b0] sm:$0xff] }
  0x81   : > { %1315 = vmatpush2.bf16.msra.mxu0 %v7798_v51  ;;  %1398 = vmatpush2.bf16.msra.mxu1 %v7800_v56  ;;  %v1565_v51 = vld [vmem:[%s8954_s28 + $0x128] sm:$0xff]  ;;  %v9009_v56 = vcombine.low %v1567_v42, %v1569_v43  ;;  %v1867_v42 = vld [vmem:[%s8954_s28 + $0x198] sm:$0xff] }
  0x82   : > { %1316 = vmatprep.subr.bf16.mxu0 %v7791_v52  ;;  %1399 = vmatprep.subr.bf16.mxu1 %v7793_v53  ;;  %v1558_v52 = vld [vmem:[%s8954_s28 + $0xc0] sm:$0xff]  ;;  %v9015_v54 = vcombine.high %v1563_v50, %v1565_v51  ;;  %v1869_v43 = vld [vmem:[%s8954_s28 + $0x1b8] sm:$0xff] }
  0x83   : > { %v1560_v53 = vld [vmem:[%s8954_s28 + $0xe0] sm:$0xff] }
  0x85   : > { %1317 = vmatpush2.bf16.msra.mxu0 %v7790_v60  ;;  %1400 = vmatpush2.bf16.msra.mxu1 %v7792_v61  ;;  %v9025_v60 = vcombine.high %v1558_v52, %v1560_v53  ;;  %v9032_v61 = vcombine.high %v1559_v58, %v1561_v59  ;;  %v1865_v58 = vld [vmem:[%s8954_s28 + $0x178] sm:$0xff]  ;;  %v9133_v59 = vcombine.low %v1866_v38, %v1868_v39 }
  0x86   : > { %1318 = vmatprep.subr.bf16.mxu0 %v7783_v62  ;;  %1401 = vmatprep.subr.bf16.mxu1 %v7785_v63  ;;  %v1554_v62 = vld [vmem:[%s8954_s28 + $0x80] sm:$0xff] }
  0x87   : > { %v1556_v63 = vld [vmem:[%s8954_s28 + $0xa0] sm:$0xff] }
  0x88   : > { %v9045_v4 = vcombine.high %v1554_v62, %v1556_v63 }
  0x89   : > { %1319 = vmatpush2.bf16.msra.mxu0 %v7782_v5  ;;  %1402 = vmatpush2.bf16.msra.mxu1 %v7784_v6  ;;  %v1550_v5 = vld [vmem:[%s8954_s28 + $0x40] sm:$0xff] }
  0x8a   : > { %1320 = vmatprep.subr.bf16.mxu0 %v7775_v7  ;;  %1403 = vmatprep.subr.bf16.mxu1 %v7777_v8  ;;  %v1552_v6 = vld [vmem:[%s8954_s28 + $0x60] sm:$0xff]  ;;  %v9051_v7 = vcombine.high %v1555_v0, %v1557_v1  ;;  %v9055_v8 = vcombine.low %v1554_v62, %v1556_v63  ;;  %v9137_v62 = vcombine.low %v1867_v42, %v1869_v43  ;;  %v1858_v1 = vld [vmem:[%s8954_s28 + $0x110] sm:$0xff] }
  0x8b   : > { %v9061_v13 = vcombine.high %v1550_v5, %v1552_v6 }
  0x8d   : > { %1321 = vmatpush2.bf16.msra.mxu0 %v7774_v15  ;;  %1404 = vmatpush2.bf16.msra.mxu1 %v7776_v16  ;;  %v1546_v15 = vld [vmem:[%s8954_s28] sm:$0xff] }
  0x8e   : > { %1322 = vmatprep.subr.bf16.mxu0 %v7767_v17  ;;  %1405 = vmatprep.subr.bf16.mxu1 %v7769_v18  ;;  %v1548_v16 = vld [vmem:[%s8954_s28 + $0x20] sm:$0xff]  ;;  %v1549_v17 = vld [vmem:[%s8954_s28 + $0x28] sm:$0xff]  ;;  %v9075_v18 = vcombine.low %v1550_v5, %v1552_v6  ;;  %v1860_v5 = vld [vmem:[%s8954_s28 + $0x130] sm:$0xff] }
  0x8f   : > { %v9081_v21 = vcombine.high %v1546_v15, %v1548_v16  ;;  %v9095_v29 = vcombine.low %v1546_v15, %v1548_v16  ;;  %v1859_v6 = vld [vmem:[%s8954_s28 + $0x118] sm:$0xff]  ;;  %v9157_v16 = vcombine.high %v1858_v1, %v1860_v5 }
  0x91   : > { %1323 = vmatpush2.bf16.msra.mxu0 %v7766_v25  ;;  %1406 = vmatpush2.bf16.msra.mxu1 %v7768_v26  ;;  %v1872_v25 = vld [vmem:[%s8954_s28 + $0x1f0] sm:$0xff]  ;;  %v1871_v26 = vld [vmem:[%s8954_s28 + $0x1d8] sm:$0xff]  ;;  %11131 = vst [vmem:[#allocation3_spill] sm:$0xff] %v9157_v16 }
  0x92   : > { %1738 = vmatprep.subr.bf16.mxu0 %v8960_v27  ;;  %1779 = vmatprep.subr.bf16.mxu1 %v8964_v31 }
  0x94   : > { %1325 = vmatmul.mubr.bf16.vlgmr.msra.gmra.mxu0 %v8846_v10  ;;  %1408 = vmatmul.mubr.bf16.vlgmr.msra.gmra.mxu1 %v8846_v10  ;;  %v8993_v10 = vcombine.low %v1571_v33, %v1573_v34  ;;  %v9104_v34 = vcombine.high %v1871_v26, %v1873_v28 }
  0x95   : > { %1739 = vmatpush1.bf16.msra.mxu0 %v8966_v32  ;;  %1334 = vmatprep.mubr.bf16.mxu0 %v8853_v19 }
  0x96   : > { %1740 = vmatprep.subr.bf16.mxu0 %v8971_v35  ;;  %1417 = vmatprep.mubr.bf16.mxu1 %v8853_v19  ;;  %v9007_v19 = vcombine.high %v1562_v45, %v1564_v46  ;;  %v9118_v45 = vcombine.low %v1870_v24, %v1872_v25  ;;  %v9120_v46 = vcombine.low %v1871_v26, %v1873_v28  ;;  %v1857_v26 = vld [vmem:[%s8954_s28 + $0xf8] sm:$0xff] }
  0x97   : > { %1780 = vmatpush1.bf16.msra.mxu1 %v8973_v36  ;;  %v9167_v28 = vcombine.low %v1858_v1, %v1860_v5 }
  0x98   : > { %1781 = vmatprep.subr.bf16.mxu1 %v8979_v40 }
  0x99   : > { %1741 = vmatpush1.bf16.msra.mxu0 %v8983_v41  ;;  %11133 = vst [vmem:[#allocation5_spill] sm:$0xff] %v9167_v28 }
  0x9a   : > { %1742 = vmatprep.subr.bf16.mxu0 %v8989_v44 }
  0x9b   : > { %1782 = vmatpush1.bf16.msra.mxu1 %v8993_v10 }
  0x9c   : > { %1335 = vmatmul.mubr.bf16.gmra.mxu0 %v8865_v30  ;;  %1783 = vmatprep.subr.bf16.mxu1 %v8998_v47 }
  0x9d   : > { %1418 = vmatmul.mubr.bf16.gmra.mxu1 %v8865_v30  ;;  %1743 = vmatpush1.bf16.msra.mxu0 %v9001_v49  ;;  %v9029_v30 = vcombine.low %v1563_v50, %v1565_v51  ;;  %v9122_v50 = vcombine.high %v1866_v38, %v1868_v39  ;;  %v9124_v51 = vcombine.high %v1867_v42, %v1869_v43  ;;  %v1850_v43 = vld [vmem:[%s8954_s28 + $0x90] sm:$0xff] }
  0x9e   : > { %1344 = vmatprep.mubr.bf16.mxu0 %v8871_v37  ;;  %1427 = vmatprep.mubr.bf16.mxu1 %v8871_v37  ;;  %v9037_v37 = vcombine.low %v1558_v52, %v1560_v53  ;;  %v1864_v52 = vld [vmem:[%s8954_s28 + $0x170] sm:$0xff]  ;;  %v1863_v53 = vld [vmem:[%s8954_s28 + $0x158] sm:$0xff] }
  0x9f   : > { %1744 = vmatprep.subr.bf16.mxu0 %v9007_v19  ;;  %1784 = vmatpush1.bf16.msra.mxu1 %v9009_v56  ;;  %v9142_v0 = vcombine.high %v1863_v53, %v1865_v58  ;;  %v9155_v15 = vcombine.low %v1863_v53, %v1865_v58  ;;  %v1853_v53 = vld [vmem:[%s8954_s28 + $0xb8] sm:$0xff] }
  0xa0   : > { %1785 = vmatprep.subr.bf16.mxu1 %v9015_v54 }
  0xa1   : > { %1745 = vmatpush1.bf16.msra.mxu0 %v9019_v57 }
  0xa2   : > { %1746 = vmatprep.subr.bf16.mxu0 %v9025_v60 }
  0xa3   : > { %1786 = vmatpush1.bf16.msra.mxu1 %v9029_v30 }
  0xa4   : > { %1345 = vmatmul.mubr.bf16.gmra.mxu0 %v8883_v48  ;;  %1787 = vmatprep.subr.bf16.mxu1 %v9032_v61 }
  0xa5   : > { %1428 = vmatmul.mubr.bf16.gmra.mxu1 %v8883_v48  ;;  %1747 = vmatpush1.bf16.msra.mxu0 %v9037_v37  ;;  %v9068_v48 = vcombine.high %v1551_v9, %v1553_v12  ;;  %v1861_v9 = vld [vmem:[%s8954_s28 + $0x138] sm:$0xff] }
  0xa6   : > { %1354 = vmatprep.mubr.bf16.mxu0 %v8889_v55  ;;  %1437 = vmatprep.mubr.bf16.mxu1 %v8889_v55  ;;  %v1547_v55 = vld [vmem:[%s8954_s28 + $0x8] sm:$0xff]  ;;  %v9171_v38 = vcombine.low %v1859_v6, %v1861_v9 }
  0xa7   : > { %1788 = vmatpush1.bf16.msra.mxu1 %v9043_v2  ;;  %1748 = vmatprep.subr.bf16.mxu0 %v9045_v4  ;;  %v9085_v22 = vcombine.high %v1547_v55, %v1549_v17  ;;  %v9099_v33 = vcombine.low %v1547_v55, %v1549_v17  ;;  %v9160_v55 = vcombine.high %v1859_v6, %v1861_v9  ;;  %v1854_v17 = vld [vmem:[%s8954_s28 + $0xd0] sm:$0xff] }
  0xa8   : > { %1789 = vmatprep.subr.bf16.mxu1 %v9051_v7  ;;  %11134 = vst [vmem:[#allocation6_spill] sm:$0xff] %v9171_v38  ;;  %v1846_v9 = vld [vmem:[%s8954_s28 + $0x50] sm:$0xff] }
  0xa9   : > { %1749 = vmatpush1.bf16.msra.mxu0 %v9055_v8  ;;  %11132 = vst [vmem:[#allocation4_spill] sm:$0xff] %v9160_v55 }
  0xaa   : > { %1750 = vmatprep.subr.bf16.mxu0 %v9061_v13 }
  0xab   : > { %1790 = vmatpush1.bf16.msra.mxu1 %v9065_v14 }
  0xac   : > { %1355 = vmatmul.mubr.bf16.gmra.mxu0 %v8901_v3  ;;  %1791 = vmatprep.subr.bf16.mxu1 %v9068_v48 }
  0xad   : > { %1438 = vmatmul.mubr.bf16.gmra.mxu1 %v8901_v3  ;;  %1364 = vmatprep.mubr.bf16.mxu0 %v8907_v11  ;;  %v9101_v3 = vcombine.high %v1870_v24, %v1872_v25  ;;  %v1856_v24 = vld [vmem:[%s8954_s28 + $0xf0] sm:$0xff]  ;;  %v1855_v25 = vld [vmem:[%s8954_s28 + $0xd8] sm:$0xff] }
  0xae   : > { %1447 = vmatprep.mubr.bf16.mxu1 %v8907_v11  ;;  %1751 = vmatpush1.bf16.msra.mxu0 %v9075_v18  ;;  %v11072_v11 = vmov 0   ;;  %v9173_v39 = vcombine.high %v1854_v17, %v1856_v24  ;;  %v9176_v42 = vcombine.high %v1855_v25, %v1857_v26  ;;  %v9183_v58 = vcombine.low %v1854_v17, %v1856_v24  ;;  %v1847_v17 = vld [vmem:[%s8954_s28 + $0x58] sm:$0xff] }
  0xaf   : > { %1792 = vmatpush1.bf16.msra.mxu1 %v9079_v20  ;;  %1752 = vmatprep.subr.bf16.mxu0 %v9081_v21  ;;  %v9187_v1 = vcombine.low %v1855_v25, %v1857_v26  ;;  %v1849_v24 = vld [vmem:[%s8954_s28 + $0x78] sm:$0xff] }
  0xb0   : > { %1793 = vmatprep.subr.bf16.mxu1 %v9085_v22  ;;  %11135 = vst [vmem:[#allocation7_spill] sm:$0xff] %v9173_v39  ;;  %11136 = vst [vmem:[#allocation8_spill] sm:$0xff] %v9176_v42 }
  0xb2   : > { %1753 = vmatpush1.bf16.msra.mxu0 %v9095_v29 }
  0xb3   : > { %1794 = vmatpush1.bf16.msra.mxu1 %v9099_v33  ;;  %2034 = vmatprep.subr.bf16.mxu0 %v9101_v3 }
  0xb4   : > { %1365 = vmatmul.mubr.bf16.gmra.mxu0 %v8919_v23  ;;  %2075 = vmatprep.subr.bf16.mxu1 %v9104_v34 }
  0xb5   : > { %1448 = vmatmul.mubr.bf16.gmra.mxu1 %v8919_v23  ;;  %1770 = vmatprep.mubr.bf16.mxu0 %v11072_v11  ;;  %v1862_v23 = vld [vmem:[%s8954_s28 + $0x150] sm:$0xff] }
  0xb6   : > { %1811 = vmatprep.mubr.bf16.mxu1 %v11072_v11  ;;  %v9139_v63 = vcombine.high %v1862_v23, %v1864_v52  ;;  %v9151_v12 = vcombine.low %v1862_v23, %v1864_v52  ;;  %v1852_v23 = vld [vmem:[%s8954_s28 + $0xb0] sm:$0xff]  ;;  %v1851_v52 = vld [vmem:[%s8954_s28 + $0x98] sm:$0xff] }
  0xb7   : > { %v9189_v5 = vcombine.high %v1850_v43, %v1852_v23  ;;  %v9192_v6 = vcombine.high %v1851_v52, %v1853_v53  ;;  %v9203_v25 = vcombine.low %v1851_v52, %v1853_v53 }
  0xb9   : > { %11137 = vst [vmem:[#allocation9_spill] sm:$0xff] %v9192_v6 }
  0xbc   : > { %1771 = vmatmul.mubr.bf16.vlgmr.msra.gmra.mxu0 %v11072_v11 }
  0xbd   : > { %1812 = vmatmul.mubr.bf16.vlgmr.msra.gmra.mxu1 %v11072_v11  ;;  %2035 = vmatpush1.bf16.msra.mxu0 %v9118_v45 }
  0xbe   : > { %2076 = vmatpush1.bf16.msra.mxu1 %v9120_v46  ;;  %2036 = vmatprep.subr.bf16.mxu0 %v9122_v50 }
  0xbf   : > { %2077 = vmatprep.subr.bf16.mxu1 %v9124_v51  ;;  %2066 = vmatprep.mubr.bf16.mxu0 %v11072_v11 }
  0xc0   : > { %2107 = vmatprep.mubr.bf16.mxu1 %v11072_v11  ;;  %v1848_v11 = vld [vmem:[%s8954_s28 + $0x70] sm:$0xff] }
  0xc1   : > { %2037 = vmatpush1.bf16.msra.mxu0 %v9133_v59  ;;  %v9205_v26 = vcombine.high %v1846_v9, %v1848_v11 }
  0xc2   : > { %2078 = vmatpush1.bf16.msra.mxu1 %v9137_v62  ;;  %2038 = vmatprep.subr.bf16.mxu0 %v9139_v63 }
  0xc3   : > { %2079 = vmatprep.subr.bf16.mxu1 %v9142_v0 }
  0xc5   : > { %2039 = vmatpush1.bf16.msra.mxu0 %v9151_v12 }
  0xc6   : > { %2080 = vmatpush1.bf16.msra.mxu1 %v9155_v15  ;;  %2040 = vmatprep.subr.bf16.mxu0 %v9157_v16  ;;  %v1845_v16 = vld [vmem:[%s8954_s28 + $0x38] sm:$0xff] }
  0xc7   : > { %2081 = vmatprep.subr.bf16.mxu1 %v9160_v55  ;;  %v1843_v55 = vld [vmem:[%s8954_s28 + $0x18] sm:$0xff] }
  0xc8   : > { %v9224_v53 = vcombine.high %v1843_v55, %v1845_v16 }
  0xc9   : > { %2041 = vmatpush1.bf16.msra.mxu0 %v9167_v28  ;;  %v1844_v28 = vld [vmem:[%s8954_s28 + $0x30] sm:$0xff] }
  0xca   : > { %2082 = vmatpush1.bf16.msra.mxu1 %v9171_v38  ;;  %2042 = vmatprep.subr.bf16.mxu0 %v9173_v39  ;;  %v9199_v38 = vcombine.low %v1850_v43, %v1852_v23  ;;  %v1842_v39 = vld [vmem:[%s8954_s28 + $0x10] sm:$0xff]  ;;  %v9215_v43 = vcombine.low %v1846_v9, %v1848_v11  ;;  %v9219_v23 = vcombine.low %v1847_v17, %v1849_v24  ;;  %v11138_v9 = vmov 0  }
  0xcb   : > { %2083 = vmatprep.subr.bf16.mxu1 %v9176_v42  ;;  %v9208_v42 = vcombine.high %v1847_v17, %v1849_v24  ;;  %v9221_v52 = vcombine.high %v1842_v39, %v1844_v28  ;;  %v9231_v11 = vcombine.low %v1843_v55, %v1845_v16 }
  0xcd   : > { %2043 = vmatpush1.bf16.msra.mxu0 %v9183_v58 }
  0xce   : > { %2084 = vmatpush1.bf16.msra.mxu1 %v9187_v1  ;;  %2044 = vmatprep.subr.bf16.mxu0 %v9189_v5 }
  0xcf   : > { %2085 = vmatprep.subr.bf16.mxu1 %v9192_v6  ;;  %v9227_v6 = vcombine.low %v1842_v39, %v1844_v28 }
  0xd1   : > { %2045 = vmatpush1.bf16.msra.mxu0 %v9199_v38 }
  0xd2   : > { %2086 = vmatpush1.bf16.msra.mxu1 %v9203_v25  ;;  %2046 = vmatprep.subr.bf16.mxu0 %v9205_v26 }
  0xd3   : > { %2087 = vmatprep.subr.bf16.mxu1 %v9208_v42 }
  0xd5   : > { %2047 = vmatpush1.bf16.msra.mxu0 %v9215_v43 }
  0xd6   : > { %2088 = vmatpush1.bf16.msra.mxu1 %v9219_v23  ;;  %2048 = vmatprep.subr.bf16.mxu0 %v9221_v52 }
  0xd7   : > { %2089 = vmatprep.subr.bf16.mxu1 %v9224_v53 }
  0xd9   : > { %2049 = vmatpush1.bf16.msra.mxu0 %v9227_v6 }
  0xda   : > { %2090 = vmatpush1.bf16.msra.mxu1 %v9231_v11  ;;  %2342 = vmatprep.subr.bf16.mxu0 %v8960_v27  ;;  %v396_v27 = vlaneseq }
  0xdb   : > { %2383 = vmatprep.subr.bf16.mxu1 %v8964_v31 }
  0xdc   : > { %2067 = vmatmul.mubr.bf16.vlgmr.msra.gmra.mxu0 %v11138_v9  ;;  %v9275_v31 = vshrl.u32 %v396_v27, 7 }
  0xdd   : > { %2108 = vmatmul.mubr.bf16.vlgmr.msra.gmra.mxu1 %v11138_v9  ;;  %2343 = vmatpush1.bf16.msra.mxu0 %v8966_v32 }
  0xde   : > { %2384 = vmatpush1.bf16.msra.mxu1 %v8973_v36  ;;  %2344 = vmatprep.subr.bf16.mxu0 %v8971_v35  ;;  %v406_v32 = vsub.s32 2, %v9275_v31  ;;  %v398_v35 = vsub.s32 0, %v9275_v31  ;;  %v9282_v36 = vld [vmem:[%s244_s6] sm:$0xff] }
  0xdf   : > { %2385 = vmatprep.subr.bf16.mxu1 %v8979_v40  ;;  %2374 = vmatprep.mubr.bf16.mxu0 %v11138_v9 }
  0xe0   : > { %2415 = vmatprep.mubr.bf16.mxu1 %v11138_v9 }
  0xe1   : > { %2345 = vmatpush1.bf16.msra.mxu0 %v8983_v41 }
  0xe2   : > { %2386 = vmatpush1.bf16.msra.mxu1 %v8993_v10  ;;  %2346 = vmatprep.subr.bf16.mxu0 %v8989_v44  ;;  %v9291_v10 = vrot.slane %v9282_v36, %v406_v32 }
  0xe3   : > { %2387 = vmatprep.subr.bf16.mxu1 %v8998_v47  ;;  %v9294_v47 = vrot.slane %v9282_v36, %v398_v35 }
  0xe5   : > { %2347 = vmatpush1.bf16.msra.mxu0 %v9001_v49 }
  0xe6   : > { %2388 = vmatpush1.bf16.msra.mxu1 %v9009_v56  ;;  %2348 = vmatprep.subr.bf16.mxu0 %v9007_v19  ;;  %v402_v56 = vsub.s32 1, %v9275_v31 }
  0xe7   : > { %2389 = vmatprep.subr.bf16.mxu1 %v9015_v54 }
  0xe9   : > { %2349 = vmatpush1.bf16.msra.mxu0 %v9019_v57 }
  0xea   : > { %2390 = vmatpush1.bf16.msra.mxu1 %v9029_v30  ;;  %2350 = vmatprep.subr.bf16.mxu0 %v9025_v60  ;;  %v410_v60 = vsub.s32 3, %v9275_v31 }
  0xeb   : > { %2391 = vmatprep.subr.bf16.mxu1 %v9032_v61 }
  0xed   : > { %2351 = vmatpush1.bf16.msra.mxu0 %v9037_v37 }
  0xee   : > { %2392 = vmatpush1.bf16.msra.mxu1 %v9043_v2  ;;  %2352 = vmatprep.subr.bf16.mxu0 %v9045_v4  ;;  %v9311_v4 = vrot.slane %v9282_v36, %v402_v56 }
  0xef   : > { %2393 = vmatprep.subr.bf16.mxu1 %v9051_v7 }
  0xf0   : > { %11139 = vst [vmem:[#allocation10_spill] sm:$0xff] %v9311_v4 }
  0xf1   : > { %2353 = vmatpush1.bf16.msra.mxu0 %v9055_v8 }
  0xf2   : > { %2394 = vmatpush1.bf16.msra.mxu1 %v9065_v14  ;;  %2354 = vmatprep.subr.bf16.mxu0 %v9061_v13  ;;  %v9317_v13 = vrot.slane %v9282_v36, %v410_v60 }
  0xf3   : > { %2395 = vmatprep.subr.bf16.mxu1 %v9068_v48 }
  0xf4   : > { %11141 = vst [vmem:[#allocation12_spill] sm:$0xff] %v9317_v13 }
  0xf5   : > { %2355 = vmatpush1.bf16.msra.mxu0 %v9075_v18 }
  0xf6   : > { %2396 = vmatpush1.bf16.msra.mxu1 %v9079_v20  ;;  %2356 = vmatprep.subr.bf16.mxu0 %v9081_v21 }
  0xf7   : > { %2397 = vmatprep.subr.bf16.mxu1 %v9085_v22 }
  0xf9   : > { %2357 = vmatpush1.bf16.msra.mxu0 %v9095_v29 }
  0xfa   : > { %2398 = vmatpush1.bf16.msra.mxu1 %v9099_v33  ;;  %2639 = vmatprep.subr.bf16.mxu0 %v9101_v3 }
  0xfb   : > { %2680 = vmatprep.subr.bf16.mxu1 %v9104_v34 }
 0x114   : > { %v9284_v40 = vpop.f32.mrf.mxu0  ;;  %v9286_v41 = vpop.f32.mrf.mxu1 }
 0x116   : > { %v9288_v44 = vpop.f32.mrf.mxu0  ;;  %v9296_v49 = vpop.f32.mrf.mxu1 }
 0x118   : > { %v1164_v19 = vpop.f32.mrf.mxu0  ;;  %v1247_v57 = vpop.f32.mrf.mxu1 }
 0x119   : > { %v9300_v54 = vadd.f32 %v1164_v19, %v9294_v47  ;;  %v9306_v61 = vadd.f32 %v1247_v57, %v9291_v10 }
 0x11a   : > { %v9303_v30 = vpop.f32.mrf.mxu0  ;;  %v9308_v37 = vpop.f32.mrf.mxu1 }
 0x11c   : > { %v1170_v2 = vpop.f32.mrf.mxu0  ;;  %v1253_v8 = vpop.f32.mrf.mxu1 }
 0x11d   : > { %v9314_v7 = vadd.f32 %v1170_v2, %v9294_v47  ;;  %v9320_v48 = vadd.f32 %v1253_v8, %v9291_v10 }
 0x11e   : > { %v1172_v14 = vpop.f32.mrf.mxu0  ;;  %v1255_v20 = vpop.f32.mrf.mxu1 }
 0x11f   : > { %11140 = vst [vmem:[#allocation11_spill] sm:$0xff] %v9314_v7  ;;  %11142 = vst [vmem:[#allocation13_spill] sm:$0xff] %v9320_v48  ;;  %v9323_v18 = vadd.f32 %v1172_v14, %v9311_v4  ;;  %v9326_v22 = vadd.f32 %v1255_v20, %v9317_v13 }
 0x120   : > { %v1174_v21 = vpop.f32.mrf.mxu0  ;;  %v1257_v33 = vpop.f32.mrf.mxu1 }
 0x121   : > { %11143 = vst [vmem:[#allocation14_spill] sm:$0xff] %v9323_v18  ;;  %11144 = vst [vmem:[#allocation15_spill] sm:$0xff] %v9326_v22  ;;  %v9329_v29 = vadd.f32 %v1174_v21, %v9294_v47  ;;  %v9334_v34 = vadd.f32 %v1257_v33, %v9291_v10 }
 0x122   : > { %v9331_v3 = vpop.f32.mrf.mxu0  ;;  %v9336_v16 = vpop.f32.mrf.mxu1 }
 0x123   : > { %11145 = vst [vmem:[#allocation16_spill] sm:$0xff] %v9329_v29  ;;  %11146 = vst [vmem:[#allocation17_spill] sm:$0xff] %v9331_v3 }
 0x124   : > { %11147 = vst [vmem:[#allocation18_spill] sm:$0xff] %v9334_v34  ;;  %11148 = vst [vmem:[#allocation19_spill] sm:$0xff] %v9336_v16  ;;  %v1180_v55 = vpop.f32.mrf.mxu0  ;;  %v1263_v39 = vpop.f32.mrf.mxu1 }
 0x125   : > { %v9339_v28 = vadd.f32 %v1180_v55, %v9294_v47  ;;  %v9342_v24 = vadd.f32 %v1263_v39, %v9291_v10 }
 0x126   : > { %v1182_v17 = vpop.f32.mrf.mxu0  ;;  %v1265_v32 = vpop.f32.mrf.mxu1 }
 0x127   : > { %11149 = vst [vmem:[#allocation20_spill] sm:$0xff] %v9339_v28  ;;  %11150 = vst [vmem:[#allocation21_spill] sm:$0xff] %v9342_v24  ;;  %v9345_v27 = vadd.f32 %v1182_v17, %v9311_v4  ;;  %v9348_v19 = vadd.f32 %v1265_v32, %v9317_v13 }
 0x128   : > { %v1184_v35 = vpop.f32.mrf.mxu0  ;;  %v1267_v57 = vpop.f32.mrf.mxu1 }
 0x129   : > { %11151 = vst [vmem:[#allocation22_spill] sm:$0xff] %v9345_v27  ;;  %11152 = vst [vmem:[#allocation23_spill] sm:$0xff] %v9348_v19  ;;  %v9351_v56 = vadd.f32 %v1184_v35, %v9294_v47  ;;  %v9354_v2 = vadd.f32 %v1267_v57, %v9291_v10 }
 0x12a   : > { %v1186_v60 = vpop.f32.mrf.mxu0  ;;  %v1269_v14 = vpop.f32.mrf.mxu1 }
 0x12b   : > { %11153 = vst [vmem:[#allocation24_spill] sm:$0xff] %v9351_v56  ;;  %11154 = vst [vmem:[#allocation25_spill] sm:$0xff] %v9354_v2  ;;  %v9357_v8 = vadd.f32 %v1186_v60, %v9311_v4  ;;  %v9360_v21 = vadd.f32 %v1269_v14, %v9317_v13 }
 0x12c   : > { %v1190_v20 = vpop.f32.mrf.mxu0  ;;  %v1273_v55 = vpop.f32.mrf.mxu1 }
 0x12d   : > { %11155 = vst [vmem:[#allocation26_spill] sm:$0xff] %v9357_v8  ;;  %11156 = vst [vmem:[#allocation27_spill] sm:$0xff] %v9360_v21  ;;  %v9363_v33 = vadd.f32 %v1190_v20, %v9294_v47  ;;  %v9366_v17 = vadd.f32 %v1273_v55, %v9291_v10 }
 0x12e   : > { %v1192_v39 = vpop.f32.mrf.mxu0  ;;  %v1275_v35 = vpop.f32.mrf.mxu1 }
 0x12f   : > { %11157 = vst [vmem:[#allocation28_spill] sm:$0xff] %v9363_v33  ;;  %11158 = vst [vmem:[#allocation29_spill] sm:$0xff] %v9366_v17  ;;  %v9369_v32 = vadd.f32 %v1192_v39, %v9311_v4  ;;  %v9372_v60 = vadd.f32 %v1275_v35, %v9317_v13 }
 0x130   : > { %v1194_v57 = vpop.f32.mrf.mxu0  ;;  %v1277_v14 = vpop.f32.mrf.mxu1 }
 0x131   : > { %11159 = vst [vmem:[#allocation30_spill] sm:$0xff] %v9369_v32  ;;  %11160 = vst [vmem:[#allocation31_spill] sm:$0xff] %v9372_v60  ;;  %v9375_v2 = vadd.f32 %v1194_v57, %v9294_v47  ;;  %v9378_v20 = vadd.f32 %v1277_v14, %v9291_v10 }
 0x132   : > { %v1196_v21 = vpop.f32.mrf.mxu0  ;;  %v1279_v55 = vpop.f32.mrf.mxu1 }
 0x133   : > { %11161 = vst [vmem:[#allocation32_spill] sm:$0xff] %v9375_v2  ;;  %11162 = vst [vmem:[#allocation33_spill] sm:$0xff] %v9378_v20  ;;  %v9381_v33 = vadd.f32 %v1196_v21, %v9311_v4  ;;  %v9384_v39 = vadd.f32 %v1279_v55, %v9317_v13 }
 0x134   : > { %v1200_v17 = vpop.f32.mrf.mxu0  ;;  %v1283_v35 = vpop.f32.mrf.mxu1 }
 0x135   : > { %11163 = vst [vmem:[#allocation34_spill] sm:$0xff] %v9381_v33  ;;  %11164 = vst [vmem:[#allocation35_spill] sm:$0xff] %v9384_v39  ;;  %v9387_v32 = vadd.f32 %v1200_v17, %v9294_v47  ;;  %v9390_v57 = vadd.f32 %v1283_v35, %v9291_v10 }
 0x136   : > { %v1202_v60 = vpop.f32.mrf.mxu0  ;;  %v1285_v14 = vpop.f32.mrf.mxu1 }
 0x137   : > { %11165 = vst [vmem:[#allocation36_spill] sm:$0xff] %v9387_v32  ;;  %11166 = vst [vmem:[#allocation37_spill] sm:$0xff] %v9390_v57  ;;  %v9393_v2 = vadd.f32 %v1202_v60, %v9311_v4  ;;  %v9396_v21 = vadd.f32 %v1285_v14, %v9317_v13  ;;  %v414_v57 = vsub.s32 4, %v9275_v31  ;;  %v422_v14 = vsub.s32 6, %v9275_v31 }
 0x138   : > { %v1204_v20 = vpop.f32.mrf.mxu0  ;;  %v1287_v55 = vpop.f32.mrf.mxu1 }
 0x139   : > { %11167 = vst [vmem:[#allocation38_spill] sm:$0xff] %v9393_v2  ;;  %11168 = vst [vmem:[#allocation39_spill] sm:$0xff] %v9396_v21  ;;  %v9399_v33 = vadd.f32 %v1204_v20, %v9294_v47  ;;  %v9402_v17 = vadd.f32 %v1287_v55, %v9291_v10  ;;  %v418_v21 = vsub.s32 5, %v9275_v31  ;;  %v426_v20 = vsub.s32 7, %v9275_v31 }
 0x13a   : > { %v1206_v39 = vpop.f32.mrf.mxu0  ;;  %v1289_v35 = vpop.f32.mrf.mxu1  ;;  %v9418_v55 = vrot.slane %v9282_v36, %v422_v14 }
 0x13b   : > { %11169 = vst [vmem:[#allocation40_spill] sm:$0xff] %v9399_v33  ;;  %11170 = vst [vmem:[#allocation41_spill] sm:$0xff] %v9402_v17  ;;  %v9405_v32 = vadd.f32 %v1206_v39, %v9311_v4  ;;  %v9408_v60 = vadd.f32 %v1289_v35, %v9317_v13  ;;  %v9415_v33 = vrot.slane %v9282_v36, %v414_v57 }
 0x13c   : > { %v9421_v39 = vrot.slane %v9282_v36, %v418_v21  ;;  %v9424_v35 = vrot.slane %v9282_v36, %v426_v20 }
 0x13d   : > { %11171 = vst [vmem:[#allocation42_spill] sm:$0xff] %v9405_v32  ;;  %11172 = vst [vmem:[#allocation43_spill] sm:$0xff] %v9408_v60 }
 0x154   : > { %v1326_v17 = vpop.f32.mrf.mxu0  ;;  %v1409_v32 = vpop.f32.mrf.mxu1 }
 0x155   : > { %v9427_v60 = vadd.f32 %v1326_v17, %v9415_v33  ;;  %v9430_v2 = vadd.f32 %v1409_v32, %v9418_v55 }
 0x156   : > { %v1328_v31 = vpop.f32.mrf.mxu0  ;;  %v1411_v14 = vpop.f32.mrf.mxu1 }
 0x157   : > { %11173 = vst [vmem:[#allocation44_spill] sm:$0xff] %v9427_v60  ;;  %11174 = vst [vmem:[#allocation45_spill] sm:$0xff] %v9430_v2  ;;  %v9433_v57 = vadd.f32 %v1328_v31, %v9421_v39  ;;  %v9436_v8 = vadd.f32 %v1411_v14, %v9424_v35 }
 0x158   : > { %v1330_v21 = vpop.f32.mrf.mxu0  ;;  %v1413_v36 = vpop.f32.mrf.mxu1 }
 0x159   : > { %11175 = vst [vmem:[#allocation46_spill] sm:$0xff] %v9433_v57  ;;  %11176 = vst [vmem:[#allocation47_spill] sm:$0xff] %v9436_v8  ;;  %v9439_v56 = vadd.f32 %v1330_v21, %v9415_v33  ;;  %v9442_v17 = vadd.f32 %v1413_v36, %v9418_v55 }
 0x15a   : > { %v1332_v20 = vpop.f32.mrf.mxu0  ;;  %v1415_v2 = vpop.f32.mrf.mxu1 }
 0x15b   : > { %11177 = vst [vmem:[#allocation48_spill] sm:$0xff] %v9439_v56  ;;  %11178 = vst [vmem:[#allocation49_spill] sm:$0xff] %v9442_v17  ;;  %v9445_v32 = vadd.f32 %v1332_v20, %v9421_v39  ;;  %v9448_v31 = vadd.f32 %v1415_v2, %v9424_v35 }
 0x15c   : > { %v1336_v57 = vpop.f32.mrf.mxu0 }
 0x15d   : > { %11179 = vst [vmem:[#allocation50_spill] sm:$0xff] %v9445_v32  ;;  %11180 = vst [vmem:[#allocation51_spill] sm:$0xff] %v9448_v31  ;;  %v9451_v14 = vadd.f32 %v1336_v57, %v9415_v33  ;;  %v1419_v8 = vpop.f32.mrf.mxu1 }
 0x15e   : > { %v9454_v21 = vadd.f32 %v1419_v8, %v9418_v55  ;;  %v1338_v60 = vpop.f32.mrf.mxu0 }
 0x15f   : > { %11181 = vst [vmem:[#allocation52_spill] sm:$0xff] %v9451_v14  ;;  %v9457_v36 = vadd.f32 %v1338_v60, %v9421_v39  ;;  %v1421_v17 = vpop.f32.mrf.mxu1 }
 0x160   : > { %11182 = vst [vmem:[#allocation53_spill] sm:$0xff] %v9454_v21  ;;  %v9460_v20 = vadd.f32 %v1421_v17, %v9424_v35  ;;  %v1340_v32 = vpop.f32.mrf.mxu0 }
 0x161   : > { %11183 = vst [vmem:[#allocation54_spill] sm:$0xff] %v9457_v36  ;;  %v9463_v2 = vadd.f32 %v1340_v32, %v9415_v33  ;;  %v1423_v31 = vpop.f32.mrf.mxu1 }
 0x162   : > { %11184 = vst [vmem:[#allocation55_spill] sm:$0xff] %v9460_v20  ;;  %v9466_v57 = vadd.f32 %v1423_v31, %v9418_v55  ;;  %v1342_v56 = vpop.f32.mrf.mxu0 }
 0x163   : > { %11185 = vst [vmem:[#allocation56_spill] sm:$0xff] %v9463_v2  ;;  %v9469_v8 = vadd.f32 %v1342_v56, %v9421_v39  ;;  %v1425_v21 = vpop.f32.mrf.mxu1 }
 0x164   : > { %11186 = vst [vmem:[#allocation57_spill] sm:$0xff] %v9466_v57  ;;  %v9472_v60 = vadd.f32 %v1425_v21, %v9424_v35  ;;  %v1346_v36 = vpop.f32.mrf.mxu0 }
 0x165   : > { %11187 = vst [vmem:[#allocation58_spill] sm:$0xff] %v9469_v8  ;;  %v9475_v17 = vadd.f32 %v1346_v36, %v9415_v33  ;;  %v1429_v20 = vpop.f32.mrf.mxu1 }
 0x166   : > { %11188 = vst [vmem:[#allocation59_spill] sm:$0xff] %v9472_v60  ;;  %v9478_v32 = vadd.f32 %v1429_v20, %v9418_v55  ;;  %v1348_v14 = vpop.f32.mrf.mxu0 }
 0x167   : > { %11189 = vst [vmem:[#allocation60_spill] sm:$0xff] %v9475_v17  ;;  %v9481_v31 = vadd.f32 %v1348_v14, %v9421_v39  ;;  %v1431_v57 = vpop.f32.mrf.mxu1 }
 0x168   : > { %11190 = vst [vmem:[#allocation61_spill] sm:$0xff] %v9478_v32  ;;  %v9484_v56 = vadd.f32 %v1431_v57, %v9424_v35  ;;  %v1350_v8 = vpop.f32.mrf.mxu0 }
 0x169   : > { %11191 = vst [vmem:[#allocation62_spill] sm:$0xff] %v9481_v31  ;;  %v9487_v21 = vadd.f32 %v1350_v8, %v9415_v33  ;;  %v1433_v60 = vpop.f32.mrf.mxu1 }
 0x16a   : > { %11192 = vst [vmem:[#allocation63_spill] sm:$0xff] %v9484_v56  ;;  %v9490_v36 = vadd.f32 %v1433_v60, %v9418_v55  ;;  %v1352_v2 = vpop.f32.mrf.mxu0 }
 0x16b   : > { %11193 = vst [vmem:[#allocation64_spill] sm:$0xff] %v9487_v21  ;;  %v9493_v20 = vadd.f32 %v1352_v2, %v9421_v39  ;;  %v1435_v32 = vpop.f32.mrf.mxu1 }
 0x16c   : > { %11194 = vst [vmem:[#allocation65_spill] sm:$0xff] %v9490_v36  ;;  %v9496_v14 = vadd.f32 %v1435_v32, %v9424_v35  ;;  %v1356_v31 = vpop.f32.mrf.mxu0 }
 0x16d   : > { %11195 = vst [vmem:[#allocation66_spill] sm:$0xff] %v9493_v20  ;;  %v9499_v57 = vadd.f32 %v1356_v31, %v9415_v33  ;;  %v1439_v56 = vpop.f32.mrf.mxu1 }
 0x16e   : > { %11196 = vst [vmem:[#allocation67_spill] sm:$0xff] %v9496_v14  ;;  %v9502_v8 = vadd.f32 %v1439_v56, %v9418_v55  ;;  %v1358_v17 = vpop.f32.mrf.mxu0 }
 0x16f   : > { %11197 = vst [vmem:[#allocation68_spill] sm:$0xff] %v9499_v57  ;;  %v9505_v60 = vadd.f32 %v1358_v17, %v9421_v39  ;;  %v1441_v36 = vpop.f32.mrf.mxu1  ;;  %v1161_v57 = vadd.f32 %v9284_v40, %v9294_v47 }
 0x170   : > { %11198 = vst [vmem:[#allocation69_spill] sm:$0xff] %v9502_v8  ;;  %v9508_v2 = vadd.f32 %v1441_v36, %v9424_v35  ;;  %v1360_v20 = vpop.f32.mrf.mxu0 }
 0x171   : > { %11199 = vst [vmem:[#allocation70_spill] sm:$0xff] %v9505_v60  ;;  %v9511_v32 = vadd.f32 %v1360_v20, %v9415_v33  ;;  %v1443_v14 = vpop.f32.mrf.mxu1 }
 0x172   : > { %11200 = vst [vmem:[#allocation71_spill] sm:$0xff] %v9508_v2  ;;  %v9514_v31 = vadd.f32 %v1443_v14, %v9418_v55  ;;  %v1362_v21 = vpop.f32.mrf.mxu0 }
 0x173   : > { %11201 = vst [vmem:[#allocation72_spill] sm:$0xff] %v9511_v32  ;;  %v9517_v56 = vadd.f32 %v1362_v21, %v9421_v39  ;;  %v1445_v19 = vpop.f32.mrf.mxu1 }
 0x174   : > { %11202 = vst [vmem:[#allocation73_spill] sm:$0xff] %v9514_v31  ;;  %v9520_v17 = vadd.f32 %v1445_v19, %v9424_v35  ;;  %v1366_v24 = vpop.f32.mrf.mxu0 }
 0x175   : > { %11203 = vst [vmem:[#allocation74_spill] sm:$0xff] %v9517_v56  ;;  %v9523_v36 = vadd.f32 %v1366_v24, %v9415_v33  ;;  %v1449_v27 = vpop.f32.mrf.mxu1 }
 0x176   : > { %11204 = vst [vmem:[#allocation75_spill] sm:$0xff] %v9520_v17  ;;  %v9526_v20 = vadd.f32 %v1449_v27, %v9418_v55  ;;  %v1368_v28 = vpop.f32.mrf.mxu0  ;;  %v1163_v27 = vadd.f32 %v9288_v44, %v9311_v4  ;;  %v1246_v44 = vadd.f32 %v9296_v49, %v9317_v13 }
 0x177   : > { %v9529_v14 = vadd.f32 %v1368_v28, %v9421_v39  ;;  %v1451_v2 = vpop.f32.mrf.mxu1  ;;  %v1244_v28 = vadd.f32 %v9286_v41, %v9291_v10 }
 0x178   : > { %v9532_v21 = vadd.f32 %v1451_v2, %v9424_v35  ;;  %v1370_v8 = vpop.f32.mrf.mxu0 }
 0x179   : > { %v1453_v60 = vpop.f32.mrf.mxu1 }
 0x17a   : > { %v1372_v19 = vpop.f32.mrf.mxu0 }
 0x17b   : > { %v1455_v24 = vpop.f32.mrf.mxu1 }
 0x17c   : > { %v1772_v16 = vpop.f32.mrf.mxu0 }
 0x17d   : > { %v1820_v34 = vadd.f32 %v1772_v16, %v1161_v57  ;;  %v1813_v29 = vpop.f32.mrf.mxu1 }
 0x17e   : > { %v1774_v3 = vpop.f32.mrf.mxu0  ;;  %v1822_v32 = vadd.f32 %v1813_v29, %v1244_v28 }
 0x17f   : > { %v1824_v17 = vmul.f32 0.5, %v1820_v34  ;;  %v1821_v2 = vadd.f32 %v1774_v3, %v1163_v27  ;;  %v1815_v31 = vpop.f32.mrf.mxu1 }
 0x180   : > { %v1776_v56 = vpop.f32.mrf.mxu0  ;;  %v1823_v16 = vadd.f32 %v1815_v31, %v1246_v44  ;;  %v1454_v44 = vadd.f32 %v1453_v60, %v9418_v55 }
 0x181   : > { %8514 = vtanh.f32 %v1824_v17  ;;  %v1825_v22 = vmul.f32 0.5, %v1821_v2  ;;  %v1817_v48 = vpop.f32.mrf.mxu1 }
 0x182   : > { %v1777_v40 = vpop.f32.mrf.mxu0  ;;  %v1833_v57 = vmul.f32 0.5, %v1823_v16 }
 0x183   : > { %8516 = vtanh.f32 %v1825_v22  ;;  %v1818_v47 = vpop.f32.mrf.mxu1  ;;  %v1371_v22 = vadd.f32 %v1370_v8, %v9415_v33 }
 0x184   : > { %8518 = vtanh.f32 %v1822_v32  ;;  %v1373_v32 = vadd.f32 %v1372_v19, %v9421_v39 }
 0x185   : > { %8520 = vtanh.f32 %v1833_v57 }
 0x18e   : > { %v8515_v18 = vpop.eup %8514 }
 0x18f   : > { %v1828_v7 = vadd.f32 1.0, %v8515_v18 }
 0x190   : > { %v8517_v41 = vpop.eup %8516 }
 0x191   : > { %v1830_v10 = vmul.f32 0.5, %v1828_v7  ;;  %v1829_v3 = vadd.f32 1.0, %v8517_v41  ;;  %v8519_v34 = vpop.eup %8518 }
 0x192   : > { %v8521_v27 = vpop.eup %8520 }
 0x193   : > { %v1831_v56 = vmul.f32 0.5, %v1829_v3  ;;  %v1838_v29 = vmul.f32 %v8519_v34, %v1830_v10  ;;  %v1835_v16 = vadd.f32 1.0, %v8521_v27  ;;  %v1456_v3 = vadd.f32 %v1455_v24, %v9424_v35  ;;  %v2782_v27 = vld [vmem:[%s8954_s28 + $0x1a0] sm:$0xff] }
 0x195   : > { %v1837_v17 = vmul.f32 0.0, %v1831_v56  ;;  %v1836_v39 = vmul.f32 0.5, %v1835_v16  ;;  %v2776_v16 = vld [vmem:[%s8954_s28 + $0x140] sm:$0xff] }
 0x197   : > { %v9542_v48 = vadd.f32 %v1838_v29, %v1837_v17 }
 0x199   : > { %8522 = vtanh.f32 %v9542_v48 }
 0x19c   : > { %v2068_v49 = vpop.f32.mrf.mxu0 }
 0x19d   : > { %v2116_v31 = vadd.f32 %v2068_v49, %v1371_v22  ;;  %v2109_v18 = vpop.f32.mrf.mxu1  ;;  %v11205_v49 = vld [vmem:[#allocation3_spill] sm:$0xff] }
 0x19e   : > { %v2070_v7 = vpop.f32.mrf.mxu0  ;;  %v2118_v8 = vadd.f32 %v2109_v18, %v1454_v44 }
 0x19f   : > { %v2120_v28 = vmul.f32 0.5, %v2116_v31  ;;  %v2117_v2 = vadd.f32 %v2070_v7, %v1373_v32  ;;  %v2111_v40 = vpop.f32.mrf.mxu1  ;;  %v11207_v32 = vld [vmem:[#allocation5_spill] sm:$0xff]  ;;  %v11208_v31 = vld [vmem:[#allocation6_spill] sm:$0xff]  ;;  %v2781_v7 = vld [vmem:[%s8954_s28 + $0x188] sm:$0xff] }
 0x1a0   : > { %v2072_v47 = vpop.f32.mrf.mxu0  ;;  %v2119_v60 = vadd.f32 %v2111_v40, %v1456_v3  ;;  %v2772_v3 = vld [vmem:[%s8954_s28 + $0x100] sm:$0xff] }
 0x1a1   : > { %8524 = vtanh.f32 %v2120_v28  ;;  %v2121_v57 = vmul.f32 0.5, %v2117_v2  ;;  %v2113_v41 = vpop.f32.mrf.mxu1  ;;  %v2783_v2 = vld [vmem:[%s8954_s28 + $0x1a8] sm:$0xff] }
 0x1a2   : > { %v2073_v33 = vpop.f32.mrf.mxu0  ;;  %v2129_v56 = vmul.f32 0.5, %v2119_v60  ;;  %v9618_v47 = vcombine.low %v2781_v7, %v2783_v2  ;;  %v9620_v44 = vcombine.high %v2781_v7, %v2783_v2  ;;  %v2777_v41 = vld [vmem:[%s8954_s28 + $0x148] sm:$0xff]  ;;  %v2758_v7 = vld [vmem:[%s8954_s28 + $0x20] sm:$0xff] }
 0x1a3   : > { %8526 = vtanh.f32 %v2121_v57  ;;  %v2114_v10 = vpop.f32.mrf.mxu1  ;;  %v2778_v57 = vld [vmem:[%s8954_s28 + $0x160] sm:$0xff]  ;;  %v2773_v60 = vld [vmem:[%s8954_s28 + $0x108] sm:$0xff] }
 0x1a4   : > { %8528 = vtanh.f32 %v2118_v8  ;;  %v9629_v33 = vcombine.high %v2776_v16, %v2778_v57  ;;  %v2779_v8 = vld [vmem:[%s8954_s28 + $0x168] sm:$0xff]  ;;  %v9632_v10 = vcombine.low %v2776_v16, %v2778_v57 }
 0x1a5   : > { %8530 = vtanh.f32 %v2129_v56  ;;  %v2775_v56 = vld [vmem:[%s8954_s28 + $0x128] sm:$0xff] }
 0x1a6   : > { %v8523_v19 = vpop.eup %8522  ;;  %v2757_v2 = vld [vmem:[%s8954_s28 + $0x8] sm:$0xff] }
 0x1a7   : > { %v1841_v55 = vmul.f32 %v8523_v19, %v1836_v39  ;;  %v9634_v39 = vcombine.low %v2777_v41, %v2779_v8  ;;  %v9636_v19 = vcombine.high %v2777_v41, %v2779_v8  ;;  %v2759_v57 = vld [vmem:[%s8954_s28 + $0x28] sm:$0xff] }
 0x1a8   : > { %v9714_v8 = vcombine.low %v2757_v2, %v2759_v57 }
 0x1a9   : > { %2138 = vst [vmem:[%s9552_s10] sm:$0xff] %v1841_v55  ;;  %v2149_v34 = vpack.c.bf16 %v1841_v55, %v1841_v55  ;;  %v2774_v55 = vld [vmem:[%s8954_s28 + $0x120] sm:$0xff] }
 0x1ab   : > { %2375 = vmatmul.mubr.bf16.vlgmr.msra.gmra.mxu0 %v2149_v34  ;;  %2416 = vmatmul.mubr.bf16.vlgmr.msra.gmra.mxu1 %v2149_v34  ;;  %v9645_v34 = vcombine.high %v2772_v3, %v2774_v55 }
 0x1ac   : > { %2640 = vmatpush1.bf16.msra.mxu0 %v9118_v45  ;;  %2681 = vmatpush1.bf16.msra.mxu1 %v9120_v46 }
 0x1ad   : > { %2641 = vmatprep.subr.bf16.mxu0 %v9122_v50  ;;  %2682 = vmatprep.subr.bf16.mxu1 %v9124_v51 }
 0x1ae   : > { %v8525_v29 = vpop.eup %8524  ;;  %2671 = vmatprep.mubr.bf16.mxu0 %v11138_v9  ;;  %2712 = vmatprep.mubr.bf16.mxu1 %v11138_v9 }
 0x1af   : > { %v2124_v35 = vadd.f32 1.0, %v8525_v29  ;;  %v9648_v29 = vcombine.low %v2772_v3, %v2774_v55  ;;  %v9716_v3 = vcombine.high %v2757_v2, %v2759_v57  ;;  %v3081_v55 = vld [vmem:[%s8954_s28 + $0x1d0] sm:$0xff] }
 0x1b0   : > { %v8527_v24 = vpop.eup %8526  ;;  %2642 = vmatpush1.bf16.msra.mxu0 %v9133_v59  ;;  %2683 = vmatpush1.bf16.msra.mxu1 %v9137_v62  ;;  %v11206_v59 = vld [vmem:[#allocation4_spill] sm:$0xff] }
 0x1b1   : > { %v2126_v17 = vmul.f32 0.5, %v2124_v35  ;;  %v2125_v45 = vadd.f32 1.0, %v8527_v24  ;;  %2643 = vmatprep.subr.bf16.mxu0 %v9139_v63  ;;  %2684 = vmatprep.subr.bf16.mxu1 %v9142_v0  ;;  %v8529_v50 = vpop.eup %8528  ;;  %v11209_v63 = vld [vmem:[#allocation7_spill] sm:$0xff]  ;;  %v11210_v0 = vld [vmem:[#allocation8_spill] sm:$0xff]  ;;  %v9650_v35 = vcombine.low %v2773_v60, %v2775_v56  ;;  %v9652_v24 = vcombine.high %v2773_v60, %v2775_v56  ;;  %v3083_v60 = vld [vmem:[%s8954_s28 + $0x1f0] sm:$0xff] }
 0x1b2   : > { %v3082_v56 = vld [vmem:[%s8954_s28 + $0x1d8] sm:$0xff] }
 0x1b3   : > { %v2127_v46 = vmul.f32 0.5, %v2125_v45  ;;  %v2134_v22 = vmul.f32 %v8529_v50, %v2126_v17  ;;  %v2768_v17 = vld [vmem:[%s8954_s28 + $0xc0] sm:$0xff] }
 0x1b4   : > { %2644 = vmatpush1.bf16.msra.mxu0 %v9151_v12  ;;  %2685 = vmatpush1.bf16.msra.mxu1 %v9155_v15  ;;  %v11211_v12 = vld [vmem:[#allocation9_spill] sm:$0xff]  ;;  %v8531_v15 = vpop.eup %8530  ;;  %v2770_v45 = vld [vmem:[%s8954_s28 + $0xe0] sm:$0xff] }
 0x1b5   : > { %v2133_v51 = vmul.f32 0.0, %v2127_v46  ;;  %2645 = vmatprep.subr.bf16.mxu0 %v11205_v49  ;;  %2686 = vmatprep.subr.bf16.mxu1 %v11206_v59  ;;  %v2131_v18 = vadd.f32 1.0, %v8531_v15  ;;  %v2769_v46 = vld [vmem:[%s8954_s28 + $0xc8] sm:$0xff]  ;;  %v9661_v50 = vcombine.high %v2768_v17, %v2770_v45 }
 0x1b7   : > { %v9570_v62 = vadd.f32 %v2134_v22, %v2133_v51  ;;  %v2771_v51 = vld [vmem:[%s8954_s28 + $0xe8] sm:$0xff]  ;;  %v9664_v22 = vcombine.low %v2768_v17, %v2770_v45  ;;  %v9725_v17 = vcombine.high %v3081_v55, %v3083_v60  ;;  %v3084_v45 = vld [vmem:[%s8954_s28 + $0x1f8] sm:$0xff] }
 0x1b8   : > { %2646 = vmatpush1.bf16.msra.mxu0 %v11207_v32  ;;  %2687 = vmatpush1.bf16.msra.mxu1 %v11208_v31  ;;  %v9666_v49 = vcombine.low %v2769_v46, %v2771_v51  ;;  %v9668_v59 = vcombine.high %v2769_v46, %v2771_v51  ;;  %v2764_v32 = vld [vmem:[%s8954_s28 + $0x80] sm:$0xff]  ;;  %v9728_v46 = vcombine.low %v3081_v55, %v3083_v60 }
 0x1b9   : > { %8532 = vtanh.f32 %v9570_v62  ;;  %2647 = vmatprep.subr.bf16.mxu0 %v11209_v63  ;;  %2688 = vmatprep.subr.bf16.mxu1 %v11210_v0  ;;  %v2766_v31 = vld [vmem:[%s8954_s28 + $0xa0] sm:$0xff]  ;;  %v2765_v63 = vld [vmem:[%s8954_s28 + $0x88] sm:$0xff]  ;;  %v9730_v51 = vcombine.low %v3082_v56, %v3084_v45 }
 0x1ba   : > { %v9677_v0 = vcombine.high %v2764_v32, %v2766_v31  ;;  %v9680_v15 = vcombine.low %v2764_v32, %v2766_v31  ;;  %v9732_v32 = vcombine.high %v3082_v56, %v3084_v45  ;;  %v1250_v45 = vadd.f32 %v9308_v37, %v9317_v13  ;;  %v3067_v13 = vld [vmem:[%s8954_s28 + $0xf0] sm:$0xff] }
 0x1bc   : > { %2648 = vmatpush1.bf16.msra.mxu0 %v9183_v58  ;;  %2689 = vmatpush1.bf16.msra.mxu1 %v9187_v1  ;;  %v2132_v58 = vmul.f32 0.5, %v2131_v18  ;;  %11212 = vst [vmem:[#allocation3_spill] sm:$0xff] %v9732_v32 }
 0x1bd   : > { %2649 = vmatprep.subr.bf16.mxu0 %v9189_v5  ;;  %2690 = vmatprep.subr.bf16.mxu1 %v11211_v12  ;;  %v2784_v5 = vld [vmem:[%s8954_s28 + $0x1c0] sm:$0xff]  ;;  %v2767_v12 = vld [vmem:[%s8954_s28 + $0xa8] sm:$0xff] }
 0x1be   : > { %v9682_v18 = vcombine.low %v2765_v63, %v2767_v12 }
 0x1c0   : > { %2650 = vmatpush1.bf16.msra.mxu0 %v9199_v38  ;;  %2691 = vmatpush1.bf16.msra.mxu1 %v9203_v25  ;;  %v2786_v25 = vld [vmem:[%s8954_s28 + $0x1e0] sm:$0xff] }
 0x1c1   : > { %2651 = vmatprep.subr.bf16.mxu0 %v9205_v26  ;;  %2692 = vmatprep.subr.bf16.mxu1 %v9208_v42  ;;  %v2785_v26 = vld [vmem:[%s8954_s28 + $0x1c8] sm:$0xff] }
 0x1c4   : > { %2652 = vmatpush1.bf16.msra.mxu0 %v9215_v43  ;;  %2693 = vmatpush1.bf16.msra.mxu1 %v9219_v23  ;;  %v9597_v43 = vcombine.high %v2784_v5, %v2786_v25  ;;  %v9600_v23 = vcombine.low %v2784_v5, %v2786_v25  ;;  %v2763_v25 = vld [vmem:[%s8954_s28 + $0x68] sm:$0xff] }
 0x1c5   : > { %2653 = vmatprep.subr.bf16.mxu0 %v9221_v52  ;;  %2694 = vmatprep.subr.bf16.mxu1 %v9224_v53 }
 0x1c6   : > { %v8533_v38 = vpop.eup %8532 }
 0x1c7   : > { %v2137_v1 = vmul.f32 %v8533_v38, %v2132_v58  ;;  %v9684_v58 = vcombine.high %v2765_v63, %v2767_v12  ;;  %v2760_v38 = vld [vmem:[%s8954_s28 + $0x40] sm:$0xff]  ;;  %v1167_v12 = vadd.f32 %v9303_v30, %v9311_v4 }
 0x1c8   : > { %2654 = vmatpush1.bf16.msra.mxu0 %v9227_v6  ;;  %2695 = vmatpush1.bf16.msra.mxu1 %v9231_v11  ;;  %v2787_v6 = vld [vmem:[%s8954_s28 + $0x1e8] sm:$0xff]  ;;  %v2780_v11 = vld [vmem:[%s8954_s28 + $0x180] sm:$0xff] }
 0x1c9   : > { %7890 = vst [vmem:[%s9552_s10 + $0x98] sm:$0xff] %v2137_v1  ;;  %v2446_v42 = vpack.c.bf16 %v2137_v1, %v2137_v1  ;;  %v9602_v52 = vcombine.low %v2785_v26, %v2787_v6  ;;  %v9604_v53 = vcombine.high %v2785_v26, %v2787_v6  ;;  %2948 = vmatprep.subr.bf16.mxu0 %v9597_v43  ;;  %v2762_v1 = vld [vmem:[%s8954_s28 + $0x60] sm:$0xff] }
 0x1ca   : > { %v9613_v28 = vcombine.high %v2780_v11, %v2782_v27  ;;  %v9616_v40 = vcombine.low %v2780_v11, %v2782_v27  ;;  %v9693_v5 = vcombine.high %v2760_v38, %v2762_v1  ;;  %v9696_v26 = vcombine.low %v2760_v38, %v2762_v1  ;;  %v2756_v27 = vld [vmem:[%s8954_s28] sm:$0xff] }
 0x1cb   : > { %2672 = vmatmul.mubr.bf16.vlgmr.msra.gmra.mxu0 %v2446_v42  ;;  %2713 = vmatmul.mubr.bf16.vlgmr.msra.gmra.mxu1 %v2446_v42  ;;  %v2761_v42 = vld [vmem:[%s8954_s28 + $0x48] sm:$0xff]  ;;  %v9709_v16 = vcombine.high %v2756_v27, %v2758_v7  ;;  %v9712_v41 = vcombine.low %v2756_v27, %v2758_v7 }
 0x1cc   : > { %2980 = vmatprep.mubr.bf16.mxu0 %v11138_v9  ;;  %3021 = vmatprep.mubr.bf16.mxu1 %v11138_v9  ;;  %v9698_v6 = vcombine.low %v2761_v42, %v2763_v25  ;;  %v9700_v11 = vcombine.high %v2761_v42, %v2763_v25 }
 0x1cd   : > { %2989 = vmatprep.subr.bf16.mxu1 %v9604_v53  ;;  %2949 = vmatpush1.bf16.msra.mxu0 %v9600_v23 }
 0x1ce   : > { %2990 = vmatpush1.bf16.msra.mxu1 %v9602_v52  ;;  %2950 = vmatprep.subr.bf16.mxu0 %v9613_v28 }
 0x1cf   : > { %2991 = vmatprep.subr.bf16.mxu1 %v9620_v44 }
 0x1d1   : > { %2951 = vmatpush1.bf16.msra.mxu0 %v9616_v40 }
 0x1d2   : > { %2992 = vmatpush1.bf16.msra.mxu1 %v9618_v47  ;;  %2952 = vmatprep.subr.bf16.mxu0 %v9629_v33 }
 0x1d3   : > { %2993 = vmatprep.subr.bf16.mxu1 %v9636_v19 }
 0x1d5   : > { %2953 = vmatpush1.bf16.msra.mxu0 %v9632_v10 }
 0x1d6   : > { %2994 = vmatpush1.bf16.msra.mxu1 %v9634_v39  ;;  %2954 = vmatprep.subr.bf16.mxu0 %v9645_v34 }
 0x1d7   : > { %2995 = vmatprep.subr.bf16.mxu1 %v9652_v24 }
 0x1d9   : > { %2955 = vmatpush1.bf16.msra.mxu0 %v9648_v29 }
 0x1da   : > { %2996 = vmatpush1.bf16.msra.mxu1 %v9650_v35  ;;  %2956 = vmatprep.subr.bf16.mxu0 %v9661_v50 }
 0x1db   : > { %2997 = vmatprep.subr.bf16.mxu1 %v9668_v59 }
 0x1dd   : > { %2957 = vmatpush1.bf16.msra.mxu0 %v9664_v22 }
 0x1de   : > { %2998 = vmatpush1.bf16.msra.mxu1 %v9666_v49  ;;  %2958 = vmatprep.subr.bf16.mxu0 %v9677_v0 }
 0x1df   : > { %2999 = vmatprep.subr.bf16.mxu1 %v9684_v58 }
 0x1e1   : > { %2959 = vmatpush1.bf16.msra.mxu0 %v9680_v15 }
 0x1e2   : > { %3000 = vmatpush1.bf16.msra.mxu1 %v9682_v18  ;;  %2960 = vmatprep.subr.bf16.mxu0 %v9693_v5 }
 0x1e3   : > { %3001 = vmatprep.subr.bf16.mxu1 %v9700_v11 }
 0x1e5   : > { %2961 = vmatpush1.bf16.msra.mxu0 %v9696_v26 }
 0x1e6   : > { %3002 = vmatpush1.bf16.msra.mxu1 %v9698_v6  ;;  %2962 = vmatprep.subr.bf16.mxu0 %v9709_v16 }
 0x1e7   : > { %3003 = vmatprep.subr.bf16.mxu1 %v9716_v3 }
 0x1e9   : > { %2963 = vmatpush1.bf16.msra.mxu0 %v9712_v41 }
 0x1ea   : > { %3004 = vmatpush1.bf16.msra.mxu1 %v9714_v8  ;;  %3245 = vmatprep.subr.bf16.mxu0 %v9725_v17 }
 0x1eb   : > { %3286 = vmatprep.subr.bf16.mxu1 %v9732_v32 }
 0x26b   : > { %v2376_v31 = vpop.f32.mrf.mxu0  ;;  %v2417_v63 = vpop.f32.mrf.mxu1 }
 0x26c   : > { %v2424_v38 = vadd.f32 %v2376_v31, %v9300_v54  ;;  %v2426_v57 = vadd.f32 %v2417_v63, %v9306_v61 }
 0x26d   : > { %v2378_v1 = vpop.f32.mrf.mxu0  ;;  %v2419_v42 = vpop.f32.mrf.mxu1 }
 0x26e   : > { %v2428_v25 = vmul.f32 0.5, %v2424_v38  ;;  %v2425_v27 = vadd.f32 %v2378_v1, %v1167_v12  ;;  %v2427_v30 = vadd.f32 %v2419_v42, %v1250_v45 }
 0x26f   : > { %v2380_v7 = vpop.f32.mrf.mxu0  ;;  %v2421_v2 = vpop.f32.mrf.mxu1 }
 0x270   : > { %8534 = vtanh.f32 %v2428_v25  ;;  %v2429_v55 = vmul.f32 0.5, %v2425_v27  ;;  %v2437_v4 = vmul.f32 0.5, %v2427_v30 }
 0x271   : > { %v2381_v60 = vpop.f32.mrf.mxu0  ;;  %v2422_v56 = vpop.f32.mrf.mxu1 }
 0x272   : > { %8536 = vtanh.f32 %v2429_v55 }
 0x273   : > { %8538 = vtanh.f32 %v2426_v57 }
 0x274   : > { %8540 = vtanh.f32 %v2437_v4 }
 0x27d   : > { %v8535_v54 = vpop.eup %8534 }
 0x27e   : > { %v2432_v31 = vadd.f32 1.0, %v8535_v54 }
 0x27f   : > { %v8537_v32 = vpop.eup %8536 }
 0x280   : > { %v2434_v38 = vmul.f32 0.5, %v2432_v31  ;;  %v2433_v12 = vadd.f32 1.0, %v8537_v32  ;;  %v8539_v1 = vpop.eup %8538 }
 0x281   : > { %v8541_v42 = vpop.eup %8540 }
 0x282   : > { %v2435_v25 = vmul.f32 0.5, %v2433_v12  ;;  %v2442_v7 = vmul.f32 %v8539_v1, %v2434_v38  ;;  %v2439_v56 = vadd.f32 1.0, %v8541_v42  ;;  %v3077_v38 = vld [vmem:[%s8954_s28 + $0x190] sm:$0xff]  ;;  %v3078_v1 = vld [vmem:[%s8954_s28 + $0x198] sm:$0xff] }
 0x283   : > { %v3079_v12 = vld [vmem:[%s8954_s28 + $0x1b0] sm:$0xff] }
 0x284   : > { %v2441_v61 = vmul.f32 %v2435_v25, %v9542_v48  ;;  %v2440_v31 = vmul.f32 0.5, %v2439_v56  ;;  %v3080_v25 = vld [vmem:[%s8954_s28 + $0x1b8] sm:$0xff]  ;;  %v3075_v42 = vld [vmem:[%s8954_s28 + $0x170] sm:$0xff] }
 0x285   : > { %v3069_v56 = vld [vmem:[%s8954_s28 + $0x110] sm:$0xff] }
 0x286   : > { %v9743_v63 = vadd.f32 %v2442_v7, %v2441_v61 }
 0x288   : > { %8542 = vtanh.f32 %v9743_v63 }
 0x28b   : > { %v2673_v27 = vpop.f32.mrf.mxu0  ;;  %v2714_v2 = vpop.f32.mrf.mxu1 }
 0x28c   : > { %v2721_v37 = vadd.f32 %v2673_v27, %v9523_v36  ;;  %v2723_v45 = vadd.f32 %v2714_v2, %v9526_v20  ;;  %v9755_v27 = vcombine.high %v3077_v38, %v3079_v12  ;;  %v9757_v2 = vcombine.high %v3078_v1, %v3080_v25 }
 0x28d   : > { %v2675_v57 = vpop.f32.mrf.mxu0  ;;  %v2716_v55 = vpop.f32.mrf.mxu1 }
 0x28e   : > { %v2725_v32 = vmul.f32 0.5, %v2721_v37  ;;  %v2722_v4 = vadd.f32 %v2675_v57, %v9529_v14  ;;  %v2724_v61 = vadd.f32 %v2716_v55, %v9532_v21  ;;  %v3073_v37 = vld [vmem:[%s8954_s28 + $0x150] sm:$0xff]  ;;  %v3074_v57 = vld [vmem:[%s8954_s28 + $0x158] sm:$0xff]  ;;  %v9765_v21 = vcombine.low %v3077_v38, %v3079_v12 }
 0x28f   : > { %v2677_v60 = vpop.f32.mrf.mxu0  ;;  %v2718_v48 = vpop.f32.mrf.mxu1  ;;  %v9767_v55 = vcombine.low %v3078_v1, %v3080_v25 }
 0x290   : > { %8544 = vtanh.f32 %v2725_v32  ;;  %v2726_v30 = vmul.f32 0.5, %v2722_v4  ;;  %v3076_v32 = vld [vmem:[%s8954_s28 + $0x178] sm:$0xff]  ;;  %v2734_v4 = vmul.f32 0.5, %v2724_v61  ;;  %v9771_v60 = vcombine.high %v3073_v37, %v3075_v42 }
 0x291   : > { %v2678_v54 = vpop.f32.mrf.mxu0  ;;  %v2719_v36 = vpop.f32.mrf.mxu1  ;;  %v9773_v48 = vcombine.high %v3074_v57, %v3076_v32  ;;  %v9785_v12 = vcombine.low %v3074_v57, %v3076_v32 }
 0x292   : > { %8546 = vtanh.f32 %v2726_v30  ;;  %11213 = vst [vmem:[#allocation4_spill] sm:$0xff] %v9771_v60  ;;  %v3070_v54 = vld [vmem:[%s8954_s28 + $0x118] sm:$0xff] }
 0x293   : > { %8548 = vtanh.f32 %v2723_v45  ;;  %11214 = vst [vmem:[#allocation5_spill] sm:$0xff] %v9773_v48  ;;  %v3071_v45 = vld [vmem:[%s8954_s28 + $0x130] sm:$0xff]  ;;  %v3072_v36 = vld [vmem:[%s8954_s28 + $0x138] sm:$0xff] }
 0x294   : > { %v9787_v1 = vcombine.high %v3069_v56, %v3071_v45  ;;  %8550 = vtanh.f32 %v2734_v4  ;;  %v9791_v61 = vcombine.high %v3070_v54, %v3072_v36  ;;  %v9799_v4 = vcombine.low %v3069_v56, %v3071_v45  ;;  %v3062_v56 = vld [vmem:[%s8954_s28 + $0x98] sm:$0xff] }
 0x295   : > { %v8543_v14 = vpop.eup %8542  ;;  %v3064_v45 = vld [vmem:[%s8954_s28 + $0xb8] sm:$0xff] }
 0x296   : > { %v2445_v7 = vmul.f32 %v8543_v14, %v2440_v31  ;;  %v9783_v14 = vcombine.low %v3073_v37, %v3075_v42  ;;  %11215 = vst [vmem:[#allocation6_spill] sm:$0xff] %v9787_v1  ;;  %11216 = vst [vmem:[#allocation7_spill] sm:$0xff] %v9791_v61  ;;  %v3066_v37 = vld [vmem:[%s8954_s28 + $0xd8] sm:$0xff] }
 0x297   : > { %v3068_v42 = vld [vmem:[%s8954_s28 + $0xf8] sm:$0xff]  ;;  %11217 = vst [vmem:[#allocation8_spill] sm:$0xff] %v9799_v4 }
 0x298   : > { %7955 = vst [vmem:[%s9552_s10 + $0x10] sm:$0xff] %v2445_v7  ;;  %v2755_v20 = vpack.c.bf16 %v2445_v7, %v2445_v7 }
 0x29a   : > { %2981 = vmatmul.mubr.bf16.vlgmr.msra.gmra.mxu0 %v2755_v20  ;;  %3022 = vmatmul.mubr.bf16.vlgmr.msra.gmra.mxu1 %v2755_v20  ;;  %v3065_v20 = vld [vmem:[%s8954_s28 + $0xd0] sm:$0xff] }
 0x29b   : > { %3246 = vmatpush1.bf16.msra.mxu0 %v9728_v46  ;;  %3287 = vmatpush1.bf16.msra.mxu1 %v9730_v51 }
 0x29c   : > { %3247 = vmatprep.subr.bf16.mxu0 %v9755_v27  ;;  %3288 = vmatprep.subr.bf16.mxu1 %v9757_v2 }
 0x29d   : > { %v8545_v30 = vpop.eup %8544  ;;  %3277 = vmatprep.mubr.bf16.mxu0 %v11138_v9  ;;  %3318 = vmatprep.mubr.bf16.mxu1 %v11138_v9 }
 0x29e   : > { %v2729_v31 = vadd.f32 1.0, %v8545_v30 }
 0x29f   : > { %v8547_v38 = vpop.eup %8546  ;;  %3248 = vmatpush1.bf16.msra.mxu0 %v9765_v21  ;;  %3289 = vmatpush1.bf16.msra.mxu1 %v9767_v55 }
 0x2a0   : > { %v2731_v25 = vmul.f32 0.5, %v2729_v31  ;;  %v2730_v7 = vadd.f32 1.0, %v8547_v38  ;;  %3249 = vmatprep.subr.bf16.mxu0 %v9771_v60  ;;  %3290 = vmatprep.subr.bf16.mxu1 %v9773_v48  ;;  %v8549_v30 = vpop.eup %8548  ;;  %v9801_v31 = vcombine.low %v3070_v54, %v3072_v36  ;;  %v9806_v48 = vcombine.high %v3065_v20, %v3067_v13 }
 0x2a1   : > { %v9808_v60 = vcombine.high %v3066_v37, %v3068_v42  ;;  %v9820_v36 = vcombine.low %v3066_v37, %v3068_v42  ;;  %v9837_v42 = vcombine.low %v3062_v56, %v3064_v45 }
 0x2a2   : > { %v2732_v57 = vmul.f32 0.5, %v2730_v7  ;;  %v2739_v32 = vmul.f32 %v8549_v30, %v2731_v25  ;;  %11218 = vst [vmem:[#allocation9_spill] sm:$0xff] %v9801_v31  ;;  %11219 = vst [vmem:[#allocation76_spill] sm:$0xff] %v9806_v48  ;;  %v3061_v25 = vld [vmem:[%s8954_s28 + $0x90] sm:$0xff] }
 0x2a3   : > { %3250 = vmatpush1.bf16.msra.mxu0 %v9783_v14  ;;  %3291 = vmatpush1.bf16.msra.mxu1 %v9785_v12  ;;  %11220 = vst [vmem:[#allocation77_spill] sm:$0xff] %v9808_v60  ;;  %v3063_v7 = vld [vmem:[%s8954_s28 + $0xb0] sm:$0xff] }
 0x2a4   : > { %v2738_v38 = vmul.f32 %v2732_v57, %v9570_v62  ;;  %3251 = vmatprep.subr.bf16.mxu0 %v9787_v1  ;;  %3292 = vmatprep.subr.bf16.mxu1 %v9791_v61  ;;  %v9818_v62 = vcombine.low %v3065_v20, %v3067_v13  ;;  %v9825_v30 = vcombine.high %v3061_v25, %v3063_v7  ;;  %v3058_v13 = vld [vmem:[%s8954_s28 + $0x58] sm:$0xff]  ;;  %v3055_v61 = vld [vmem:[%s8954_s28 + $0x30] sm:$0xff] }
 0x2a5   : > { %v9827_v57 = vcombine.high %v3062_v56, %v3064_v45  ;;  %v3060_v20 = vld [vmem:[%s8954_s28 + $0x78] sm:$0xff]  ;;  %v9835_v37 = vcombine.low %v3061_v25, %v3063_v7 }
 0x2a6   : > { %v9814_v54 = vadd.f32 %v2739_v32, %v2738_v38  ;;  %v3057_v32 = vld [vmem:[%s8954_s28 + $0x50] sm:$0xff]  ;;  %v3054_v1 = vld [vmem:[%s8954_s28 + $0x18] sm:$0xff]  ;;  %v9853_v7 = vcombine.low %v3058_v13, %v3060_v20 }
 0x2a7   : > { %3252 = vmatpush1.bf16.msra.mxu0 %v9799_v4  ;;  %3293 = vmatpush1.bf16.msra.mxu1 %v9801_v31  ;;  %11222 = vst [vmem:[#allocation79_spill] sm:$0xff] %v9827_v57  ;;  %v3059_v38 = vld [vmem:[%s8954_s28 + $0x70] sm:$0xff]  ;;  %11223 = vst [vmem:[#allocation80_spill] sm:$0xff] %v9835_v37  ;;  %v8551_v4 = vpop.eup %8550 }
 0x2a8   : > { %11221 = vst [vmem:[#allocation78_spill] sm:$0xff] %v9814_v54  ;;  %8552 = vtanh.f32 %v9814_v54  ;;  %3253 = vmatprep.subr.bf16.mxu0 %v9806_v48  ;;  %3294 = vmatprep.subr.bf16.mxu1 %v9808_v60  ;;  %v9841_v60 = vcombine.high %v3057_v32, %v3059_v38  ;;  %v9843_v48 = vcombine.high %v3058_v13, %v3060_v20  ;;  %v3053_v31 = vld [vmem:[%s8954_s28 + $0x10] sm:$0xff]  ;;  %v3056_v54 = vld [vmem:[%s8954_s28 + $0x38] sm:$0xff]  ;;  %v2736_v56 = vadd.f32 1.0, %v8551_v4 }
 0x2a9   : > { %v9851_v25 = vcombine.low %v3057_v32, %v3059_v38  ;;  %v9857_v45 = vcombine.high %v3053_v31, %v3055_v61  ;;  %v9865_v32 = vcombine.low %v3054_v1, %v3056_v54 }
 0x2aa   : > { %v2737_v38 = vmul.f32 0.5, %v2736_v56 }
 0x2ab   : > { %3254 = vmatpush1.bf16.msra.mxu0 %v9818_v62  ;;  %3295 = vmatpush1.bf16.msra.mxu1 %v9820_v36 }
 0x2ac   : > { %3255 = vmatprep.subr.bf16.mxu0 %v9825_v30  ;;  %3296 = vmatprep.subr.bf16.mxu1 %v9827_v57  ;;  %v9859_v57 = vcombine.high %v3054_v1, %v3056_v54 }
 0x2af   : > { %3256 = vmatpush1.bf16.msra.mxu0 %v9835_v37  ;;  %3297 = vmatpush1.bf16.msra.mxu1 %v9837_v42  ;;  %v9863_v37 = vcombine.low %v3053_v31, %v3055_v61 }
 0x2b0   : > { %3257 = vmatprep.subr.bf16.mxu0 %v9841_v60  ;;  %3298 = vmatprep.subr.bf16.mxu1 %v9843_v48 }
 0x2b3   : > { %3258 = vmatpush1.bf16.msra.mxu0 %v9851_v25  ;;  %3299 = vmatpush1.bf16.msra.mxu1 %v9853_v7 }
 0x2b4   : > { %3259 = vmatprep.subr.bf16.mxu0 %v9857_v45  ;;  %3300 = vmatprep.subr.bf16.mxu1 %v9859_v57 }
 0x2b5   : > { %v8553_v4 = vpop.eup %8552 }
 0x2b6   : > { %v2742_v13 = vmul.f32 %v8553_v4, %v2737_v38  ;;  %v11230_v38 = vld [vmem:[#allocation74_spill] sm:$0xff] }
 0x2b7   : > { %3260 = vmatpush1.bf16.msra.mxu0 %v9863_v37  ;;  %3301 = vmatpush1.bf16.msra.mxu1 %v9865_v32 }
 0x2b8   : > { %7956 = vst [vmem:[%s9552_s10 + $0x88] sm:$0xff] %v2742_v13  ;;  %v3052_v20 = vpack.c.bf16 %v2742_v13, %v2742_v13  ;;  %3554 = vmatprep.subr.bf16.mxu0 %v9597_v43  ;;  %3595 = vmatprep.subr.bf16.mxu1 %v9604_v53  ;;  %v11224_v43 = vld [vmem:[#allocation3_spill] sm:$0xff] }
 0x2b9   : > { %v11225_v53 = vld [vmem:[#allocation11_spill] sm:$0xff] }
 0x2ba   : > { %3278 = vmatmul.mubr.bf16.vlgmr.msra.gmra.mxu0 %v3052_v20  ;;  %3319 = vmatmul.mubr.bf16.vlgmr.msra.gmra.mxu1 %v3052_v20 }
 0x2bb   : > { %3555 = vmatpush1.bf16.msra.mxu0 %v9600_v23  ;;  %3596 = vmatpush1.bf16.msra.mxu1 %v9602_v52 }
 0x2bc   : > { %3556 = vmatprep.subr.bf16.mxu0 %v9613_v28  ;;  %3597 = vmatprep.subr.bf16.mxu1 %v9620_v44 }
 0x2bd   : > { %3586 = vmatprep.mubr.bf16.mxu0 %v11138_v9  ;;  %3627 = vmatprep.mubr.bf16.mxu1 %v11138_v9 }
 0x2bf   : > { %3557 = vmatpush1.bf16.msra.mxu0 %v9616_v40  ;;  %3598 = vmatpush1.bf16.msra.mxu1 %v9618_v47 }
 0x2c0   : > { %3558 = vmatprep.subr.bf16.mxu0 %v9629_v33  ;;  %3599 = vmatprep.subr.bf16.mxu1 %v9636_v19  ;;  %v11226_v33 = vld [vmem:[#allocation14_spill] sm:$0xff] }
 0x2c3   : > { %3559 = vmatpush1.bf16.msra.mxu0 %v9632_v10  ;;  %3600 = vmatpush1.bf16.msra.mxu1 %v9634_v39 }
 0x2c4   : > { %3560 = vmatprep.subr.bf16.mxu0 %v9645_v34  ;;  %3601 = vmatprep.subr.bf16.mxu1 %v9652_v24  ;;  %v11227_v34 = vld [vmem:[#allocation13_spill] sm:$0xff] }
 0x2c7   : > { %3561 = vmatpush1.bf16.msra.mxu0 %v9648_v29  ;;  %3602 = vmatpush1.bf16.msra.mxu1 %v9650_v35 }
 0x2c8   : > { %3562 = vmatprep.subr.bf16.mxu0 %v9661_v50  ;;  %3603 = vmatprep.subr.bf16.mxu1 %v9668_v59 }
 0x2cb   : > { %3563 = vmatpush1.bf16.msra.mxu0 %v9664_v22  ;;  %3604 = vmatpush1.bf16.msra.mxu1 %v9666_v49  ;;  %v11228_v22 = vld [vmem:[#allocation15_spill] sm:$0xff] }
 0x2cc   : > { %3564 = vmatprep.subr.bf16.mxu0 %v9677_v0  ;;  %3605 = vmatprep.subr.bf16.mxu1 %v9684_v58 }
 0x2cf   : > { %3565 = vmatpush1.bf16.msra.mxu0 %v9680_v15  ;;  %3606 = vmatpush1.bf16.msra.mxu1 %v9682_v18 }
 0x2d0   : > { %3566 = vmatprep.subr.bf16.mxu0 %v9693_v5  ;;  %3607 = vmatprep.subr.bf16.mxu1 %v9700_v11 }
 0x2d3   : > { %3567 = vmatpush1.bf16.msra.mxu0 %v9696_v26  ;;  %3608 = vmatpush1.bf16.msra.mxu1 %v9698_v6 }
 0x2d4   : > { %3568 = vmatprep.subr.bf16.mxu0 %v9709_v16  ;;  %3609 = vmatprep.subr.bf16.mxu1 %v9716_v3 }
 0x2d7   : > { %3569 = vmatpush1.bf16.msra.mxu0 %v9712_v41  ;;  %3610 = vmatpush1.bf16.msra.mxu1 %v9714_v8 }
 0x2d8   : > { %3851 = vmatprep.subr.bf16.mxu0 %v9725_v17  ;;  %3892 = vmatprep.subr.bf16.mxu1 %v11224_v43  ;;  %v11229_v17 = vld [vmem:[#allocation72_spill] sm:$0xff] }
 0x35a   : > { %v2982_v23 = vpop.f32.mrf.mxu0  ;;  %v3023_v52 = vpop.f32.mrf.mxu1 }
 0x35b   : > { %v3030_v28 = vadd.f32 %v2982_v23, %v11225_v53  ;;  %v3032_v29 = vadd.f32 %v3023_v52, %v11227_v34 }
 0x35c   : > { %v2984_v40 = vpop.f32.mrf.mxu0  ;;  %v3025_v47 = vpop.f32.mrf.mxu1 }
 0x35d   : > { %v3034_v44 = vmul.f32 0.5, %v3030_v28  ;;  %v3031_v10 = vadd.f32 %v2984_v40, %v11226_v33  ;;  %v3033_v49 = vadd.f32 %v3025_v47, %v11228_v22  ;;  %v11232_v33 = vld [vmem:[#allocation75_spill] sm:$0xff] }
 0x35e   : > { %v2986_v39 = vpop.f32.mrf.mxu0  ;;  %v3027_v19 = vpop.f32.mrf.mxu1 }
 0x35f   : > { %8554 = vtanh.f32 %v3034_v44  ;;  %v3035_v35 = vmul.f32 0.5, %v3031_v10  ;;  %v3043_v59 = vmul.f32 0.5, %v3033_v49  ;;  %v11235_v49 = vld [vmem:[#allocation78_spill] sm:$0xff] }
 0x360   : > { %v2987_v24 = vpop.f32.mrf.mxu0  ;;  %v3028_v50 = vpop.f32.mrf.mxu1 }
 0x361   : > { %8556 = vtanh.f32 %v3035_v35  ;;  %v11234_v50 = vld [vmem:[#allocation5_spill] sm:$0xff] }
 0x362   : > { %8558 = vtanh.f32 %v3032_v29 }
 0x363   : > { %8560 = vtanh.f32 %v3043_v59 }
 0x36c   : > { %v8555_v0 = vpop.eup %8554 }
 0x36d   : > { %v3038_v15 = vadd.f32 1.0, %v8555_v0  ;;  %v11236_v0 = vld [vmem:[#allocation6_spill] sm:$0xff] }
 0x36e   : > { %v8557_v18 = vpop.eup %8556 }
 0x36f   : > { %v3040_v58 = vmul.f32 0.5, %v3038_v15  ;;  %v3039_v5 = vadd.f32 1.0, %v8557_v18  ;;  %v8559_v26 = vpop.eup %8558  ;;  %v11238_v15 = vld [vmem:[#allocation8_spill] sm:$0xff]  ;;  %v11239_v18 = vld [vmem:[#allocation9_spill] sm:$0xff] }
 0x370   : > { %v8561_v61 = vpop.eup %8560 }
 0x371   : > { %v3041_v6 = vmul.f32 0.5, %v3039_v5  ;;  %v3048_v11 = vmul.f32 %v8559_v26, %v3040_v58  ;;  %v3045_v43 = vadd.f32 1.0, %v8561_v61  ;;  %v11240_v58 = vld [vmem:[#allocation76_spill] sm:$0xff]  ;;  %v11241_v5 = vld [vmem:[#allocation77_spill] sm:$0xff] }
 0x372   : > { %v11243_v26 = vld [vmem:[#allocation80_spill] sm:$0xff] }
 0x373   : > { %v3047_v16 = vmul.f32 %v3041_v6, %v9743_v63  ;;  %v11231_v63 = vld [vmem:[#allocation73_spill] sm:$0xff]  ;;  %v3046_v40 = vmul.f32 0.5, %v3045_v43 }
 0x375   : > { %v9913_v41 = vadd.f32 %v3048_v11, %v3047_v16  ;;  %v3992_v11 = vld [vmem:[%s8954_s28 + $0x180] sm:$0xff] }
 0x376   : > { %v3994_v16 = vld [vmem:[%s8954_s28 + $0x1a0] sm:$0xff] }
 0x377   : > { %8562 = vtanh.f32 %v9913_v41 }
 0x37a   : > { %v3279_v8 = vpop.f32.mrf.mxu0  ;;  %v3320_v3 = vpop.f32.mrf.mxu1 }
 0x37b   : > { %v3327_v1 = vadd.f32 %v3279_v8, %v11229_v17  ;;  %v3329_v23 = vadd.f32 %v3320_v3, %v11231_v63  ;;  %v3993_v8 = vld [vmem:[%s8954_s28 + $0x188] sm:$0xff]  ;;  %v9979_v3 = vcombine.high %v3992_v11, %v3994_v16 }
 0x37c   : > { %v3281_v31 = vpop.f32.mrf.mxu0  ;;  %v3322_v54 = vpop.f32.mrf.mxu1  ;;  %v3995_v17 = vld [vmem:[%s8954_s28 + $0x1a8] sm:$0xff] }
 0x37d   : > { %v3331_v56 = vmul.f32 0.5, %v3327_v1  ;;  %v3328_v4 = vadd.f32 %v3281_v31, %v11230_v38  ;;  %v3330_v10 = vadd.f32 %v3322_v54, %v11232_v33  ;;  %v9982_v1 = vcombine.low %v3992_v11, %v3994_v16  ;;  %v3988_v54 = vld [vmem:[%s8954_s28 + $0x140] sm:$0xff]  ;;  %v3989_v38 = vld [vmem:[%s8954_s28 + $0x148] sm:$0xff]  ;;  %v4295_v11 = vld [vmem:[%s8954_s28 + $0x1f0] sm:$0xff] }
 0x37e   : > { %v3283_v13 = vpop.f32.mrf.mxu0  ;;  %v3324_v20 = vpop.f32.mrf.mxu1  ;;  %v9984_v61 = vcombine.low %v3993_v8, %v3995_v17  ;;  %v9986_v31 = vcombine.high %v3993_v8, %v3995_v17  ;;  %v4294_v16 = vld [vmem:[%s8954_s28 + $0x1d8] sm:$0xff] }
 0x37f   : > { %8564 = vtanh.f32 %v3331_v56  ;;  %v3332_v52 = vmul.f32 0.5, %v3328_v4  ;;  %v3340_v19 = vmul.f32 0.5, %v3330_v10  ;;  %v3990_v56 = vld [vmem:[%s8954_s28 + $0x160] sm:$0xff]  ;;  %v3991_v13 = vld [vmem:[%s8954_s28 + $0x168] sm:$0xff]  ;;  %v4296_v17 = vld [vmem:[%s8954_s28 + $0x1f8] sm:$0xff] }
 0x380   : > { %v3284_v53 = vpop.f32.mrf.mxu0  ;;  %v3325_v28 = vpop.f32.mrf.mxu1  ;;  %v9995_v4 = vcombine.high %v3988_v54, %v3990_v56  ;;  %v9998_v20 = vcombine.low %v3988_v54, %v3990_v56  ;;  %v10000_v43 = vcombine.low %v3989_v38, %v3991_v13  ;;  %v10002_v63 = vcombine.high %v3989_v38, %v3991_v13  ;;  %v3980_v10 = vld [vmem:[%s8954_s28 + $0xc0] sm:$0xff] }
 0x381   : > { %8566 = vtanh.f32 %v3332_v52  ;;  %v3986_v52 = vld [vmem:[%s8954_s28 + $0x120] sm:$0xff]  ;;  %v3985_v53 = vld [vmem:[%s8954_s28 + $0x108] sm:$0xff]  ;;  %v10096_v56 = vcombine.low %v4294_v16, %v4296_v17  ;;  %v10098_v38 = vcombine.high %v4294_v16, %v4296_v17 }
 0x382   : > { %8568 = vtanh.f32 %v3329_v23  ;;  %v3984_v23 = vld [vmem:[%s8954_s28 + $0x100] sm:$0xff] }
 0x383   : > { %8570 = vtanh.f32 %v3340_v19  ;;  %v10011_v28 = vcombine.high %v3984_v23, %v3986_v52  ;;  %v3981_v19 = vld [vmem:[%s8954_s28 + $0xc8] sm:$0xff] }
 0x384   : > { %v8563_v47 = vpop.eup %8562 }
 0x385   : > { %v3051_v44 = vmul.f32 %v8563_v47, %v3046_v40  ;;  %v3987_v40 = vld [vmem:[%s8954_s28 + $0x128] sm:$0xff]  ;;  %v10014_v47 = vcombine.low %v3984_v23, %v3986_v52  ;;  %v11244_v52 = vld [vmem:[#allocation10_spill] sm:$0xff] }
 0x386   : > { %v10018_v33 = vcombine.high %v3985_v53, %v3987_v40 }
 0x387   : > { %8021 = vst [vmem:[%s9552_s10 + $0x20] sm:$0xff] %v3051_v44  ;;  %v3361_v39 = vpack.c.bf16 %v3051_v44, %v3051_v44  ;;  %v10016_v44 = vcombine.low %v3985_v53, %v3987_v40  ;;  %v11245_v53 = vld [vmem:[#allocation17_spill] sm:$0xff] }
 0x388   : > { %v1177_v40 = vadd.f32 %v11245_v53, %v11244_v52 }
 0x389   : > { %3587 = vmatmul.mubr.bf16.vlgmr.msra.gmra.mxu0 %v3361_v39  ;;  %3628 = vmatmul.mubr.bf16.vlgmr.msra.gmra.mxu1 %v3361_v39  ;;  %v3982_v39 = vld [vmem:[%s8954_s28 + $0xe0] sm:$0xff] }
 0x38a   : > { %3852 = vmatpush1.bf16.msra.mxu0 %v9728_v46  ;;  %3893 = vmatpush1.bf16.msra.mxu1 %v9730_v51  ;;  %v11233_v51 = vld [vmem:[#allocation4_spill] sm:$0xff] }
 0x38b   : > { %3853 = vmatprep.subr.bf16.mxu0 %v9755_v27  ;;  %3894 = vmatprep.subr.bf16.mxu1 %v9757_v2 }
 0x38c   : > { %v8565_v34 = vpop.eup %8564  ;;  %3883 = vmatprep.mubr.bf16.mxu0 %v11138_v9  ;;  %3924 = vmatprep.mubr.bf16.mxu1 %v11138_v9 }
 0x38d   : > { %v3335_v29 = vadd.f32 1.0, %v8565_v34  ;;  %v10027_v34 = vcombine.high %v3980_v10, %v3982_v39 }
 0x38e   : > { %v8567_v35 = vpop.eup %8566  ;;  %3854 = vmatpush1.bf16.msra.mxu0 %v9765_v21  ;;  %3895 = vmatpush1.bf16.msra.mxu1 %v9767_v55  ;;  %v11237_v21 = vld [vmem:[#allocation7_spill] sm:$0xff] }
 0x38f   : > { %v3337_v24 = vmul.f32 0.5, %v3335_v29  ;;  %v3336_v46 = vadd.f32 1.0, %v8567_v35  ;;  %3855 = vmatprep.subr.bf16.mxu0 %v11233_v51  ;;  %3896 = vmatprep.subr.bf16.mxu1 %v11234_v50  ;;  %v8569_v27 = vpop.eup %8568  ;;  %v3983_v29 = vld [vmem:[%s8954_s28 + $0xe8] sm:$0xff]  ;;  %v10030_v35 = vcombine.low %v3980_v10, %v3982_v39  ;;  %v3976_v51 = vld [vmem:[%s8954_s28 + $0x80] sm:$0xff] }
 0x390   : > { %v3978_v50 = vld [vmem:[%s8954_s28 + $0xa0] sm:$0xff]  ;;  %v11246_v10 = vld [vmem:[#allocation16_spill] sm:$0xff] }
 0x391   : > { %v3338_v2 = vmul.f32 0.5, %v3336_v46  ;;  %v3345_v22 = vmul.f32 %v8569_v27, %v3337_v24  ;;  %v10032_v24 = vcombine.low %v3981_v19, %v3983_v29  ;;  %v10034_v46 = vcombine.high %v3981_v19, %v3983_v29  ;;  %v3977_v27 = vld [vmem:[%s8954_s28 + $0x88] sm:$0xff] }
 0x392   : > { %3856 = vmatpush1.bf16.msra.mxu0 %v9783_v14  ;;  %3897 = vmatpush1.bf16.msra.mxu1 %v9785_v12  ;;  %v11242_v14 = vld [vmem:[#allocation79_spill] sm:$0xff]  ;;  %v8571_v12 = vpop.eup %8570 }
 0x393   : > { %v3344_v59 = vmul.f32 %v3338_v2, %v11235_v49  ;;  %3857 = vmatprep.subr.bf16.mxu0 %v11236_v0  ;;  %3898 = vmatprep.subr.bf16.mxu1 %v11237_v21  ;;  %v3342_v6 = vadd.f32 1.0, %v8571_v12  ;;  %v10043_v2 = vcombine.high %v3976_v51, %v3978_v50  ;;  %v10046_v49 = vcombine.low %v3976_v51, %v3978_v50  ;;  %v3972_v21 = vld [vmem:[%s8954_s28 + $0x40] sm:$0xff] }
 0x395   : > { %v9936_v55 = vadd.f32 %v3345_v22, %v3344_v59  ;;  %v3979_v22 = vld [vmem:[%s8954_s28 + $0xa8] sm:$0xff] }
 0x396   : > { %3858 = vmatpush1.bf16.msra.mxu0 %v11238_v15  ;;  %3899 = vmatpush1.bf16.msra.mxu1 %v11239_v18  ;;  %v10048_v59 = vcombine.low %v3977_v27, %v3979_v22  ;;  %v10050_v0 = vcombine.high %v3977_v27, %v3979_v22  ;;  %v3974_v15 = vld [vmem:[%s8954_s28 + $0x60] sm:$0xff]  ;;  %v3973_v18 = vld [vmem:[%s8954_s28 + $0x48] sm:$0xff] }
 0x397   : > { %8572 = vtanh.f32 %v9936_v55  ;;  %3859 = vmatprep.subr.bf16.mxu0 %v11240_v58  ;;  %3900 = vmatprep.subr.bf16.mxu1 %v11241_v5  ;;  %v10059_v58 = vcombine.high %v3972_v21, %v3974_v15  ;;  %v3975_v5 = vld [vmem:[%s8954_s28 + $0x68] sm:$0xff] }
 0x398   : > { %v10064_v12 = vcombine.low %v3973_v18, %v3975_v5 }
 0x39a   : > { %3860 = vmatpush1.bf16.msra.mxu0 %v9818_v62  ;;  %3901 = vmatpush1.bf16.msra.mxu1 %v9820_v36  ;;  %v3343_v62 = vmul.f32 0.5, %v3342_v6  ;;  %v3968_v6 = vld [vmem:[%s8954_s28] sm:$0xff] }
 0x39b   : > { %3861 = vmatprep.subr.bf16.mxu0 %v9825_v30  ;;  %3902 = vmatprep.subr.bf16.mxu1 %v11242_v14  ;;  %v10062_v14 = vcombine.low %v3972_v21, %v3974_v15  ;;  %v11247_v21 = vld [vmem:[#allocation18_spill] sm:$0xff] }
 0x39e   : > { %3862 = vmatpush1.bf16.msra.mxu0 %v11243_v26  ;;  %3903 = vmatpush1.bf16.msra.mxu1 %v9837_v42  ;;  %v3997_v42 = vld [vmem:[%s8954_s28 + $0x1c8] sm:$0xff]  ;;  %v10066_v26 = vcombine.high %v3973_v18, %v3975_v5 }
 0x39f   : > { %3863 = vmatprep.subr.bf16.mxu0 %v9841_v60  ;;  %3904 = vmatprep.subr.bf16.mxu1 %v9843_v48  ;;  %v3996_v48 = vld [vmem:[%s8954_s28 + $0x1c0] sm:$0xff] }
 0x3a2   : > { %3864 = vmatpush1.bf16.msra.mxu0 %v9851_v25  ;;  %3905 = vmatpush1.bf16.msra.mxu1 %v9853_v7 }
 0x3a3   : > { %3865 = vmatprep.subr.bf16.mxu0 %v9857_v45  ;;  %3906 = vmatprep.subr.bf16.mxu1 %v9859_v57  ;;  %v3998_v57 = vld [vmem:[%s8954_s28 + $0x1e0] sm:$0xff] }
 0x3a4   : > { %v8573_v36 = vpop.eup %8572  ;;  %v9963_v25 = vcombine.high %v3996_v48, %v3998_v57  ;;  %v9966_v7 = vcombine.low %v3996_v48, %v3998_v57 }
 0x3a5   : > { %v3348_v30 = vmul.f32 %v8573_v36, %v3343_v62  ;;  %v3970_v62 = vld [vmem:[%s8954_s28 + $0x20] sm:$0xff]  ;;  %v3969_v36 = vld [vmem:[%s8954_s28 + $0x8] sm:$0xff] }
 0x3a6   : > { %3866 = vmatpush1.bf16.msra.mxu0 %v9863_v37  ;;  %3907 = vmatpush1.bf16.msra.mxu1 %v9865_v32  ;;  %v3999_v37 = vld [vmem:[%s8954_s28 + $0x1e8] sm:$0xff]  ;;  %v10078_v48 = vcombine.low %v3968_v6, %v3970_v62 }
 0x3a7   : > { %8022 = vst [vmem:[%s9552_s10 + $0x78] sm:$0xff] %v3348_v30  ;;  %v3658_v60 = vpack.c.bf16 %v3348_v30, %v3348_v30  ;;  %v9968_v45 = vcombine.low %v3997_v42, %v3999_v37  ;;  %v9970_v32 = vcombine.high %v3997_v42, %v3999_v37  ;;  %4160 = vmatprep.subr.bf16.mxu0 %v9963_v25  ;;  %v4293_v37 = vld [vmem:[%s8954_s28 + $0x1d0] sm:$0xff] }
 0x3a8   : > { %v10075_v30 = vcombine.high %v3968_v6, %v3970_v62  ;;  %v10091_v8 = vcombine.high %v4293_v37, %v4295_v11  ;;  %v10094_v54 = vcombine.low %v4293_v37, %v4295_v11  ;;  %v11248_v62 = vld [vmem:[#allocation12_spill] sm:$0xff] }
 0x3a9   : > { %3884 = vmatmul.mubr.bf16.vlgmr.msra.gmra.mxu0 %v3658_v60  ;;  %3925 = vmatmul.mubr.bf16.vlgmr.msra.gmra.mxu1 %v3658_v60  ;;  %v3971_v60 = vld [vmem:[%s8954_s28 + $0x28] sm:$0xff] }
 0x3aa   : > { %4192 = vmatprep.mubr.bf16.mxu0 %v11138_v9  ;;  %4233 = vmatprep.mubr.bf16.mxu1 %v11138_v9  ;;  %v10080_v57 = vcombine.low %v3969_v36, %v3971_v60  ;;  %v10082_v42 = vcombine.high %v3969_v36, %v3971_v60  ;;  %v11249_v36 = vld [vmem:[#allocation19_spill] sm:$0xff] }
 0x3ab   : > { %4201 = vmatprep.subr.bf16.mxu1 %v9970_v32  ;;  %4161 = vmatpush1.bf16.msra.mxu0 %v9966_v7  ;;  %v1260_v60 = vadd.f32 %v11249_v36, %v11248_v62 }
 0x3ac   : > { %4202 = vmatpush1.bf16.msra.mxu1 %v9968_v45  ;;  %4162 = vmatprep.subr.bf16.mxu0 %v9979_v3 }
 0x3ad   : > { %4203 = vmatprep.subr.bf16.mxu1 %v9986_v31 }
 0x3af   : > { %4163 = vmatpush1.bf16.msra.mxu0 %v9982_v1 }
 0x3b0   : > { %4204 = vmatpush1.bf16.msra.mxu1 %v9984_v61  ;;  %4164 = vmatprep.subr.bf16.mxu0 %v9995_v4 }
 0x3b1   : > { %4205 = vmatprep.subr.bf16.mxu1 %v10002_v63 }
 0x3b3   : > { %4165 = vmatpush1.bf16.msra.mxu0 %v9998_v20 }
 0x3b4   : > { %4206 = vmatpush1.bf16.msra.mxu1 %v10000_v43  ;;  %4166 = vmatprep.subr.bf16.mxu0 %v10011_v28 }
 0x3b5   : > { %4207 = vmatprep.subr.bf16.mxu1 %v10018_v33 }
 0x3b7   : > { %4167 = vmatpush1.bf16.msra.mxu0 %v10014_v47 }
 0x3b8   : > { %4208 = vmatpush1.bf16.msra.mxu1 %v10016_v44  ;;  %4168 = vmatprep.subr.bf16.mxu0 %v10027_v34 }
 0x3b9   : > { %4209 = vmatprep.subr.bf16.mxu1 %v10034_v46 }
 0x3bb   : > { %4169 = vmatpush1.bf16.msra.mxu0 %v10030_v35 }
 0x3bc   : > { %4210 = vmatpush1.bf16.msra.mxu1 %v10032_v24  ;;  %4170 = vmatprep.subr.bf16.mxu0 %v10043_v2 }
 0x3bd   : > { %4211 = vmatprep.subr.bf16.mxu1 %v10050_v0 }
 0x3bf   : > { %4171 = vmatpush1.bf16.msra.mxu0 %v10046_v49 }
 0x3c0   : > { %4212 = vmatpush1.bf16.msra.mxu1 %v10048_v59  ;;  %4172 = vmatprep.subr.bf16.mxu0 %v10059_v58 }
 0x3c1   : > { %4213 = vmatprep.subr.bf16.mxu1 %v10066_v26 }
 0x3c3   : > { %4173 = vmatpush1.bf16.msra.mxu0 %v10062_v14 }
 0x3c4   : > { %4214 = vmatpush1.bf16.msra.mxu1 %v10064_v12  ;;  %4174 = vmatprep.subr.bf16.mxu0 %v10075_v30 }
 0x3c5   : > { %4215 = vmatprep.subr.bf16.mxu1 %v10082_v42 }
 0x3c7   : > { %4175 = vmatpush1.bf16.msra.mxu0 %v10078_v48 }
 0x3c8   : > { %4216 = vmatpush1.bf16.msra.mxu1 %v10080_v57  ;;  %4457 = vmatprep.subr.bf16.mxu0 %v10091_v8 }
 0x3c9   : > { %4498 = vmatprep.subr.bf16.mxu1 %v10098_v38 }
 0x449   : > { %v3588_v13 = vpop.f32.mrf.mxu0  ;;  %v3629_v23 = vpop.f32.mrf.mxu1 }
 0x44a   : > { %v3636_v39 = vadd.f32 %v3588_v13, %v11246_v10  ;;  %v3638_v15 = vadd.f32 %v3629_v23, %v11247_v21 }
 0x44b   : > { %v3590_v19 = vpop.f32.mrf.mxu0  ;;  %v3631_v29 = vpop.f32.mrf.mxu1 }
 0x44c   : > { %v3640_v51 = vmul.f32 0.5, %v3636_v39  ;;  %v3637_v50 = vadd.f32 %v3590_v19, %v1177_v40  ;;  %v3639_v37 = vadd.f32 %v3631_v29, %v1260_v60  ;;  %v11252_v60 = vld [vmem:[#allocation69_spill] sm:$0xff] }
 0x44d   : > { %v3592_v27 = vpop.f32.mrf.mxu0  ;;  %v3633_v22 = vpop.f32.mrf.mxu1 }
 0x44e   : > { %8574 = vtanh.f32 %v3640_v51  ;;  %v3641_v18 = vmul.f32 0.5, %v3637_v50  ;;  %v3649_v11 = vmul.f32 0.5, %v3639_v37  ;;  %v11250_v27 = vld [vmem:[#allocation68_spill] sm:$0xff] }
 0x44f   : > { %v3593_v5 = vpop.f32.mrf.mxu0  ;;  %v3634_v6 = vpop.f32.mrf.mxu1 }
 0x450   : > { %8576 = vtanh.f32 %v3641_v18  ;;  %v11251_v5 = vld [vmem:[#allocation70_spill] sm:$0xff] }
 0x451   : > { %8578 = vtanh.f32 %v3638_v15 }
 0x452   : > { %8580 = vtanh.f32 %v3649_v11 }
 0x45b   : > { %v8575_v16 = vpop.eup %8574 }
 0x45c   : > { %v3644_v17 = vadd.f32 1.0, %v8575_v16 }
 0x45d   : > { %v8577_v13 = vpop.eup %8576 }
 0x45e   : > { %v3646_v52 = vmul.f32 0.5, %v3644_v17  ;;  %v3645_v53 = vadd.f32 1.0, %v8577_v13  ;;  %v8579_v40 = vpop.eup %8578 }
 0x45f   : > { %v8581_v22 = vpop.eup %8580 }
 0x460   : > { %v3647_v10 = vmul.f32 0.5, %v3645_v53  ;;  %v3654_v39 = vmul.f32 %v8579_v40, %v3646_v52  ;;  %v3651_v36 = vadd.f32 1.0, %v8581_v22  ;;  %v4289_v52 = vld [vmem:[%s8954_s28 + $0x190] sm:$0xff] }
 0x461   : > { %v4291_v40 = vld [vmem:[%s8954_s28 + $0x1b0] sm:$0xff] }
 0x462   : > { %v3653_v23 = vmul.f32 %v3647_v10, %v9913_v41  ;;  %v3652_v13 = vmul.f32 0.5, %v3651_v36  ;;  %v4290_v10 = vld [vmem:[%s8954_s28 + $0x198] sm:$0xff] }
 0x464   : > { %v10109_v19 = vadd.f32 %v3654_v39, %v3653_v23  ;;  %v4292_v39 = vld [vmem:[%s8954_s28 + $0x1b8] sm:$0xff] }
 0x465   : > { %v10123_v22 = vcombine.high %v4290_v10, %v4292_v39 }
 0x466   : > { %8582 = vtanh.f32 %v10109_v19 }
 0x469   : > { %v3885_v51 = vpop.f32.mrf.mxu0  ;;  %v3926_v50 = vpop.f32.mrf.mxu1 }
 0x46a   : > { %v3933_v29 = vadd.f32 %v3885_v51, %v11250_v27  ;;  %v3935_v37 = vadd.f32 %v3926_v50, %v11252_v60  ;;  %v11253_v51 = vld [vmem:[#allocation71_spill] sm:$0xff] }
 0x46b   : > { %v3887_v21 = vpop.f32.mrf.mxu0  ;;  %v3928_v15 = vpop.f32.mrf.mxu1 }
 0x46c   : > { %v3937_v18 = vmul.f32 0.5, %v3933_v29  ;;  %v3934_v6 = vadd.f32 %v3887_v21, %v11251_v5  ;;  %v3936_v27 = vadd.f32 %v3928_v15, %v11253_v51  ;;  %v10121_v29 = vcombine.high %v4289_v52, %v4291_v40  ;;  %v4285_v21 = vld [vmem:[%s8954_s28 + $0x150] sm:$0xff]  ;;  %v4286_v5 = vld [vmem:[%s8954_s28 + $0x158] sm:$0xff] }
 0x46d   : > { %v3889_v62 = vpop.f32.mrf.mxu0  ;;  %v3930_v41 = vpop.f32.mrf.mxu1  ;;  %v10131_v15 = vcombine.low %v4289_v52, %v4291_v40 }
 0x46e   : > { %8584 = vtanh.f32 %v3937_v18  ;;  %v3938_v11 = vmul.f32 0.5, %v3934_v6  ;;  %v4287_v18 = vld [vmem:[%s8954_s28 + $0x170] sm:$0xff]  ;;  %v4288_v6 = vld [vmem:[%s8954_s28 + $0x178] sm:$0xff]  ;;  %v10133_v62 = vcombine.low %v4290_v10, %v4292_v39  ;;  %v3946_v41 = vmul.f32 0.5, %v3936_v27 }
 0x46f   : > { %v3890_v16 = vpop.f32.mrf.mxu0  ;;  %v3931_v17 = vpop.f32.mrf.mxu1  ;;  %v10137_v36 = vcombine.high %v4285_v21, %v4287_v18  ;;  %v10139_v60 = vcombine.high %v4286_v5, %v4288_v6  ;;  %v10149_v40 = vcombine.low %v4285_v21, %v4287_v18  ;;  %v10151_v10 = vcombine.low %v4286_v5, %v4288_v6  ;;  %v4278_v21 = vld [vmem:[%s8954_s28 + $0xd8] sm:$0xff] }
 0x470   : > { %8586 = vtanh.f32 %v3938_v11  ;;  %11254 = vst [vmem:[#allocation3_spill] sm:$0xff] %v10133_v62  ;;  %v4283_v11 = vld [vmem:[%s8954_s28 + $0x130] sm:$0xff]  ;;  %v4282_v17 = vld [vmem:[%s8954_s28 + $0x118] sm:$0xff] }
 0x471   : > { %8588 = vtanh.f32 %v3935_v37  ;;  %11255 = vst [vmem:[#allocation11_spill] sm:$0xff] %v10137_v36  ;;  %11256 = vst [vmem:[#allocation14_spill] sm:$0xff] %v10139_v60  ;;  %v4281_v37 = vld [vmem:[%s8954_s28 + $0x110] sm:$0xff]  ;;  %v4280_v18 = vld [vmem:[%s8954_s28 + $0xf8] sm:$0xff] }
 0x472   : > { %v10153_v39 = vcombine.high %v4281_v37, %v4283_v11  ;;  %8590 = vtanh.f32 %v3946_v41  ;;  %v10165_v41 = vcombine.low %v4281_v37, %v4283_v11  ;;  %v4274_v37 = vld [vmem:[%s8954_s28 + $0x98] sm:$0xff] }
 0x473   : > { %v8583_v53 = vpop.eup %8582  ;;  %v4276_v11 = vld [vmem:[%s8954_s28 + $0xb8] sm:$0xff] }
 0x474   : > { %v3657_v23 = vmul.f32 %v8583_v53, %v3652_v13  ;;  %v4284_v13 = vld [vmem:[%s8954_s28 + $0x138] sm:$0xff]  ;;  %11257 = vst [vmem:[#allocation13_spill] sm:$0xff] %v10153_v39  ;;  %11259 = vst [vmem:[#allocation72_spill] sm:$0xff] %v10165_v41 }
 0x475   : > { %v10157_v27 = vcombine.high %v4282_v17, %v4284_v13 }
 0x476   : > { %8087 = vst [vmem:[%s9552_s10 + $0x30] sm:$0xff] %v3657_v23  ;;  %v3967_v50 = vpack.c.bf16 %v3657_v23, %v3657_v23 }
 0x477   : > { %11258 = vst [vmem:[#allocation15_spill] sm:$0xff] %v10157_v27 }
 0x478   : > { %4193 = vmatmul.mubr.bf16.vlgmr.msra.gmra.mxu0 %v3967_v50  ;;  %4234 = vmatmul.mubr.bf16.vlgmr.msra.gmra.mxu1 %v3967_v50  ;;  %v4277_v50 = vld [vmem:[%s8954_s28 + $0xd0] sm:$0xff] }
 0x479   : > { %4458 = vmatpush1.bf16.msra.mxu0 %v10094_v54  ;;  %4499 = vmatpush1.bf16.msra.mxu1 %v10096_v56 }
 0x47a   : > { %4459 = vmatprep.subr.bf16.mxu0 %v10121_v29  ;;  %4500 = vmatprep.subr.bf16.mxu1 %v10123_v22 }
 0x47b   : > { %v8585_v16 = vpop.eup %8584  ;;  %4489 = vmatprep.mubr.bf16.mxu0 %v11138_v9  ;;  %4530 = vmatprep.mubr.bf16.mxu1 %v11138_v9 }
 0x47c   : > { %v3941_v52 = vadd.f32 1.0, %v8585_v16 }
 0x47d   : > { %v8587_v53 = vpop.eup %8586  ;;  %4460 = vmatpush1.bf16.msra.mxu0 %v10131_v15  ;;  %4501 = vmatpush1.bf16.msra.mxu1 %v10133_v62  ;;  %v4279_v62 = vld [vmem:[%s8954_s28 + $0xf0] sm:$0xff] }
 0x47e   : > { %v3943_v23 = vmul.f32 0.5, %v3941_v52  ;;  %v3942_v51 = vadd.f32 1.0, %v8587_v53  ;;  %4461 = vmatprep.subr.bf16.mxu0 %v10137_v36  ;;  %4502 = vmatprep.subr.bf16.mxu1 %v10139_v60  ;;  %v8589_v16 = vpop.eup %8588  ;;  %v10167_v52 = vcombine.low %v4282_v17, %v4284_v13  ;;  %v10172_v60 = vcombine.high %v4277_v50, %v4279_v62 }
 0x47f   : > { %v10174_v36 = vcombine.high %v4278_v21, %v4280_v18  ;;  %v10186_v13 = vcombine.low %v4278_v21, %v4280_v18  ;;  %v10203_v18 = vcombine.low %v4274_v37, %v4276_v11 }
 0x480   : > { %v3944_v5 = vmul.f32 0.5, %v3942_v51  ;;  %v3951_v6 = vmul.f32 %v8589_v16, %v3943_v23  ;;  %11260 = vst [vmem:[#allocation74_spill] sm:$0xff] %v10167_v52  ;;  %11261 = vst [vmem:[#allocation73_spill] sm:$0xff] %v10172_v60  ;;  %v4273_v23 = vld [vmem:[%s8954_s28 + $0x90] sm:$0xff] }
 0x481   : > { %4462 = vmatpush1.bf16.msra.mxu0 %v10149_v40  ;;  %4503 = vmatpush1.bf16.msra.mxu1 %v10151_v10  ;;  %11262 = vst [vmem:[#allocation75_spill] sm:$0xff] %v10174_v36  ;;  %v4275_v51 = vld [vmem:[%s8954_s28 + $0xb0] sm:$0xff] }
 0x482   : > { %v3950_v53 = vmul.f32 %v3944_v5, %v9936_v55  ;;  %4463 = vmatprep.subr.bf16.mxu0 %v10153_v39  ;;  %4504 = vmatprep.subr.bf16.mxu1 %v10157_v27  ;;  %v10184_v55 = vcombine.low %v4277_v50, %v4279_v62  ;;  %v10191_v16 = vcombine.high %v4273_v23, %v4275_v51  ;;  %v4270_v62 = vld [vmem:[%s8954_s28 + $0x58] sm:$0xff]  ;;  %v4267_v27 = vld [vmem:[%s8954_s28 + $0x30] sm:$0xff] }
 0x483   : > { %v10193_v5 = vcombine.high %v4274_v37, %v4276_v11  ;;  %v4272_v50 = vld [vmem:[%s8954_s28 + $0x78] sm:$0xff]  ;;  %v10201_v21 = vcombine.low %v4273_v23, %v4275_v51 }
 0x484   : > { %v10180_v17 = vadd.f32 %v3951_v6, %v3950_v53  ;;  %v4269_v6 = vld [vmem:[%s8954_s28 + $0x50] sm:$0xff]  ;;  %v4266_v39 = vld [vmem:[%s8954_s28 + $0x18] sm:$0xff]  ;;  %v10219_v51 = vcombine.low %v4270_v62, %v4272_v50 }
 0x485   : > { %4464 = vmatpush1.bf16.msra.mxu0 %v10165_v41  ;;  %4505 = vmatpush1.bf16.msra.mxu1 %v10167_v52  ;;  %11264 = vst [vmem:[#allocation5_spill] sm:$0xff] %v10193_v5  ;;  %v4271_v53 = vld [vmem:[%s8954_s28 + $0x70] sm:$0xff]  ;;  %11265 = vst [vmem:[#allocation78_spill] sm:$0xff] %v10201_v21  ;;  %v8591_v41 = vpop.eup %8590 }
 0x486   : > { %11263 = vst [vmem:[#allocation4_spill] sm:$0xff] %v10180_v17  ;;  %8592 = vtanh.f32 %v10180_v17  ;;  %4465 = vmatprep.subr.bf16.mxu0 %v10172_v60  ;;  %4506 = vmatprep.subr.bf16.mxu1 %v10174_v36  ;;  %v10207_v36 = vcombine.high %v4269_v6, %v4271_v53  ;;  %v10209_v60 = vcombine.high %v4270_v62, %v4272_v50  ;;  %v4265_v52 = vld [vmem:[%s8954_s28 + $0x10] sm:$0xff]  ;;  %v4268_v17 = vld [vmem:[%s8954_s28 + $0x38] sm:$0xff]  ;;  %v3948_v37 = vadd.f32 1.0, %v8591_v41 }
 0x487   : > { %v10217_v23 = vcombine.low %v4269_v6, %v4271_v53  ;;  %v10223_v11 = vcombine.high %v4265_v52, %v4267_v27  ;;  %v10231_v6 = vcombine.low %v4266_v39, %v4268_v17 }
 0x488   : > { %v3949_v53 = vmul.f32 0.5, %v3948_v37 }
 0x489   : > { %4466 = vmatpush1.bf16.msra.mxu0 %v10184_v55  ;;  %4507 = vmatpush1.bf16.msra.mxu1 %v10186_v13 }
 0x48a   : > { %4467 = vmatprep.subr.bf16.mxu0 %v10191_v16  ;;  %4508 = vmatprep.subr.bf16.mxu1 %v10193_v5  ;;  %v10225_v5 = vcombine.high %v4266_v39, %v4268_v17  ;;  %v11271_v17 = vld [vmem:[#allocation66_spill] sm:$0xff] }
 0x48d   : > { %4468 = vmatpush1.bf16.msra.mxu0 %v10201_v21  ;;  %4509 = vmatpush1.bf16.msra.mxu1 %v10203_v18  ;;  %v10229_v21 = vcombine.low %v4265_v52, %v4267_v27 }
 0x48e   : > { %4469 = vmatprep.subr.bf16.mxu0 %v10207_v36  ;;  %4510 = vmatprep.subr.bf16.mxu1 %v10209_v60 }
 0x491   : > { %4470 = vmatpush1.bf16.msra.mxu0 %v10217_v23  ;;  %4511 = vmatpush1.bf16.msra.mxu1 %v10219_v51 }
 0x492   : > { %4471 = vmatprep.subr.bf16.mxu0 %v10223_v11  ;;  %4512 = vmatprep.subr.bf16.mxu1 %v10225_v5 }
 0x493   : > { %v8593_v41 = vpop.eup %8592 }
 0x494   : > { %v3954_v62 = vmul.f32 %v8593_v41, %v3949_v53 }
 0x495   : > { %4472 = vmatpush1.bf16.msra.mxu0 %v10229_v21  ;;  %4513 = vmatpush1.bf16.msra.mxu1 %v10231_v6 }
 0x496   : > { %8088 = vst [vmem:[%s9552_s10 + $0x68] sm:$0xff] %v3954_v62  ;;  %v4264_v50 = vpack.c.bf16 %v3954_v62, %v3954_v62  ;;  %4766 = vmatprep.subr.bf16.mxu0 %v9963_v25  ;;  %4807 = vmatprep.subr.bf16.mxu1 %v9970_v32 }
 0x498   : > { %4490 = vmatmul.mubr.bf16.vlgmr.msra.gmra.mxu0 %v4264_v50  ;;  %4531 = vmatmul.mubr.bf16.vlgmr.msra.gmra.mxu1 %v4264_v50 }
 0x499   : > { %4767 = vmatpush1.bf16.msra.mxu0 %v9966_v7  ;;  %4808 = vmatpush1.bf16.msra.mxu1 %v9968_v45  ;;  %v11266_v45 = vld [vmem:[#allocation20_spill] sm:$0xff] }
 0x49a   : > { %4768 = vmatprep.subr.bf16.mxu0 %v9979_v3  ;;  %4809 = vmatprep.subr.bf16.mxu1 %v9986_v31  ;;  %v11267_v31 = vld [vmem:[#allocation22_spill] sm:$0xff] }
 0x49b   : > { %4798 = vmatprep.mubr.bf16.mxu0 %v11138_v9  ;;  %4839 = vmatprep.mubr.bf16.mxu1 %v11138_v9 }
 0x49d   : > { %4769 = vmatpush1.bf16.msra.mxu0 %v9982_v1  ;;  %4810 = vmatpush1.bf16.msra.mxu1 %v9984_v61 }
 0x49e   : > { %4770 = vmatprep.subr.bf16.mxu0 %v9995_v4  ;;  %4811 = vmatprep.subr.bf16.mxu1 %v10002_v63  ;;  %v11268_v63 = vld [vmem:[#allocation21_spill] sm:$0xff] }
 0x4a1   : > { %4771 = vmatpush1.bf16.msra.mxu0 %v9998_v20  ;;  %4812 = vmatpush1.bf16.msra.mxu1 %v10000_v43 }
 0x4a2   : > { %4772 = vmatprep.subr.bf16.mxu0 %v10011_v28  ;;  %4813 = vmatprep.subr.bf16.mxu1 %v10018_v33 }
 0x4a5   : > { %4773 = vmatpush1.bf16.msra.mxu0 %v10014_v47  ;;  %4814 = vmatpush1.bf16.msra.mxu1 %v10016_v44 }
 0x4a6   : > { %4774 = vmatprep.subr.bf16.mxu0 %v10027_v34  ;;  %4815 = vmatprep.subr.bf16.mxu1 %v10034_v46  ;;  %v11269_v34 = vld [vmem:[#allocation23_spill] sm:$0xff] }
 0x4a9   : > { %4775 = vmatpush1.bf16.msra.mxu0 %v10030_v35  ;;  %4816 = vmatpush1.bf16.msra.mxu1 %v10032_v24 }
 0x4aa   : > { %4776 = vmatprep.subr.bf16.mxu0 %v10043_v2  ;;  %4817 = vmatprep.subr.bf16.mxu1 %v10050_v0 }
 0x4ad   : > { %4777 = vmatpush1.bf16.msra.mxu0 %v10046_v49  ;;  %4818 = vmatpush1.bf16.msra.mxu1 %v10048_v59 }
 0x4ae   : > { %4778 = vmatprep.subr.bf16.mxu0 %v10059_v58  ;;  %4819 = vmatprep.subr.bf16.mxu1 %v10066_v26 }
 0x4b1   : > { %4779 = vmatpush1.bf16.msra.mxu0 %v10062_v14  ;;  %4820 = vmatpush1.bf16.msra.mxu1 %v10064_v12 }
 0x4b2   : > { %4780 = vmatprep.subr.bf16.mxu0 %v10075_v30  ;;  %4821 = vmatprep.subr.bf16.mxu1 %v10082_v42  ;;  %v11270_v42 = vld [vmem:[#allocation64_spill] sm:$0xff] }
 0x4b5   : > { %4781 = vmatpush1.bf16.msra.mxu0 %v10078_v48  ;;  %4822 = vmatpush1.bf16.msra.mxu1 %v10080_v57 }
 0x4b6   : > { %5063 = vmatprep.subr.bf16.mxu0 %v10091_v8  ;;  %5104 = vmatprep.subr.bf16.mxu1 %v10098_v38 }
 0x538   : > { %v4194_v25 = vpop.f32.mrf.mxu0  ;;  %v4235_v7 = vpop.f32.mrf.mxu1 }
 0x539   : > { %v4242_v32 = vadd.f32 %v4194_v25, %v11266_v45  ;;  %v4244_v28 = vadd.f32 %v4235_v7, %v11268_v63 }
 0x53a   : > { %v4196_v3 = vpop.f32.mrf.mxu0  ;;  %v4237_v1 = vpop.f32.mrf.mxu1 }
 0x53b   : > { %v4246_v61 = vmul.f32 0.5, %v4242_v32  ;;  %v4243_v4 = vadd.f32 %v4196_v3, %v11267_v31  ;;  %v4245_v35 = vadd.f32 %v4237_v1, %v11269_v34 }
 0x53c   : > { %v4198_v20 = vpop.f32.mrf.mxu0  ;;  %v4239_v43 = vpop.f32.mrf.mxu1 }
 0x53d   : > { %8594 = vtanh.f32 %v4246_v61  ;;  %v4247_v47 = vmul.f32 0.5, %v4243_v4  ;;  %v4255_v24 = vmul.f32 0.5, %v4245_v35  ;;  %v11273_v61 = vld [vmem:[#allocation67_spill] sm:$0xff]  ;;  %v11277_v35 = vld [vmem:[#allocation4_spill] sm:$0xff] }
 0x53e   : > { %v4199_v44 = vpop.f32.mrf.mxu0  ;;  %v4240_v33 = vpop.f32.mrf.mxu1 }
 0x53f   : > { %8596 = vtanh.f32 %v4247_v47  ;;  %v11274_v47 = vld [vmem:[#allocation3_spill] sm:$0xff]  ;;  %v11276_v33 = vld [vmem:[#allocation14_spill] sm:$0xff] }
 0x540   : > { %8598 = vtanh.f32 %v4244_v28 }
 0x541   : > { %8600 = vtanh.f32 %v4255_v24 }
 0x54a   : > { %v8595_v46 = vpop.eup %8594 }
 0x54b   : > { %v4250_v2 = vadd.f32 1.0, %v8595_v46  ;;  %v11278_v46 = vld [vmem:[#allocation13_spill] sm:$0xff] }
 0x54c   : > { %v8597_v49 = vpop.eup %8596 }
 0x54d   : > { %v4252_v59 = vmul.f32 0.5, %v4250_v2  ;;  %v4251_v0 = vadd.f32 1.0, %v8597_v49  ;;  %v8599_v58 = vpop.eup %8598  ;;  %v11280_v49 = vld [vmem:[#allocation72_spill] sm:$0xff] }
 0x54e   : > { %v8601_v38 = vpop.eup %8600 }
 0x54f   : > { %v4253_v14 = vmul.f32 0.5, %v4251_v0  ;;  %v4260_v12 = vmul.f32 %v8599_v58, %v4252_v59  ;;  %v4257_v62 = vadd.f32 1.0, %v8601_v38  ;;  %v11281_v59 = vld [vmem:[#allocation74_spill] sm:$0xff]  ;;  %v11282_v0 = vld [vmem:[#allocation73_spill] sm:$0xff]  ;;  %v11283_v58 = vld [vmem:[#allocation75_spill] sm:$0xff] }
 0x551   : > { %v4259_v26 = vmul.f32 %v4253_v14, %v10109_v19  ;;  %v11272_v19 = vld [vmem:[#allocation65_spill] sm:$0xff]  ;;  %v4258_v32 = vmul.f32 0.5, %v4257_v62  ;;  %v11285_v14 = vld [vmem:[#allocation78_spill] sm:$0xff] }
 0x553   : > { %v10279_v30 = vadd.f32 %v4260_v12, %v4259_v26  ;;  %v5202_v26 = vld [vmem:[%s8954_s28 + $0x180] sm:$0xff] }
 0x555   : > { %8602 = vtanh.f32 %v10279_v30 }
 0x558   : > { %v4491_v48 = vpop.f32.mrf.mxu0  ;;  %v4532_v57 = vpop.f32.mrf.mxu1 }
 0x559   : > { %v4539_v8 = vadd.f32 %v4491_v48, %v11270_v42  ;;  %v4541_v50 = vadd.f32 %v4532_v57, %v11272_v19  ;;  %v5204_v48 = vld [vmem:[%s8954_s28 + $0x1a0] sm:$0xff]  ;;  %v5203_v57 = vld [vmem:[%s8954_s28 + $0x188] sm:$0xff] }
 0x55a   : > { %v4493_v39 = vpop.f32.mrf.mxu0  ;;  %v4534_v27 = vpop.f32.mrf.mxu1  ;;  %v10345_v42 = vcombine.high %v5202_v26, %v5204_v48  ;;  %v10348_v38 = vcombine.low %v5202_v26, %v5204_v48  ;;  %v5505_v26 = vld [vmem:[%s8954_s28 + $0x1f0] sm:$0xff]  ;;  %v5504_v48 = vld [vmem:[%s8954_s28 + $0x1d8] sm:$0xff] }
 0x55b   : > { %v4543_v52 = vmul.f32 0.5, %v4539_v8  ;;  %v4540_v37 = vadd.f32 %v4493_v39, %v11271_v17  ;;  %v4542_v31 = vadd.f32 %v4534_v27, %v11273_v61  ;;  %v5205_v8 = vld [vmem:[%s8954_s28 + $0x1a8] sm:$0xff]  ;;  %v5200_v17 = vld [vmem:[%s8954_s28 + $0x160] sm:$0xff] }
 0x55c   : > { %v4495_v53 = vpop.f32.mrf.mxu0  ;;  %v4536_v41 = vpop.f32.mrf.mxu1  ;;  %v10350_v39 = vcombine.low %v5203_v57, %v5205_v8  ;;  %v10352_v27 = vcombine.high %v5203_v57, %v5205_v8  ;;  %v5506_v8 = vld [vmem:[%s8954_s28 + $0x1f8] sm:$0xff] }
 0x55d   : > { %8604 = vtanh.f32 %v4543_v52  ;;  %v4544_v25 = vmul.f32 0.5, %v4540_v37  ;;  %v4552_v20 = vmul.f32 0.5, %v4542_v31  ;;  %v5198_v52 = vld [vmem:[%s8954_s28 + $0x140] sm:$0xff]  ;;  %v5199_v37 = vld [vmem:[%s8954_s28 + $0x148] sm:$0xff] }
 0x55e   : > { %v4496_v7 = vpop.f32.mrf.mxu0  ;;  %v4537_v45 = vpop.f32.mrf.mxu1  ;;  %v10361_v53 = vcombine.high %v5198_v52, %v5200_v17  ;;  %v5201_v41 = vld [vmem:[%s8954_s28 + $0x168] sm:$0xff]  ;;  %v10364_v62 = vcombine.low %v5198_v52, %v5200_v17  ;;  %v10462_v17 = vcombine.low %v5504_v48, %v5506_v8 }
 0x55f   : > { %8606 = vtanh.f32 %v4544_v25  ;;  %v10366_v19 = vcombine.low %v5199_v37, %v5201_v41  ;;  %v5194_v25 = vld [vmem:[%s8954_s28 + $0x100] sm:$0xff]  ;;  %v5195_v45 = vld [vmem:[%s8954_s28 + $0x108] sm:$0xff] }
 0x560   : > { %8608 = vtanh.f32 %v4541_v50  ;;  %v10368_v50 = vcombine.high %v5199_v37, %v5201_v41  ;;  %v5196_v7 = vld [vmem:[%s8954_s28 + $0x120] sm:$0xff]  ;;  %v10464_v37 = vcombine.high %v5504_v48, %v5506_v8 }
 0x561   : > { %8610 = vtanh.f32 %v4552_v20  ;;  %v5192_v20 = vld [vmem:[%s8954_s28 + $0xe0] sm:$0xff] }
 0x562   : > { %v8603_v3 = vpop.eup %8602 }
 0x563   : > { %v4263_v1 = vmul.f32 %v8603_v3, %v4258_v32  ;;  %v10377_v32 = vcombine.high %v5194_v25, %v5196_v7  ;;  %v5197_v3 = vld [vmem:[%s8954_s28 + $0x128] sm:$0xff] }
 0x564   : > { %v10382_v61 = vcombine.low %v5195_v45, %v5197_v3  ;;  %v10384_v31 = vcombine.high %v5195_v45, %v5197_v3 }
 0x565   : > { %8153 = vst [vmem:[%s9552_s10 + $0x40] sm:$0xff] %v4263_v1  ;;  %v4573_v4 = vpack.c.bf16 %v4263_v1, %v4263_v1  ;;  %v10380_v1 = vcombine.low %v5194_v25, %v5196_v7  ;;  %v11286_v7 = vld [vmem:[#allocation24_spill] sm:$0xff] }
 0x567   : > { %4799 = vmatmul.mubr.bf16.vlgmr.msra.gmra.mxu0 %v4573_v4  ;;  %4840 = vmatmul.mubr.bf16.vlgmr.msra.gmra.mxu1 %v4573_v4  ;;  %v5190_v4 = vld [vmem:[%s8954_s28 + $0xc0] sm:$0xff] }
 0x568   : > { %5064 = vmatpush1.bf16.msra.mxu0 %v10094_v54  ;;  %5105 = vmatpush1.bf16.msra.mxu1 %v10096_v56  ;;  %v11275_v56 = vld [vmem:[#allocation11_spill] sm:$0xff] }
 0x569   : > { %5065 = vmatprep.subr.bf16.mxu0 %v10121_v29  ;;  %5106 = vmatprep.subr.bf16.mxu1 %v10123_v22 }
 0x56a   : > { %v8605_v43 = vpop.eup %8604  ;;  %5095 = vmatprep.mubr.bf16.mxu0 %v11138_v9  ;;  %5136 = vmatprep.mubr.bf16.mxu1 %v11138_v9 }
 0x56b   : > { %v4547_v63 = vadd.f32 1.0, %v8605_v43  ;;  %v5191_v43 = vld [vmem:[%s8954_s28 + $0xc8] sm:$0xff] }
 0x56c   : > { %v8607_v28 = vpop.eup %8606  ;;  %5066 = vmatpush1.bf16.msra.mxu0 %v10131_v15  ;;  %5107 = vmatpush1.bf16.msra.mxu1 %v11274_v47  ;;  %v11279_v15 = vld [vmem:[#allocation15_spill] sm:$0xff]  ;;  %v10396_v47 = vcombine.low %v5190_v4, %v5192_v20 }
 0x56d   : > { %v4549_v44 = vmul.f32 0.5, %v4547_v63  ;;  %v4548_v54 = vadd.f32 1.0, %v8607_v28  ;;  %5067 = vmatprep.subr.bf16.mxu0 %v11275_v56  ;;  %5108 = vmatprep.subr.bf16.mxu1 %v11276_v33  ;;  %v8609_v29 = vpop.eup %8608  ;;  %v10393_v63 = vcombine.high %v5190_v4, %v5192_v20  ;;  %v5193_v28 = vld [vmem:[%s8954_s28 + $0xe8] sm:$0xff]  ;;  %v5186_v56 = vld [vmem:[%s8954_s28 + $0x80] sm:$0xff] }
 0x56e   : > { %v5188_v33 = vld [vmem:[%s8954_s28 + $0xa0] sm:$0xff] }
 0x56f   : > { %v4550_v22 = vmul.f32 0.5, %v4548_v54  ;;  %v4557_v34 = vmul.f32 %v8609_v29, %v4549_v44  ;;  %v10398_v44 = vcombine.low %v5191_v43, %v5193_v28  ;;  %v10400_v54 = vcombine.high %v5191_v43, %v5193_v28  ;;  %v5187_v29 = vld [vmem:[%s8954_s28 + $0x88] sm:$0xff]  ;;  %v11287_v43 = vld [vmem:[#allocation26_spill] sm:$0xff] }
 0x570   : > { %5068 = vmatpush1.bf16.msra.mxu0 %v10149_v40  ;;  %5109 = vmatpush1.bf16.msra.mxu1 %v10151_v10  ;;  %v11284_v40 = vld [vmem:[#allocation5_spill] sm:$0xff]  ;;  %v8611_v10 = vpop.eup %8610 }
 0x571   : > { %v4556_v24 = vmul.f32 %v4550_v22, %v11277_v35  ;;  %5069 = vmatprep.subr.bf16.mxu0 %v11278_v46  ;;  %5110 = vmatprep.subr.bf16.mxu1 %v11279_v15  ;;  %v4554_v12 = vadd.f32 1.0, %v8611_v10  ;;  %v10409_v22 = vcombine.high %v5186_v56, %v5188_v33  ;;  %v10412_v35 = vcombine.low %v5186_v56, %v5188_v33  ;;  %v5182_v15 = vld [vmem:[%s8954_s28 + $0x40] sm:$0xff] }
 0x573   : > { %v10302_v2 = vadd.f32 %v4557_v34, %v4556_v24  ;;  %v5189_v34 = vld [vmem:[%s8954_s28 + $0xa8] sm:$0xff] }
 0x574   : > { %5070 = vmatpush1.bf16.msra.mxu0 %v11280_v49  ;;  %5111 = vmatpush1.bf16.msra.mxu1 %v11281_v59  ;;  %v10414_v24 = vcombine.low %v5187_v29, %v5189_v34  ;;  %v10416_v46 = vcombine.high %v5187_v29, %v5189_v34  ;;  %v5184_v49 = vld [vmem:[%s8954_s28 + $0x60] sm:$0xff]  ;;  %v5183_v59 = vld [vmem:[%s8954_s28 + $0x48] sm:$0xff]  ;;  %v11288_v29 = vld [vmem:[#allocation25_spill] sm:$0xff] }
 0x575   : > { %8612 = vtanh.f32 %v10302_v2  ;;  %5071 = vmatprep.subr.bf16.mxu0 %v11282_v0  ;;  %5112 = vmatprep.subr.bf16.mxu1 %v11283_v58  ;;  %v10425_v0 = vcombine.high %v5182_v15, %v5184_v49  ;;  %v5185_v58 = vld [vmem:[%s8954_s28 + $0x68] sm:$0xff] }
 0x576   : > { %v10430_v10 = vcombine.low %v5183_v59, %v5185_v58 }
 0x578   : > { %5072 = vmatpush1.bf16.msra.mxu0 %v10184_v55  ;;  %5113 = vmatpush1.bf16.msra.mxu1 %v10186_v13  ;;  %v4555_v55 = vmul.f32 0.5, %v4554_v12  ;;  %v5178_v12 = vld [vmem:[%s8954_s28] sm:$0xff] }
 0x579   : > { %5073 = vmatprep.subr.bf16.mxu0 %v10191_v16  ;;  %5114 = vmatprep.subr.bf16.mxu1 %v11284_v40  ;;  %v10428_v40 = vcombine.low %v5182_v15, %v5184_v49 }
 0x57c   : > { %5074 = vmatpush1.bf16.msra.mxu0 %v11285_v14  ;;  %5115 = vmatpush1.bf16.msra.mxu1 %v10203_v18  ;;  %v5207_v18 = vld [vmem:[%s8954_s28 + $0x1c8] sm:$0xff]  ;;  %v10432_v14 = vcombine.high %v5183_v59, %v5185_v58  ;;  %v11289_v58 = vld [vmem:[#allocation27_spill] sm:$0xff] }
 0x57d   : > { %5075 = vmatprep.subr.bf16.mxu0 %v10207_v36  ;;  %5116 = vmatprep.subr.bf16.mxu1 %v10209_v60  ;;  %v5206_v60 = vld [vmem:[%s8954_s28 + $0x1c0] sm:$0xff] }
 0x580   : > { %5076 = vmatpush1.bf16.msra.mxu0 %v10217_v23  ;;  %5117 = vmatpush1.bf16.msra.mxu1 %v10219_v51 }
 0x581   : > { %5077 = vmatprep.subr.bf16.mxu0 %v10223_v11  ;;  %5118 = vmatprep.subr.bf16.mxu1 %v10225_v5  ;;  %v5208_v5 = vld [vmem:[%s8954_s28 + $0x1e0] sm:$0xff] }
 0x582   : > { %v8613_v13 = vpop.eup %8612  ;;  %v10329_v23 = vcombine.high %v5206_v60, %v5208_v5  ;;  %v10332_v51 = vcombine.low %v5206_v60, %v5208_v5 }
 0x583   : > { %v4560_v16 = vmul.f32 %v8613_v13, %v4555_v55  ;;  %v5180_v55 = vld [vmem:[%s8954_s28 + $0x20] sm:$0xff]  ;;  %v5179_v13 = vld [vmem:[%s8954_s28 + $0x8] sm:$0xff] }
 0x584   : > { %5078 = vmatpush1.bf16.msra.mxu0 %v10229_v21  ;;  %5119 = vmatpush1.bf16.msra.mxu1 %v10231_v6  ;;  %v5209_v21 = vld [vmem:[%s8954_s28 + $0x1e8] sm:$0xff]  ;;  %v10444_v60 = vcombine.low %v5178_v12, %v5180_v55 }
 0x585   : > { %8154 = vst [vmem:[%s9552_s10 + $0x58] sm:$0xff] %v4560_v16  ;;  %v4870_v36 = vpack.c.bf16 %v4560_v16, %v4560_v16  ;;  %v10334_v11 = vcombine.low %v5207_v18, %v5209_v21  ;;  %v10336_v6 = vcombine.high %v5207_v18, %v5209_v21  ;;  %5370 = vmatprep.subr.bf16.mxu0 %v10329_v23  ;;  %v5503_v21 = vld [vmem:[%s8954_s28 + $0x1d0] sm:$0xff] }
 0x586   : > { %v10441_v16 = vcombine.high %v5178_v12, %v5180_v55  ;;  %v10457_v57 = vcombine.high %v5503_v21, %v5505_v26  ;;  %v10460_v52 = vcombine.low %v5503_v21, %v5505_v26 }
 0x587   : > { %5096 = vmatmul.mubr.bf16.vlgmr.msra.gmra.mxu0 %v4870_v36  ;;  %5137 = vmatmul.mubr.bf16.vlgmr.msra.gmra.mxu1 %v4870_v36  ;;  %v5181_v36 = vld [vmem:[%s8954_s28 + $0x28] sm:$0xff] }
 0x588   : > { %5402 = vmatprep.mubr.bf16.mxu0 %v11138_v9  ;;  %5443 = vmatprep.mubr.bf16.mxu1 %v11138_v9  ;;  %v10446_v5 = vcombine.low %v5179_v13, %v5181_v36  ;;  %v10448_v18 = vcombine.high %v5179_v13, %v5181_v36 }
 0x589   : > { %5411 = vmatprep.subr.bf16.mxu1 %v10336_v6  ;;  %5371 = vmatpush1.bf16.msra.mxu0 %v10332_v51 }
 0x58a   : > { %5412 = vmatpush1.bf16.msra.mxu1 %v10334_v11  ;;  %5372 = vmatprep.subr.bf16.mxu0 %v10345_v42 }
 0x58b   : > { %5413 = vmatprep.subr.bf16.mxu1 %v10352_v27 }
 0x58d   : > { %5373 = vmatpush1.bf16.msra.mxu0 %v10348_v38 }
 0x58e   : > { %5414 = vmatpush1.bf16.msra.mxu1 %v10350_v39  ;;  %5374 = vmatprep.subr.bf16.mxu0 %v10361_v53 }
 0x58f   : > { %5415 = vmatprep.subr.bf16.mxu1 %v10368_v50 }
 0x591   : > { %5375 = vmatpush1.bf16.msra.mxu0 %v10364_v62 }
 0x592   : > { %5416 = vmatpush1.bf16.msra.mxu1 %v10366_v19  ;;  %5376 = vmatprep.subr.bf16.mxu0 %v10377_v32 }
 0x593   : > { %5417 = vmatprep.subr.bf16.mxu1 %v10384_v31 }
 0x595   : > { %5377 = vmatpush1.bf16.msra.mxu0 %v10380_v1 }
 0x596   : > { %5418 = vmatpush1.bf16.msra.mxu1 %v10382_v61  ;;  %5378 = vmatprep.subr.bf16.mxu0 %v10393_v63 }
 0x597   : > { %5419 = vmatprep.subr.bf16.mxu1 %v10400_v54 }
 0x599   : > { %5379 = vmatpush1.bf16.msra.mxu0 %v10396_v47 }
 0x59a   : > { %5420 = vmatpush1.bf16.msra.mxu1 %v10398_v44  ;;  %5380 = vmatprep.subr.bf16.mxu0 %v10409_v22 }
 0x59b   : > { %5421 = vmatprep.subr.bf16.mxu1 %v10416_v46 }
 0x59d   : > { %5381 = vmatpush1.bf16.msra.mxu0 %v10412_v35 }
 0x59e   : > { %5422 = vmatpush1.bf16.msra.mxu1 %v10414_v24  ;;  %5382 = vmatprep.subr.bf16.mxu0 %v10425_v0 }
 0x59f   : > { %5423 = vmatprep.subr.bf16.mxu1 %v10432_v14 }
 0x5a1   : > { %5383 = vmatpush1.bf16.msra.mxu0 %v10428_v40 }
 0x5a2   : > { %5424 = vmatpush1.bf16.msra.mxu1 %v10430_v10  ;;  %5384 = vmatprep.subr.bf16.mxu0 %v10441_v16 }
 0x5a3   : > { %5425 = vmatprep.subr.bf16.mxu1 %v10448_v18 }
 0x5a5   : > { %5385 = vmatpush1.bf16.msra.mxu0 %v10444_v60 }
 0x5a6   : > { %5426 = vmatpush1.bf16.msra.mxu1 %v10446_v5  ;;  %5667 = vmatprep.subr.bf16.mxu0 %v10457_v57 }
 0x5a7   : > { %5708 = vmatprep.subr.bf16.mxu1 %v10464_v37 }
 0x627   : > { %v4800_v41 = vpop.f32.mrf.mxu0  ;;  %v4841_v25 = vpop.f32.mrf.mxu1 }
 0x628   : > { %v4848_v45 = vadd.f32 %v4800_v41, %v11286_v7  ;;  %v4850_v34 = vadd.f32 %v4841_v25, %v11288_v29 }
 0x629   : > { %v4802_v3 = vpop.f32.mrf.mxu0  ;;  %v4843_v4 = vpop.f32.mrf.mxu1 }
 0x62a   : > { %v4852_v20 = vmul.f32 0.5, %v4848_v45  ;;  %v4849_v28 = vadd.f32 %v4802_v3, %v11287_v43  ;;  %v4851_v12 = vadd.f32 %v4843_v4, %v11289_v58  ;;  %v11290_v43 = vld [vmem:[#allocation60_spill] sm:$0xff]  ;;  %v11292_v58 = vld [vmem:[#allocation61_spill] sm:$0xff] }
 0x62b   : > { %v4804_v56 = vpop.f32.mrf.mxu0  ;;  %v4845_v33 = vpop.f32.mrf.mxu1 }
 0x62c   : > { %8614 = vtanh.f32 %v4852_v20  ;;  %v4853_v15 = vmul.f32 0.5, %v4849_v28  ;;  %v4861_v55 = vmul.f32 0.5, %v4851_v12 }
 0x62d   : > { %v4805_v49 = vpop.f32.mrf.mxu0  ;;  %v4846_v59 = vpop.f32.mrf.mxu1 }
 0x62e   : > { %8616 = vtanh.f32 %v4853_v15 }
 0x62f   : > { %8618 = vtanh.f32 %v4850_v34  ;;  %v11291_v34 = vld [vmem:[#allocation62_spill] sm:$0xff] }
 0x630   : > { %8620 = vtanh.f32 %v4861_v55 }
 0x639   : > { %v8615_v13 = vpop.eup %8614 }
 0x63a   : > { %v4856_v36 = vadd.f32 1.0, %v8615_v13 }
 0x63b   : > { %v8617_v21 = vpop.eup %8616 }
 0x63c   : > { %v4858_v26 = vmul.f32 0.5, %v4856_v36  ;;  %v4857_v48 = vadd.f32 1.0, %v8617_v21  ;;  %v8619_v8 = vpop.eup %8618 }
 0x63d   : > { %v8621_v28 = vpop.eup %8620 }
 0x63e   : > { %v4859_v41 = vmul.f32 0.5, %v4857_v48  ;;  %v4866_v7 = vmul.f32 %v8619_v8, %v4858_v26  ;;  %v4863_v59 = vadd.f32 1.0, %v8621_v28  ;;  %v5499_v26 = vld [vmem:[%s8954_s28 + $0x190] sm:$0xff] }
 0x63f   : > { %v5501_v8 = vld [vmem:[%s8954_s28 + $0x1b0] sm:$0xff] }
 0x640   : > { %v4865_v45 = vmul.f32 %v4859_v41, %v10279_v30  ;;  %v4864_v21 = vmul.f32 0.5, %v4863_v59  ;;  %v5500_v41 = vld [vmem:[%s8954_s28 + $0x198] sm:$0xff] }
 0x642   : > { %v10473_v25 = vadd.f32 %v4866_v7, %v4865_v45  ;;  %v5502_v7 = vld [vmem:[%s8954_s28 + $0x1b8] sm:$0xff] }
 0x643   : > { %v10487_v28 = vcombine.high %v5500_v41, %v5502_v7 }
 0x644   : > { %8622 = vtanh.f32 %v10473_v25 }
 0x647   : > { %v5097_v3 = vpop.f32.mrf.mxu0  ;;  %v5138_v20 = vpop.f32.mrf.mxu1 }
 0x648   : > { %v5145_v4 = vadd.f32 %v5097_v3, %v11290_v43  ;;  %v5147_v12 = vadd.f32 %v5138_v20, %v11292_v58  ;;  %v11293_v3 = vld [vmem:[#allocation63_spill] sm:$0xff] }
 0x649   : > { %v5099_v56 = vpop.f32.mrf.mxu0  ;;  %v5140_v33 = vpop.f32.mrf.mxu1 }
 0x64a   : > { %v5149_v29 = vmul.f32 0.5, %v5145_v4  ;;  %v5146_v15 = vadd.f32 %v5099_v56, %v11291_v34  ;;  %v5148_v43 = vadd.f32 %v5140_v33, %v11293_v3  ;;  %v10485_v4 = vcombine.high %v5499_v26, %v5501_v8  ;;  %v5495_v56 = vld [vmem:[%s8954_s28 + $0x150] sm:$0xff]  ;;  %v5496_v34 = vld [vmem:[%s8954_s28 + $0x158] sm:$0xff] }
 0x64b   : > { %v5101_v49 = vpop.f32.mrf.mxu0  ;;  %v5142_v30 = vpop.f32.mrf.mxu1  ;;  %v10495_v33 = vcombine.low %v5499_v26, %v5501_v8 }
 0x64c   : > { %8624 = vtanh.f32 %v5149_v29  ;;  %v5150_v55 = vmul.f32 0.5, %v5146_v15  ;;  %v5497_v29 = vld [vmem:[%s8954_s28 + $0x170] sm:$0xff]  ;;  %v5498_v15 = vld [vmem:[%s8954_s28 + $0x178] sm:$0xff]  ;;  %v10497_v49 = vcombine.low %v5500_v41, %v5502_v7  ;;  %v5158_v30 = vmul.f32 0.5, %v5148_v43 }
 0x64d   : > { %v5102_v13 = vpop.f32.mrf.mxu0  ;;  %v5143_v36 = vpop.f32.mrf.mxu1  ;;  %v10501_v59 = vcombine.high %v5495_v56, %v5497_v29  ;;  %v10503_v58 = vcombine.high %v5496_v34, %v5498_v15  ;;  %v10513_v8 = vcombine.low %v5495_v56, %v5497_v29  ;;  %v10515_v41 = vcombine.low %v5496_v34, %v5498_v15  ;;  %v5488_v56 = vld [vmem:[%s8954_s28 + $0xd8] sm:$0xff] }
 0x64e   : > { %8626 = vtanh.f32 %v5150_v55  ;;  %11294 = vst [vmem:[#allocation6_spill] sm:$0xff] %v10497_v49  ;;  %v5493_v55 = vld [vmem:[%s8954_s28 + $0x130] sm:$0xff]  ;;  %v5492_v36 = vld [vmem:[%s8954_s28 + $0x118] sm:$0xff] }
 0x64f   : > { %8628 = vtanh.f32 %v5147_v12  ;;  %11295 = vst [vmem:[#allocation7_spill] sm:$0xff] %v10501_v59  ;;  %11296 = vst [vmem:[#allocation8_spill] sm:$0xff] %v10503_v58  ;;  %v5491_v12 = vld [vmem:[%s8954_s28 + $0x110] sm:$0xff]  ;;  %v5490_v29 = vld [vmem:[%s8954_s28 + $0xf8] sm:$0xff] }
 0x650   : > { %v10517_v7 = vcombine.high %v5491_v12, %v5493_v55  ;;  %8630 = vtanh.f32 %v5158_v30  ;;  %v10529_v30 = vcombine.low %v5491_v12, %v5493_v55  ;;  %v5484_v12 = vld [vmem:[%s8954_s28 + $0x98] sm:$0xff] }
 0x651   : > { %v8623_v48 = vpop.eup %8622  ;;  %v5486_v55 = vld [vmem:[%s8954_s28 + $0xb8] sm:$0xff] }
 0x652   : > { %v4869_v45 = vmul.f32 %v8623_v48, %v4864_v21  ;;  %v5494_v21 = vld [vmem:[%s8954_s28 + $0x138] sm:$0xff]  ;;  %11297 = vst [vmem:[#allocation9_spill] sm:$0xff] %v10517_v7  ;;  %11299 = vst [vmem:[#allocation77_spill] sm:$0xff] %v10529_v30 }
 0x653   : > { %v10521_v43 = vcombine.high %v5492_v36, %v5494_v21 }
 0x654   : > { %8219 = vst [vmem:[%s9552_s10 + $0x50] sm:$0xff] %v4869_v45  ;;  %v5177_v20 = vpack.c.bf16 %v4869_v45, %v4869_v45 }
 0x655   : > { %11298 = vst [vmem:[#allocation76_spill] sm:$0xff] %v10521_v43 }
 0x656   : > { %5403 = vmatmul.mubr.bf16.vlgmr.msra.gmra.mxu0 %v5177_v20  ;;  %5444 = vmatmul.mubr.bf16.vlgmr.msra.gmra.mxu1 %v5177_v20  ;;  %v5487_v20 = vld [vmem:[%s8954_s28 + $0xd0] sm:$0xff] }
 0x657   : > { %5668 = vmatpush1.bf16.msra.mxu0 %v10460_v52  ;;  %5709 = vmatpush1.bf16.msra.mxu1 %v10462_v17 }
 0x658   : > { %5669 = vmatprep.subr.bf16.mxu0 %v10485_v4  ;;  %5710 = vmatprep.subr.bf16.mxu1 %v10487_v28 }
 0x659   : > { %v8625_v13 = vpop.eup %8624  ;;  %5699 = vmatprep.mubr.bf16.mxu0 %v11138_v9  ;;  %5740 = vmatprep.mubr.bf16.mxu1 %v11138_v9 }
 0x65a   : > { %v5153_v26 = vadd.f32 1.0, %v8625_v13 }
 0x65b   : > { %v8627_v48 = vpop.eup %8626  ;;  %5670 = vmatpush1.bf16.msra.mxu0 %v10495_v33  ;;  %5711 = vmatpush1.bf16.msra.mxu1 %v10497_v49  ;;  %v5489_v49 = vld [vmem:[%s8954_s28 + $0xf0] sm:$0xff] }
 0x65c   : > { %v5155_v45 = vmul.f32 0.5, %v5153_v26  ;;  %v5154_v3 = vadd.f32 1.0, %v8627_v48  ;;  %5671 = vmatprep.subr.bf16.mxu0 %v10501_v59  ;;  %5712 = vmatprep.subr.bf16.mxu1 %v10503_v58  ;;  %v8629_v13 = vpop.eup %8628  ;;  %v10531_v26 = vcombine.low %v5492_v36, %v5494_v21  ;;  %v10536_v58 = vcombine.high %v5487_v20, %v5489_v49 }
 0x65d   : > { %v10538_v59 = vcombine.high %v5488_v56, %v5490_v29  ;;  %v10550_v21 = vcombine.low %v5488_v56, %v5490_v29  ;;  %v10567_v29 = vcombine.low %v5484_v12, %v5486_v55 }
 0x65e   : > { %v5156_v34 = vmul.f32 0.5, %v5154_v3  ;;  %v5163_v15 = vmul.f32 %v8629_v13, %v5155_v45  ;;  %11300 = vst [vmem:[#allocation79_spill] sm:$0xff] %v10531_v26  ;;  %11301 = vst [vmem:[#allocation80_spill] sm:$0xff] %v10536_v58  ;;  %v5483_v45 = vld [vmem:[%s8954_s28 + $0x90] sm:$0xff] }
 0x65f   : > { %5672 = vmatpush1.bf16.msra.mxu0 %v10513_v8  ;;  %5713 = vmatpush1.bf16.msra.mxu1 %v10515_v41  ;;  %11302 = vst [vmem:[#allocation10_spill] sm:$0xff] %v10538_v59  ;;  %v5485_v3 = vld [vmem:[%s8954_s28 + $0xb0] sm:$0xff] }
 0x660   : > { %v5162_v48 = vmul.f32 %v5156_v34, %v10302_v2  ;;  %5673 = vmatprep.subr.bf16.mxu0 %v10517_v7  ;;  %5714 = vmatprep.subr.bf16.mxu1 %v10521_v43  ;;  %v10548_v2 = vcombine.low %v5487_v20, %v5489_v49  ;;  %v10555_v13 = vcombine.high %v5483_v45, %v5485_v3  ;;  %v5480_v49 = vld [vmem:[%s8954_s28 + $0x58] sm:$0xff]  ;;  %v5477_v43 = vld [vmem:[%s8954_s28 + $0x30] sm:$0xff] }
 0x661   : > { %v10557_v34 = vcombine.high %v5484_v12, %v5486_v55  ;;  %v5482_v20 = vld [vmem:[%s8954_s28 + $0x78] sm:$0xff]  ;;  %v10565_v56 = vcombine.low %v5483_v45, %v5485_v3 }
 0x662   : > { %v10544_v36 = vadd.f32 %v5163_v15, %v5162_v48  ;;  %v5479_v15 = vld [vmem:[%s8954_s28 + $0x50] sm:$0xff]  ;;  %v5476_v7 = vld [vmem:[%s8954_s28 + $0x18] sm:$0xff]  ;;  %v10583_v3 = vcombine.low %v5480_v49, %v5482_v20 }
 0x663   : > { %5674 = vmatpush1.bf16.msra.mxu0 %v10529_v30  ;;  %5715 = vmatpush1.bf16.msra.mxu1 %v10531_v26  ;;  %11304 = vst [vmem:[#allocation16_spill] sm:$0xff] %v10557_v34  ;;  %v5481_v48 = vld [vmem:[%s8954_s28 + $0x70] sm:$0xff]  ;;  %11305 = vst [vmem:[#allocation18_spill] sm:$0xff] %v10565_v56  ;;  %v8631_v30 = vpop.eup %8630 }
 0x664   : > { %11303 = vst [vmem:[#allocation17_spill] sm:$0xff] %v10544_v36  ;;  %8632 = vtanh.f32 %v10544_v36  ;;  %5675 = vmatprep.subr.bf16.mxu0 %v10536_v58  ;;  %5716 = vmatprep.subr.bf16.mxu1 %v10538_v59  ;;  %v10571_v59 = vcombine.high %v5479_v15, %v5481_v48  ;;  %v10573_v58 = vcombine.high %v5480_v49, %v5482_v20  ;;  %v5475_v26 = vld [vmem:[%s8954_s28 + $0x10] sm:$0xff]  ;;  %v5478_v36 = vld [vmem:[%s8954_s28 + $0x38] sm:$0xff]  ;;  %v5160_v12 = vadd.f32 1.0, %v8631_v30 }
 0x665   : > { %v10581_v45 = vcombine.low %v5479_v15, %v5481_v48  ;;  %v10587_v55 = vcombine.high %v5475_v26, %v5477_v43  ;;  %v10595_v15 = vcombine.low %v5476_v7, %v5478_v36 }
 0x666   : > { %v5161_v48 = vmul.f32 0.5, %v5160_v12 }
 0x667   : > { %5676 = vmatpush1.bf16.msra.mxu0 %v10548_v2  ;;  %5717 = vmatpush1.bf16.msra.mxu1 %v10550_v21 }
 0x668   : > { %5677 = vmatprep.subr.bf16.mxu0 %v10555_v13  ;;  %5718 = vmatprep.subr.bf16.mxu1 %v10557_v34  ;;  %v10589_v34 = vcombine.high %v5476_v7, %v5478_v36  ;;  %v11311_v36 = vld [vmem:[#allocation58_spill] sm:$0xff] }
 0x66b   : > { %5678 = vmatpush1.bf16.msra.mxu0 %v10565_v56  ;;  %5719 = vmatpush1.bf16.msra.mxu1 %v10567_v29  ;;  %v10593_v56 = vcombine.low %v5475_v26, %v5477_v43 }
 0x66c   : > { %5679 = vmatprep.subr.bf16.mxu0 %v10571_v59  ;;  %5720 = vmatprep.subr.bf16.mxu1 %v10573_v58 }
 0x66f   : > { %5680 = vmatpush1.bf16.msra.mxu0 %v10581_v45  ;;  %5721 = vmatpush1.bf16.msra.mxu1 %v10583_v3 }
 0x670   : > { %5681 = vmatprep.subr.bf16.mxu0 %v10587_v55  ;;  %5722 = vmatprep.subr.bf16.mxu1 %v10589_v34 }
 0x671   : > { %v8633_v30 = vpop.eup %8632 }
 0x672   : > { %v5166_v49 = vmul.f32 %v8633_v30, %v5161_v48 }
 0x673   : > { %5682 = vmatpush1.bf16.msra.mxu0 %v10593_v56  ;;  %5723 = vmatpush1.bf16.msra.mxu1 %v10595_v15 }
 0x674   : > { %8220 = vst [vmem:[%s9552_s10 + $0x48] sm:$0xff] %v5166_v49  ;;  %v5474_v20 = vpack.c.bf16 %v5166_v49, %v5166_v49  ;;  %5974 = vmatprep.subr.bf16.mxu0 %v10329_v23  ;;  %6015 = vmatprep.subr.bf16.mxu1 %v10336_v6 }
 0x676   : > { %5700 = vmatmul.mubr.bf16.vlgmr.msra.gmra.mxu0 %v5474_v20  ;;  %5741 = vmatmul.mubr.bf16.vlgmr.msra.gmra.mxu1 %v5474_v20 }
 0x677   : > { %5975 = vmatpush1.bf16.msra.mxu0 %v10332_v51  ;;  %6016 = vmatpush1.bf16.msra.mxu1 %v10334_v11  ;;  %v11306_v11 = vld [vmem:[#allocation28_spill] sm:$0xff] }
 0x678   : > { %5976 = vmatprep.subr.bf16.mxu0 %v10345_v42  ;;  %6017 = vmatprep.subr.bf16.mxu1 %v10352_v27  ;;  %v11307_v27 = vld [vmem:[#allocation30_spill] sm:$0xff] }
 0x679   : > { %6006 = vmatprep.mubr.bf16.mxu0 %v11138_v9  ;;  %6047 = vmatprep.mubr.bf16.mxu1 %v11138_v9 }
 0x67b   : > { %5977 = vmatpush1.bf16.msra.mxu0 %v10348_v38  ;;  %6018 = vmatpush1.bf16.msra.mxu1 %v10350_v39 }
 0x67c   : > { %5978 = vmatprep.subr.bf16.mxu0 %v10361_v53  ;;  %6019 = vmatprep.subr.bf16.mxu1 %v10368_v50  ;;  %v11308_v50 = vld [vmem:[#allocation29_spill] sm:$0xff] }
 0x67f   : > { %5979 = vmatpush1.bf16.msra.mxu0 %v10364_v62  ;;  %6020 = vmatpush1.bf16.msra.mxu1 %v10366_v19 }
 0x680   : > { %5980 = vmatprep.subr.bf16.mxu0 %v10377_v32  ;;  %6021 = vmatprep.subr.bf16.mxu1 %v10384_v31 }
 0x683   : > { %5981 = vmatpush1.bf16.msra.mxu0 %v10380_v1  ;;  %6022 = vmatpush1.bf16.msra.mxu1 %v10382_v61 }
 0x684   : > { %5982 = vmatprep.subr.bf16.mxu0 %v10393_v63  ;;  %6023 = vmatprep.subr.bf16.mxu1 %v10400_v54  ;;  %v11309_v63 = vld [vmem:[#allocation31_spill] sm:$0xff] }
 0x687   : > { %5983 = vmatpush1.bf16.msra.mxu0 %v10396_v47  ;;  %6024 = vmatpush1.bf16.msra.mxu1 %v10398_v44 }
 0x688   : > { %5984 = vmatprep.subr.bf16.mxu0 %v10409_v22  ;;  %6025 = vmatprep.subr.bf16.mxu1 %v10416_v46 }
 0x68b   : > { %5985 = vmatpush1.bf16.msra.mxu0 %v10412_v35  ;;  %6026 = vmatpush1.bf16.msra.mxu1 %v10414_v24 }
 0x68c   : > { %5986 = vmatprep.subr.bf16.mxu0 %v10425_v0  ;;  %6027 = vmatprep.subr.bf16.mxu1 %v10432_v14 }
 0x68f   : > { %5987 = vmatpush1.bf16.msra.mxu0 %v10428_v40  ;;  %6028 = vmatpush1.bf16.msra.mxu1 %v10430_v10 }
 0x690   : > { %5988 = vmatprep.subr.bf16.mxu0 %v10441_v16  ;;  %6029 = vmatprep.subr.bf16.mxu1 %v10448_v18  ;;  %v11310_v18 = vld [vmem:[#allocation56_spill] sm:$0xff] }
 0x693   : > { %5989 = vmatpush1.bf16.msra.mxu0 %v10444_v60  ;;  %6030 = vmatpush1.bf16.msra.mxu1 %v10446_v5 }
 0x694   : > { %6271 = vmatprep.subr.bf16.mxu0 %v10457_v57  ;;  %6312 = vmatprep.subr.bf16.mxu1 %v10464_v37 }
 0x716   : > { %v5404_v23 = vpop.f32.mrf.mxu0  ;;  %v5445_v51 = vpop.f32.mrf.mxu1 }
 0x717   : > { %v5452_v6 = vadd.f32 %v5404_v23, %v11306_v11  ;;  %v5454_v32 = vadd.f32 %v5445_v51, %v11308_v50 }
 0x718   : > { %v5406_v42 = vpop.f32.mrf.mxu0  ;;  %v5447_v38 = vpop.f32.mrf.mxu1 }
 0x719   : > { %v5456_v39 = vmul.f32 0.5, %v5452_v6  ;;  %v5453_v53 = vadd.f32 %v5406_v42, %v11307_v27  ;;  %v5455_v47 = vadd.f32 %v5447_v38, %v11309_v63 }
 0x71a   : > { %v5408_v62 = vpop.f32.mrf.mxu0  ;;  %v5449_v19 = vpop.f32.mrf.mxu1 }
 0x71b   : > { %8634 = vtanh.f32 %v5456_v39  ;;  %v5457_v1 = vmul.f32 0.5, %v5453_v53  ;;  %v5465_v44 = vmul.f32 0.5, %v5455_v47  ;;  %v11313_v39 = vld [vmem:[#allocation59_spill] sm:$0xff]  ;;  %v11317_v47 = vld [vmem:[#allocation17_spill] sm:$0xff] }
 0x71c   : > { %v5409_v61 = vpop.f32.mrf.mxu0  ;;  %v5450_v31 = vpop.f32.mrf.mxu1 }
 0x71d   : > { %8636 = vtanh.f32 %v5457_v1  ;;  %v11314_v1 = vld [vmem:[#allocation6_spill] sm:$0xff]  ;;  %v11316_v31 = vld [vmem:[#allocation8_spill] sm:$0xff] }
 0x71e   : > { %8638 = vtanh.f32 %v5454_v32 }
 0x71f   : > { %8640 = vtanh.f32 %v5465_v44 }
 0x728   : > { %v8635_v54 = vpop.eup %8634 }
 0x729   : > { %v5460_v22 = vadd.f32 1.0, %v8635_v54  ;;  %v11318_v54 = vld [vmem:[#allocation9_spill] sm:$0xff] }
 0x72a   : > { %v8637_v35 = vpop.eup %8636 }
 0x72b   : > { %v5462_v24 = vmul.f32 0.5, %v5460_v22  ;;  %v5461_v46 = vadd.f32 1.0, %v8637_v35  ;;  %v8639_v0 = vpop.eup %8638  ;;  %v11320_v35 = vld [vmem:[#allocation77_spill] sm:$0xff] }
 0x72c   : > { %v8641_v37 = vpop.eup %8640 }
 0x72d   : > { %v5463_v40 = vmul.f32 0.5, %v5461_v46  ;;  %v5470_v10 = vmul.f32 %v8639_v0, %v5462_v24  ;;  %v5467_v49 = vadd.f32 1.0, %v8641_v37  ;;  %v11321_v24 = vld [vmem:[#allocation79_spill] sm:$0xff]  ;;  %v11322_v46 = vld [vmem:[#allocation80_spill] sm:$0xff]  ;;  %v11323_v0 = vld [vmem:[#allocation10_spill] sm:$0xff] }
 0x72f   : > { %v5469_v14 = vmul.f32 %v5463_v40, %v10473_v25  ;;  %v11312_v25 = vld [vmem:[#allocation57_spill] sm:$0xff]  ;;  %v5468_v6 = vmul.f32 0.5, %v5467_v49  ;;  %v11325_v40 = vld [vmem:[#allocation18_spill] sm:$0xff] }
 0x731   : > { %v10643_v16 = vadd.f32 %v5470_v10, %v5469_v14  ;;  %v6410_v14 = vld [vmem:[%s8954_s28 + $0x180] sm:$0xff] }
 0x733   : > { %8642 = vtanh.f32 %v10643_v16 }
 0x736   : > { %v5701_v60 = vpop.f32.mrf.mxu0  ;;  %v5742_v5 = vpop.f32.mrf.mxu1 }
 0x737   : > { %v5749_v57 = vadd.f32 %v5701_v60, %v11310_v18  ;;  %v5751_v20 = vadd.f32 %v5742_v5, %v11312_v25  ;;  %v6412_v60 = vld [vmem:[%s8954_s28 + $0x1a0] sm:$0xff]  ;;  %v6411_v5 = vld [vmem:[%s8954_s28 + $0x188] sm:$0xff] }
 0x738   : > { %v5703_v7 = vpop.f32.mrf.mxu0  ;;  %v5744_v43 = vpop.f32.mrf.mxu1  ;;  %v10709_v18 = vcombine.high %v6410_v14, %v6412_v60  ;;  %v10712_v37 = vcombine.low %v6410_v14, %v6412_v60  ;;  %v6713_v14 = vld [vmem:[%s8954_s28 + $0x1f0] sm:$0xff]  ;;  %v6712_v60 = vld [vmem:[%s8954_s28 + $0x1d8] sm:$0xff] }
 0x739   : > { %v5753_v26 = vmul.f32 0.5, %v5749_v57  ;;  %v5750_v12 = vadd.f32 %v5703_v7, %v11311_v36  ;;  %v5752_v27 = vadd.f32 %v5744_v43, %v11313_v39  ;;  %v6413_v57 = vld [vmem:[%s8954_s28 + $0x1a8] sm:$0xff]  ;;  %v6408_v36 = vld [vmem:[%s8954_s28 + $0x160] sm:$0xff] }
 0x73a   : > { %v5705_v48 = vpop.f32.mrf.mxu0  ;;  %v5746_v30 = vpop.f32.mrf.mxu1  ;;  %v10714_v7 = vcombine.low %v6411_v5, %v6413_v57  ;;  %v10716_v43 = vcombine.high %v6411_v5, %v6413_v57  ;;  %v6714_v57 = vld [vmem:[%s8954_s28 + $0x1f8] sm:$0xff] }
 0x73b   : > { %8644 = vtanh.f32 %v5753_v26  ;;  %v5754_v23 = vmul.f32 0.5, %v5750_v12  ;;  %v5762_v62 = vmul.f32 0.5, %v5752_v27  ;;  %v6406_v26 = vld [vmem:[%s8954_s28 + $0x140] sm:$0xff]  ;;  %v6407_v12 = vld [vmem:[%s8954_s28 + $0x148] sm:$0xff] }
 0x73c   : > { %v5706_v51 = vpop.f32.mrf.mxu0  ;;  %v5747_v11 = vpop.f32.mrf.mxu1  ;;  %v10725_v48 = vcombine.high %v6406_v26, %v6408_v36  ;;  %v6409_v30 = vld [vmem:[%s8954_s28 + $0x168] sm:$0xff]  ;;  %v10728_v49 = vcombine.low %v6406_v26, %v6408_v36  ;;  %v10826_v36 = vcombine.low %v6712_v60, %v6714_v57 }
 0x73d   : > { %8646 = vtanh.f32 %v5754_v23  ;;  %v10730_v25 = vcombine.low %v6407_v12, %v6409_v30  ;;  %v6402_v23 = vld [vmem:[%s8954_s28 + $0x100] sm:$0xff]  ;;  %v6403_v11 = vld [vmem:[%s8954_s28 + $0x108] sm:$0xff] }
 0x73e   : > { %8648 = vtanh.f32 %v5751_v20  ;;  %v10732_v20 = vcombine.high %v6407_v12, %v6409_v30  ;;  %v6404_v51 = vld [vmem:[%s8954_s28 + $0x120] sm:$0xff]  ;;  %v10828_v12 = vcombine.high %v6712_v60, %v6714_v57 }
 0x73f   : > { %8650 = vtanh.f32 %v5762_v62  ;;  %v6400_v62 = vld [vmem:[%s8954_s28 + $0xe0] sm:$0xff] }
 0x740   : > { %v8643_v42 = vpop.eup %8642 }
 0x741   : > { %v5473_v38 = vmul.f32 %v8643_v42, %v5468_v6  ;;  %v10741_v6 = vcombine.high %v6402_v23, %v6404_v51  ;;  %v6405_v42 = vld [vmem:[%s8954_s28 + $0x128] sm:$0xff] }
 0x742   : > { %v10746_v39 = vcombine.low %v6403_v11, %v6405_v42  ;;  %v10748_v27 = vcombine.high %v6403_v11, %v6405_v42 }
 0x743   : > { %8285 = vst [vmem:[%s9552_s10 + $0x60] sm:$0xff] %v5473_v38  ;;  %v5781_v53 = vpack.c.bf16 %v5473_v38, %v5473_v38  ;;  %v10744_v38 = vcombine.low %v6402_v23, %v6404_v51  ;;  %v11326_v51 = vld [vmem:[#allocation32_spill] sm:$0xff] }
 0x745   : > { %6007 = vmatmul.mubr.bf16.vlgmr.msra.gmra.mxu0 %v5781_v53  ;;  %6048 = vmatmul.mubr.bf16.vlgmr.msra.gmra.mxu1 %v5781_v53  ;;  %v6398_v53 = vld [vmem:[%s8954_s28 + $0xc0] sm:$0xff] }
 0x746   : > { %6272 = vmatpush1.bf16.msra.mxu0 %v10460_v52  ;;  %6313 = vmatpush1.bf16.msra.mxu1 %v10462_v17  ;;  %v11315_v17 = vld [vmem:[#allocation7_spill] sm:$0xff] }
 0x747   : > { %6273 = vmatprep.subr.bf16.mxu0 %v10485_v4  ;;  %6314 = vmatprep.subr.bf16.mxu1 %v10487_v28 }
 0x748   : > { %v8645_v19 = vpop.eup %8644  ;;  %6303 = vmatprep.mubr.bf16.mxu0 %v11138_v9  ;;  %6344 = vmatprep.mubr.bf16.mxu1 %v11138_v9 }
 0x749   : > { %v5757_v50 = vadd.f32 1.0, %v8645_v19  ;;  %v6399_v19 = vld [vmem:[%s8954_s28 + $0xc8] sm:$0xff] }
 0x74a   : > { %v8647_v32 = vpop.eup %8646  ;;  %6274 = vmatpush1.bf16.msra.mxu0 %v10495_v33  ;;  %6315 = vmatpush1.bf16.msra.mxu1 %v11314_v1  ;;  %v11319_v33 = vld [vmem:[#allocation76_spill] sm:$0xff]  ;;  %v10760_v1 = vcombine.low %v6398_v53, %v6400_v62 }
 0x74b   : > { %v5759_v61 = vmul.f32 0.5, %v5757_v50  ;;  %v5758_v52 = vadd.f32 1.0, %v8647_v32  ;;  %6275 = vmatprep.subr.bf16.mxu0 %v11315_v17  ;;  %6316 = vmatprep.subr.bf16.mxu1 %v11316_v31  ;;  %v8649_v4 = vpop.eup %8648  ;;  %v10757_v50 = vcombine.high %v6398_v53, %v6400_v62  ;;  %v6401_v32 = vld [vmem:[%s8954_s28 + $0xe8] sm:$0xff]  ;;  %v6394_v17 = vld [vmem:[%s8954_s28 + $0x80] sm:$0xff] }
 0x74c   : > { %v6396_v31 = vld [vmem:[%s8954_s28 + $0xa0] sm:$0xff] }
 0x74d   : > { %v5760_v28 = vmul.f32 0.5, %v5758_v52  ;;  %v5767_v63 = vmul.f32 %v8649_v4, %v5759_v61  ;;  %v10762_v61 = vcombine.low %v6399_v19, %v6401_v32  ;;  %v10764_v52 = vcombine.high %v6399_v19, %v6401_v32  ;;  %v6395_v4 = vld [vmem:[%s8954_s28 + $0x88] sm:$0xff]  ;;  %v11327_v19 = vld [vmem:[#allocation34_spill] sm:$0xff] }
 0x74e   : > { %6276 = vmatpush1.bf16.msra.mxu0 %v10513_v8  ;;  %6317 = vmatpush1.bf16.msra.mxu1 %v10515_v41  ;;  %v11324_v8 = vld [vmem:[#allocation16_spill] sm:$0xff]  ;;  %v8651_v41 = vpop.eup %8650 }
 0x74f   : > { %v5766_v44 = vmul.f32 %v5760_v28, %v11317_v47  ;;  %6277 = vmatprep.subr.bf16.mxu0 %v11318_v54  ;;  %6318 = vmatprep.subr.bf16.mxu1 %v11319_v33  ;;  %v5764_v10 = vadd.f32 1.0, %v8651_v41  ;;  %v10773_v28 = vcombine.high %v6394_v17, %v6396_v31  ;;  %v10776_v47 = vcombine.low %v6394_v17, %v6396_v31  ;;  %v6390_v33 = vld [vmem:[%s8954_s28 + $0x40] sm:$0xff] }
 0x751   : > { %v10666_v22 = vadd.f32 %v5767_v63, %v5766_v44  ;;  %v6397_v63 = vld [vmem:[%s8954_s28 + $0xa8] sm:$0xff] }
 0x752   : > { %6278 = vmatpush1.bf16.msra.mxu0 %v11320_v35  ;;  %6319 = vmatpush1.bf16.msra.mxu1 %v11321_v24  ;;  %v10778_v44 = vcombine.low %v6395_v4, %v6397_v63  ;;  %v10780_v54 = vcombine.high %v6395_v4, %v6397_v63  ;;  %v6392_v35 = vld [vmem:[%s8954_s28 + $0x60] sm:$0xff]  ;;  %v6391_v24 = vld [vmem:[%s8954_s28 + $0x48] sm:$0xff]  ;;  %v11328_v4 = vld [vmem:[#allocation33_spill] sm:$0xff] }
 0x753   : > { %8652 = vtanh.f32 %v10666_v22  ;;  %6279 = vmatprep.subr.bf16.mxu0 %v11322_v46  ;;  %6320 = vmatprep.subr.bf16.mxu1 %v11323_v0  ;;  %v10789_v46 = vcombine.high %v6390_v33, %v6392_v35  ;;  %v6393_v0 = vld [vmem:[%s8954_s28 + $0x68] sm:$0xff] }
 0x754   : > { %v10794_v41 = vcombine.low %v6391_v24, %v6393_v0 }
 0x756   : > { %6280 = vmatpush1.bf16.msra.mxu0 %v10548_v2  ;;  %6321 = vmatpush1.bf16.msra.mxu1 %v10550_v21  ;;  %v5765_v2 = vmul.f32 0.5, %v5764_v10  ;;  %v6386_v10 = vld [vmem:[%s8954_s28] sm:$0xff] }
 0x757   : > { %6281 = vmatprep.subr.bf16.mxu0 %v10555_v13  ;;  %6322 = vmatprep.subr.bf16.mxu1 %v11324_v8  ;;  %v10792_v8 = vcombine.low %v6390_v33, %v6392_v35 }
 0x75a   : > { %6282 = vmatpush1.bf16.msra.mxu0 %v11325_v40  ;;  %6323 = vmatpush1.bf16.msra.mxu1 %v10567_v29  ;;  %v6415_v29 = vld [vmem:[%s8954_s28 + $0x1c8] sm:$0xff]  ;;  %v10796_v40 = vcombine.high %v6391_v24, %v6393_v0  ;;  %v11329_v0 = vld [vmem:[#allocation35_spill] sm:$0xff] }
 0x75b   : > { %6283 = vmatprep.subr.bf16.mxu0 %v10571_v59  ;;  %6324 = vmatprep.subr.bf16.mxu1 %v10573_v58  ;;  %v6414_v58 = vld [vmem:[%s8954_s28 + $0x1c0] sm:$0xff] }
 0x75e   : > { %6284 = vmatpush1.bf16.msra.mxu0 %v10581_v45  ;;  %6325 = vmatpush1.bf16.msra.mxu1 %v10583_v3 }
 0x75f   : > { %6285 = vmatprep.subr.bf16.mxu0 %v10587_v55  ;;  %6326 = vmatprep.subr.bf16.mxu1 %v10589_v34  ;;  %v6416_v34 = vld [vmem:[%s8954_s28 + $0x1e0] sm:$0xff] }
 0x760   : > { %v8653_v21 = vpop.eup %8652  ;;  %v10693_v45 = vcombine.high %v6414_v58, %v6416_v34  ;;  %v10696_v3 = vcombine.low %v6414_v58, %v6416_v34 }
 0x761   : > { %v5770_v13 = vmul.f32 %v8653_v21, %v5765_v2  ;;  %v6388_v2 = vld [vmem:[%s8954_s28 + $0x20] sm:$0xff]  ;;  %v6387_v21 = vld [vmem:[%s8954_s28 + $0x8] sm:$0xff] }
 0x762   : > { %6286 = vmatpush1.bf16.msra.mxu0 %v10593_v56  ;;  %6327 = vmatpush1.bf16.msra.mxu1 %v10595_v15  ;;  %v6417_v56 = vld [vmem:[%s8954_s28 + $0x1e8] sm:$0xff]  ;;  %v10808_v58 = vcombine.low %v6386_v10, %v6388_v2 }
 0x763   : > { %8286 = vst [vmem:[%s9552_s10 + $0x38] sm:$0xff] %v5770_v13  ;;  %v6078_v59 = vpack.c.bf16 %v5770_v13, %v5770_v13  ;;  %v10698_v55 = vcombine.low %v6415_v29, %v6417_v56  ;;  %v10700_v15 = vcombine.high %v6415_v29, %v6417_v56  ;;  %6578 = vmatprep.subr.bf16.mxu0 %v10693_v45  ;;  %v6711_v56 = vld [vmem:[%s8954_s28 + $0x1d0] sm:$0xff] }
 0x764   : > { %v10805_v13 = vcombine.high %v6386_v10, %v6388_v2  ;;  %v10821_v5 = vcombine.high %v6711_v56, %v6713_v14  ;;  %v10824_v26 = vcombine.low %v6711_v56, %v6713_v14 }
 0x765   : > { %6304 = vmatmul.mubr.bf16.vlgmr.msra.gmra.mxu0 %v6078_v59  ;;  %6345 = vmatmul.mubr.bf16.vlgmr.msra.gmra.mxu1 %v6078_v59  ;;  %v6389_v59 = vld [vmem:[%s8954_s28 + $0x28] sm:$0xff] }
 0x766   : > { %6610 = vmatprep.mubr.bf16.mxu0 %v11138_v9  ;;  %6651 = vmatprep.mubr.bf16.mxu1 %v11138_v9  ;;  %v10810_v34 = vcombine.low %v6387_v21, %v6389_v59  ;;  %v10812_v29 = vcombine.high %v6387_v21, %v6389_v59 }
 0x767   : > { %6619 = vmatprep.subr.bf16.mxu1 %v10700_v15  ;;  %6579 = vmatpush1.bf16.msra.mxu0 %v10696_v3 }
 0x768   : > { %6620 = vmatpush1.bf16.msra.mxu1 %v10698_v55  ;;  %6580 = vmatprep.subr.bf16.mxu0 %v10709_v18 }
 0x769   : > { %6621 = vmatprep.subr.bf16.mxu1 %v10716_v43 }
 0x76b   : > { %6581 = vmatpush1.bf16.msra.mxu0 %v10712_v37 }
 0x76c   : > { %6622 = vmatpush1.bf16.msra.mxu1 %v10714_v7  ;;  %6582 = vmatprep.subr.bf16.mxu0 %v10725_v48 }
 0x76d   : > { %6623 = vmatprep.subr.bf16.mxu1 %v10732_v20 }
 0x76f   : > { %6583 = vmatpush1.bf16.msra.mxu0 %v10728_v49 }
 0x770   : > { %6624 = vmatpush1.bf16.msra.mxu1 %v10730_v25  ;;  %6584 = vmatprep.subr.bf16.mxu0 %v10741_v6 }
 0x771   : > { %6625 = vmatprep.subr.bf16.mxu1 %v10748_v27 }
 0x773   : > { %6585 = vmatpush1.bf16.msra.mxu0 %v10744_v38 }
 0x774   : > { %6626 = vmatpush1.bf16.msra.mxu1 %v10746_v39  ;;  %6586 = vmatprep.subr.bf16.mxu0 %v10757_v50 }
 0x775   : > { %6627 = vmatprep.subr.bf16.mxu1 %v10764_v52 }
 0x777   : > { %6587 = vmatpush1.bf16.msra.mxu0 %v10760_v1 }
 0x778   : > { %6628 = vmatpush1.bf16.msra.mxu1 %v10762_v61  ;;  %6588 = vmatprep.subr.bf16.mxu0 %v10773_v28 }
 0x779   : > { %6629 = vmatprep.subr.bf16.mxu1 %v10780_v54 }
 0x77b   : > { %6589 = vmatpush1.bf16.msra.mxu0 %v10776_v47 }
 0x77c   : > { %6630 = vmatpush1.bf16.msra.mxu1 %v10778_v44  ;;  %6590 = vmatprep.subr.bf16.mxu0 %v10789_v46 }
 0x77d   : > { %6631 = vmatprep.subr.bf16.mxu1 %v10796_v40 }
 0x77f   : > { %6591 = vmatpush1.bf16.msra.mxu0 %v10792_v8 }
 0x780   : > { %6632 = vmatpush1.bf16.msra.mxu1 %v10794_v41  ;;  %6592 = vmatprep.subr.bf16.mxu0 %v10805_v13 }
 0x781   : > { %6633 = vmatprep.subr.bf16.mxu1 %v10812_v29 }
 0x783   : > { %6593 = vmatpush1.bf16.msra.mxu0 %v10808_v58 }
 0x784   : > { %6634 = vmatpush1.bf16.msra.mxu1 %v10810_v34  ;;  %6875 = vmatprep.subr.bf16.mxu0 %v10821_v5 }
 0x785   : > { %6916 = vmatprep.subr.bf16.mxu1 %v10828_v12 }
 0x805   : > { %v6008_v30 = vpop.f32.mrf.mxu0  ;;  %v6049_v23 = vpop.f32.mrf.mxu1 }
 0x806   : > { %v6056_v11 = vadd.f32 %v6008_v30, %v11326_v51  ;;  %v6058_v63 = vadd.f32 %v6049_v23, %v11328_v4 }
 0x807   : > { %v6010_v42 = vpop.f32.mrf.mxu0  ;;  %v6051_v53 = vpop.f32.mrf.mxu1 }
 0x808   : > { %v6060_v62 = vmul.f32 0.5, %v6056_v11  ;;  %v6057_v32 = vadd.f32 %v6010_v42, %v11327_v19  ;;  %v6059_v10 = vadd.f32 %v6051_v53, %v11329_v0  ;;  %v11330_v19 = vld [vmem:[#allocation52_spill] sm:$0xff]  ;;  %v11332_v0 = vld [vmem:[#allocation53_spill] sm:$0xff] }
 0x809   : > { %v6012_v17 = vpop.f32.mrf.mxu0  ;;  %v6053_v31 = vpop.f32.mrf.mxu1 }
 0x80a   : > { %8654 = vtanh.f32 %v6060_v62  ;;  %v6061_v33 = vmul.f32 0.5, %v6057_v32  ;;  %v6069_v2 = vmul.f32 0.5, %v6059_v10 }
 0x80b   : > { %v6013_v35 = vpop.f32.mrf.mxu0  ;;  %v6054_v24 = vpop.f32.mrf.mxu1 }
 0x80c   : > { %8656 = vtanh.f32 %v6061_v33 }
 0x80d   : > { %8658 = vtanh.f32 %v6058_v63  ;;  %v11331_v63 = vld [vmem:[#allocation54_spill] sm:$0xff] }
 0x80e   : > { %8660 = vtanh.f32 %v6069_v2 }
 0x817   : > { %v8655_v21 = vpop.eup %8654 }
 0x818   : > { %v6064_v59 = vadd.f32 1.0, %v8655_v21 }
 0x819   : > { %v8657_v56 = vpop.eup %8656 }
 0x81a   : > { %v6066_v14 = vmul.f32 0.5, %v6064_v59  ;;  %v6065_v60 = vadd.f32 1.0, %v8657_v56  ;;  %v8659_v57 = vpop.eup %8658 }
 0x81b   : > { %v8661_v32 = vpop.eup %8660 }
 0x81c   : > { %v6067_v30 = vmul.f32 0.5, %v6065_v60  ;;  %v6074_v51 = vmul.f32 %v8659_v57, %v6066_v14  ;;  %v6071_v24 = vadd.f32 1.0, %v8661_v32  ;;  %v6707_v14 = vld [vmem:[%s8954_s28 + $0x190] sm:$0xff] }
 0x81d   : > { %v6709_v57 = vld [vmem:[%s8954_s28 + $0x1b0] sm:$0xff] }
 0x81e   : > { %v6073_v11 = vmul.f32 %v6067_v30, %v10643_v16  ;;  %v6072_v56 = vmul.f32 0.5, %v6071_v24  ;;  %v6708_v30 = vld [vmem:[%s8954_s28 + $0x198] sm:$0xff] }
 0x820   : > { %v10837_v23 = vadd.f32 %v6074_v51, %v6073_v11  ;;  %v6710_v51 = vld [vmem:[%s8954_s28 + $0x1b8] sm:$0xff] }
 0x821   : > { %v10851_v32 = vcombine.high %v6708_v30, %v6710_v51 }
 0x822   : > { %8662 = vtanh.f32 %v10837_v23 }
 0x825   : > { %v6305_v42 = vpop.f32.mrf.mxu0  ;;  %v6346_v62 = vpop.f32.mrf.mxu1 }
 0x826   : > { %v6353_v53 = vadd.f32 %v6305_v42, %v11330_v19  ;;  %v6355_v10 = vadd.f32 %v6346_v62, %v11332_v0  ;;  %v11333_v42 = vld [vmem:[#allocation55_spill] sm:$0xff] }
 0x827   : > { %v6307_v17 = vpop.f32.mrf.mxu0  ;;  %v6348_v31 = vpop.f32.mrf.mxu1 }
 0x828   : > { %v6357_v4 = vmul.f32 0.5, %v6353_v53  ;;  %v6354_v33 = vadd.f32 %v6307_v17, %v11331_v63  ;;  %v6356_v19 = vadd.f32 %v6348_v31, %v11333_v42  ;;  %v10849_v53 = vcombine.high %v6707_v14, %v6709_v57  ;;  %v6703_v17 = vld [vmem:[%s8954_s28 + $0x150] sm:$0xff]  ;;  %v6704_v63 = vld [vmem:[%s8954_s28 + $0x158] sm:$0xff] }
 0x829   : > { %v6309_v35 = vpop.f32.mrf.mxu0  ;;  %v6350_v16 = vpop.f32.mrf.mxu1  ;;  %v10859_v31 = vcombine.low %v6707_v14, %v6709_v57 }
 0x82a   : > { %8664 = vtanh.f32 %v6357_v4  ;;  %v6358_v2 = vmul.f32 0.5, %v6354_v33  ;;  %v6705_v4 = vld [vmem:[%s8954_s28 + $0x170] sm:$0xff]  ;;  %v6706_v33 = vld [vmem:[%s8954_s28 + $0x178] sm:$0xff]  ;;  %v10861_v35 = vcombine.low %v6708_v30, %v6710_v51  ;;  %v6366_v16 = vmul.f32 0.5, %v6356_v19 }
 0x82b   : > { %v6310_v21 = vpop.f32.mrf.mxu0  ;;  %v6351_v59 = vpop.f32.mrf.mxu1  ;;  %v10865_v24 = vcombine.high %v6703_v17, %v6705_v4  ;;  %v10867_v0 = vcombine.high %v6704_v63, %v6706_v33  ;;  %v10877_v57 = vcombine.low %v6703_v17, %v6705_v4  ;;  %v10879_v30 = vcombine.low %v6704_v63, %v6706_v33  ;;  %v6696_v17 = vld [vmem:[%s8954_s28 + $0xd8] sm:$0xff] }
 0x82c   : > { %8666 = vtanh.f32 %v6358_v2  ;;  %11334 = vst [vmem:[#allocation12_spill] sm:$0xff] %v10861_v35  ;;  %v6701_v2 = vld [vmem:[%s8954_s28 + $0x130] sm:$0xff]  ;;  %v6700_v59 = vld [vmem:[%s8954_s28 + $0x118] sm:$0xff] }
 0x82d   : > { %8668 = vtanh.f32 %v6355_v10  ;;  %11335 = vst [vmem:[#allocation19_spill] sm:$0xff] %v10865_v24  ;;  %11336 = vst [vmem:[#allocation68_spill] sm:$0xff] %v10867_v0  ;;  %v6699_v10 = vld [vmem:[%s8954_s28 + $0x110] sm:$0xff]  ;;  %v6698_v4 = vld [vmem:[%s8954_s28 + $0xf8] sm:$0xff] }
 0x82e   : > { %v10881_v51 = vcombine.high %v6699_v10, %v6701_v2  ;;  %8670 = vtanh.f32 %v6366_v16  ;;  %v10893_v16 = vcombine.low %v6699_v10, %v6701_v2  ;;  %v6692_v10 = vld [vmem:[%s8954_s28 + $0x98] sm:$0xff] }
 0x82f   : > { %v8663_v60 = vpop.eup %8662  ;;  %v6694_v2 = vld [vmem:[%s8954_s28 + $0xb8] sm:$0xff] }
 0x830   : > { %v6077_v11 = vmul.f32 %v8663_v60, %v6072_v56  ;;  %v6702_v56 = vld [vmem:[%s8954_s28 + $0x138] sm:$0xff]  ;;  %11337 = vst [vmem:[#allocation70_spill] sm:$0xff] %v10881_v51  ;;  %11339 = vst [vmem:[#allocation71_spill] sm:$0xff] %v10893_v16 }
 0x831   : > { %v10885_v19 = vcombine.high %v6700_v59, %v6702_v56 }
 0x832   : > { %8351 = vst [vmem:[%s9552_s10 + $0x70] sm:$0xff] %v6077_v11  ;;  %v6385_v62 = vpack.c.bf16 %v6077_v11, %v6077_v11 }
 0x833   : > { %11338 = vst [vmem:[#allocation69_spill] sm:$0xff] %v10885_v19 }
 0x834   : > { %6611 = vmatmul.mubr.bf16.vlgmr.msra.gmra.mxu0 %v6385_v62  ;;  %6652 = vmatmul.mubr.bf16.vlgmr.msra.gmra.mxu1 %v6385_v62  ;;  %v6695_v62 = vld [vmem:[%s8954_s28 + $0xd0] sm:$0xff] }
 0x835   : > { %6876 = vmatpush1.bf16.msra.mxu0 %v10824_v26  ;;  %6917 = vmatpush1.bf16.msra.mxu1 %v10826_v36 }
 0x836   : > { %6877 = vmatprep.subr.bf16.mxu0 %v10849_v53  ;;  %6918 = vmatprep.subr.bf16.mxu1 %v10851_v32 }
 0x837   : > { %v8665_v21 = vpop.eup %8664  ;;  %6907 = vmatprep.mubr.bf16.mxu0 %v11138_v9  ;;  %6948 = vmatprep.mubr.bf16.mxu1 %v11138_v9 }
 0x838   : > { %v6361_v14 = vadd.f32 1.0, %v8665_v21 }
 0x839   : > { %v8667_v60 = vpop.eup %8666  ;;  %6878 = vmatpush1.bf16.msra.mxu0 %v10859_v31  ;;  %6919 = vmatpush1.bf16.msra.mxu1 %v10861_v35  ;;  %v6697_v35 = vld [vmem:[%s8954_s28 + $0xf0] sm:$0xff] }
 0x83a   : > { %v6363_v11 = vmul.f32 0.5, %v6361_v14  ;;  %v6362_v42 = vadd.f32 1.0, %v8667_v60  ;;  %6879 = vmatprep.subr.bf16.mxu0 %v10865_v24  ;;  %6920 = vmatprep.subr.bf16.mxu1 %v10867_v0  ;;  %v8669_v21 = vpop.eup %8668  ;;  %v10895_v14 = vcombine.low %v6700_v59, %v6702_v56  ;;  %v10900_v0 = vcombine.high %v6695_v62, %v6697_v35 }
 0x83b   : > { %v10902_v24 = vcombine.high %v6696_v17, %v6698_v4  ;;  %v10914_v56 = vcombine.low %v6696_v17, %v6698_v4  ;;  %v10931_v4 = vcombine.low %v6692_v10, %v6694_v2 }
 0x83c   : > { %v6364_v63 = vmul.f32 0.5, %v6362_v42  ;;  %v6371_v33 = vmul.f32 %v8669_v21, %v6363_v11  ;;  %11340 = vst [vmem:[#allocation20_spill] sm:$0xff] %v10895_v14  ;;  %11341 = vst [vmem:[#allocation22_spill] sm:$0xff] %v10900_v0  ;;  %v6691_v11 = vld [vmem:[%s8954_s28 + $0x90] sm:$0xff] }
 0x83d   : > { %6880 = vmatpush1.bf16.msra.mxu0 %v10877_v57  ;;  %6921 = vmatpush1.bf16.msra.mxu1 %v10879_v30  ;;  %11342 = vst [vmem:[#allocation21_spill] sm:$0xff] %v10902_v24  ;;  %v6693_v42 = vld [vmem:[%s8954_s28 + $0xb0] sm:$0xff] }
 0x83e   : > { %v6370_v60 = vmul.f32 %v6364_v63, %v10666_v22  ;;  %6881 = vmatprep.subr.bf16.mxu0 %v10881_v51  ;;  %6922 = vmatprep.subr.bf16.mxu1 %v10885_v19  ;;  %v10912_v22 = vcombine.low %v6695_v62, %v6697_v35  ;;  %v10919_v21 = vcombine.high %v6691_v11, %v6693_v42  ;;  %v6688_v35 = vld [vmem:[%s8954_s28 + $0x58] sm:$0xff]  ;;  %v6685_v19 = vld [vmem:[%s8954_s28 + $0x30] sm:$0xff] }
 0x83f   : > { %v10921_v63 = vcombine.high %v6692_v10, %v6694_v2  ;;  %v6690_v62 = vld [vmem:[%s8954_s28 + $0x78] sm:$0xff]  ;;  %v10929_v17 = vcombine.low %v6691_v11, %v6693_v42 }
 0x840   : > { %v10908_v59 = vadd.f32 %v6371_v33, %v6370_v60  ;;  %v6687_v33 = vld [vmem:[%s8954_s28 + $0x50] sm:$0xff]  ;;  %v6684_v51 = vld [vmem:[%s8954_s28 + $0x18] sm:$0xff]  ;;  %v10947_v42 = vcombine.low %v6688_v35, %v6690_v62 }
 0x841   : > { %6882 = vmatpush1.bf16.msra.mxu0 %v10893_v16  ;;  %6923 = vmatpush1.bf16.msra.mxu1 %v10895_v14  ;;  %11344 = vst [vmem:[#allocation64_spill] sm:$0xff] %v10921_v63  ;;  %v6689_v60 = vld [vmem:[%s8954_s28 + $0x70] sm:$0xff]  ;;  %11345 = vst [vmem:[#allocation66_spill] sm:$0xff] %v10929_v17  ;;  %v8671_v16 = vpop.eup %8670 }
 0x842   : > { %11343 = vst [vmem:[#allocation23_spill] sm:$0xff] %v10908_v59  ;;  %8672 = vtanh.f32 %v10908_v59  ;;  %6883 = vmatprep.subr.bf16.mxu0 %v10900_v0  ;;  %6924 = vmatprep.subr.bf16.mxu1 %v10902_v24  ;;  %v10935_v24 = vcombine.high %v6687_v33, %v6689_v60  ;;  %v10937_v0 = vcombine.high %v6688_v35, %v6690_v62  ;;  %v6683_v14 = vld [vmem:[%s8954_s28 + $0x10] sm:$0xff]  ;;  %v6686_v59 = vld [vmem:[%s8954_s28 + $0x38] sm:$0xff]  ;;  %v6368_v10 = vadd.f32 1.0, %v8671_v16 }
 0x843   : > { %v10945_v11 = vcombine.low %v6687_v33, %v6689_v60  ;;  %v10951_v2 = vcombine.high %v6683_v14, %v6685_v19  ;;  %v10959_v33 = vcombine.low %v6684_v51, %v6686_v59 }
 0x844   : > { %v6369_v60 = vmul.f32 0.5, %v6368_v10 }
 0x845   : > { %6884 = vmatpush1.bf16.msra.mxu0 %v10912_v22  ;;  %6925 = vmatpush1.bf16.msra.mxu1 %v10914_v56 }
 0x846   : > { %6885 = vmatprep.subr.bf16.mxu0 %v10919_v21  ;;  %6926 = vmatprep.subr.bf16.mxu1 %v10921_v63  ;;  %v10953_v63 = vcombine.high %v6684_v51, %v6686_v59  ;;  %v11351_v59 = vld [vmem:[#allocation50_spill] sm:$0xff] }
 0x849   : > { %6886 = vmatpush1.bf16.msra.mxu0 %v10929_v17  ;;  %6927 = vmatpush1.bf16.msra.mxu1 %v10931_v4  ;;  %v10957_v17 = vcombine.low %v6683_v14, %v6685_v19 }
 0x84a   : > { %6887 = vmatprep.subr.bf16.mxu0 %v10935_v24  ;;  %6928 = vmatprep.subr.bf16.mxu1 %v10937_v0 }
 0x84d   : > { %6888 = vmatpush1.bf16.msra.mxu0 %v10945_v11  ;;  %6929 = vmatpush1.bf16.msra.mxu1 %v10947_v42 }
 0x84e   : > { %6889 = vmatprep.subr.bf16.mxu0 %v10951_v2  ;;  %6930 = vmatprep.subr.bf16.mxu1 %v10953_v63 }
 0x84f   : > { %v8673_v16 = vpop.eup %8672 }
 0x850   : > { %v6374_v35 = vmul.f32 %v8673_v16, %v6369_v60 }
 0x851   : > { %6890 = vmatpush1.bf16.msra.mxu0 %v10957_v17  ;;  %6931 = vmatpush1.bf16.msra.mxu1 %v10959_v33 }
 0x852   : > { %8352 = vst [vmem:[%s9552_s10 + $0x28] sm:$0xff] %v6374_v35  ;;  %v6682_v62 = vpack.c.bf16 %v6374_v35, %v6374_v35  ;;  %7182 = vmatprep.subr.bf16.mxu0 %v10693_v45  ;;  %7223 = vmatprep.subr.bf16.mxu1 %v10700_v15 }
 0x854   : > { %6908 = vmatmul.mubr.bf16.vlgmr.msra.gmra.mxu0 %v6682_v62  ;;  %6949 = vmatmul.mubr.bf16.vlgmr.msra.gmra.mxu1 %v6682_v62 }
 0x855   : > { %7183 = vmatpush1.bf16.msra.mxu0 %v10696_v3  ;;  %7224 = vmatpush1.bf16.msra.mxu1 %v10698_v55  ;;  %v11346_v55 = vld [vmem:[#allocation36_spill] sm:$0xff] }
 0x856   : > { %7184 = vmatprep.subr.bf16.mxu0 %v10709_v18  ;;  %7225 = vmatprep.subr.bf16.mxu1 %v10716_v43  ;;  %v11347_v43 = vld [vmem:[#allocation38_spill] sm:$0xff] }
 0x857   : > { %7214 = vmatprep.mubr.bf16.mxu0 %v11138_v9  ;;  %7255 = vmatprep.mubr.bf16.mxu1 %v11138_v9 }
 0x859   : > { %7185 = vmatpush1.bf16.msra.mxu0 %v10712_v37  ;;  %7226 = vmatpush1.bf16.msra.mxu1 %v10714_v7 }
 0x85a   : > { %7186 = vmatprep.subr.bf16.mxu0 %v10725_v48  ;;  %7227 = vmatprep.subr.bf16.mxu1 %v10732_v20  ;;  %v11348_v20 = vld [vmem:[#allocation37_spill] sm:$0xff] }
 0x85d   : > { %7187 = vmatpush1.bf16.msra.mxu0 %v10728_v49  ;;  %7228 = vmatpush1.bf16.msra.mxu1 %v10730_v25 }
 0x85e   : > { %7188 = vmatprep.subr.bf16.mxu0 %v10741_v6  ;;  %7229 = vmatprep.subr.bf16.mxu1 %v10748_v27 }
 0x861   : > { %7189 = vmatpush1.bf16.msra.mxu0 %v10744_v38  ;;  %7230 = vmatpush1.bf16.msra.mxu1 %v10746_v39 }
 0x862   : > { %7190 = vmatprep.subr.bf16.mxu0 %v10757_v50  ;;  %7231 = vmatprep.subr.bf16.mxu1 %v10764_v52  ;;  %v11349_v50 = vld [vmem:[#allocation39_spill] sm:$0xff] }
 0x865   : > { %7191 = vmatpush1.bf16.msra.mxu0 %v10760_v1  ;;  %7232 = vmatpush1.bf16.msra.mxu1 %v10762_v61 }
 0x866   : > { %7192 = vmatprep.subr.bf16.mxu0 %v10773_v28  ;;  %7233 = vmatprep.subr.bf16.mxu1 %v10780_v54 }
 0x869   : > { %7193 = vmatpush1.bf16.msra.mxu0 %v10776_v47  ;;  %7234 = vmatpush1.bf16.msra.mxu1 %v10778_v44 }
 0x86a   : > { %7194 = vmatprep.subr.bf16.mxu0 %v10789_v46  ;;  %7235 = vmatprep.subr.bf16.mxu1 %v10796_v40 }
 0x86d   : > { %7195 = vmatpush1.bf16.msra.mxu0 %v10792_v8  ;;  %7236 = vmatpush1.bf16.msra.mxu1 %v10794_v41 }
 0x86e   : > { %7196 = vmatprep.subr.bf16.mxu0 %v10805_v13  ;;  %7237 = vmatprep.subr.bf16.mxu1 %v10812_v29  ;;  %v11350_v29 = vld [vmem:[#allocation48_spill] sm:$0xff] }
 0x871   : > { %7197 = vmatpush1.bf16.msra.mxu0 %v10808_v58  ;;  %7238 = vmatpush1.bf16.msra.mxu1 %v10810_v34 }
 0x872   : > { %7479 = vmatprep.subr.bf16.mxu0 %v10821_v5  ;;  %7520 = vmatprep.subr.bf16.mxu1 %v10828_v12 }
 0x8f4   : > { %v6612_v45 = vpop.f32.mrf.mxu0  ;;  %v6653_v3 = vpop.f32.mrf.mxu1 }
 0x8f5   : > { %v6660_v15 = vadd.f32 %v6612_v45, %v11346_v55  ;;  %v6662_v6 = vadd.f32 %v6653_v3, %v11348_v20 }
 0x8f6   : > { %v6614_v18 = vpop.f32.mrf.mxu0  ;;  %v6655_v37 = vpop.f32.mrf.mxu1 }
 0x8f7   : > { %v6664_v7 = vmul.f32 0.5, %v6660_v15  ;;  %v6661_v48 = vadd.f32 %v6614_v18, %v11347_v43  ;;  %v6663_v1 = vadd.f32 %v6655_v37, %v11349_v50  ;;  %v11353_v43 = vld [vmem:[#allocation51_spill] sm:$0xff] }
 0x8f8   : > { %v6616_v49 = vpop.f32.mrf.mxu0  ;;  %v6657_v25 = vpop.f32.mrf.mxu1 }
 0x8f9   : > { %8674 = vtanh.f32 %v6664_v7  ;;  %v6665_v38 = vmul.f32 0.5, %v6661_v48  ;;  %v6673_v61 = vmul.f32 0.5, %v6663_v1 }
 0x8fa   : > { %v6617_v39 = vpop.f32.mrf.mxu0  ;;  %v6658_v27 = vpop.f32.mrf.mxu1 }
 0x8fb   : > { %8676 = vtanh.f32 %v6665_v38  ;;  %v11354_v38 = vld [vmem:[#allocation12_spill] sm:$0xff] }
 0x8fc   : > { %8678 = vtanh.f32 %v6662_v6  ;;  %v11356_v27 = vld [vmem:[#allocation68_spill] sm:$0xff] }
 0x8fd   : > { %8680 = vtanh.f32 %v6673_v61  ;;  %v11358_v61 = vld [vmem:[#allocation70_spill] sm:$0xff] }
 0x906   : > { %v8675_v52 = vpop.eup %8674 }
 0x907   : > { %v6668_v28 = vadd.f32 1.0, %v8675_v52 }
 0x908   : > { %v8677_v47 = vpop.eup %8676 }
 0x909   : > { %v6670_v44 = vmul.f32 0.5, %v6668_v28  ;;  %v6669_v54 = vadd.f32 1.0, %v8677_v47  ;;  %v8679_v46 = vpop.eup %8678  ;;  %v11360_v28 = vld [vmem:[#allocation71_spill] sm:$0xff]  ;;  %v11361_v47 = vld [vmem:[#allocation20_spill] sm:$0xff] }
 0x90a   : > { %v8681_v12 = vpop.eup %8680 }
 0x90b   : > { %v6671_v8 = vmul.f32 0.5, %v6669_v54  ;;  %v6678_v41 = vmul.f32 %v8679_v46, %v6670_v44  ;;  %v6675_v35 = vadd.f32 1.0, %v8681_v12  ;;  %v11362_v44 = vld [vmem:[#allocation22_spill] sm:$0xff]  ;;  %v11363_v54 = vld [vmem:[#allocation21_spill] sm:$0xff] }
 0x90c   : > { %v11365_v46 = vld [vmem:[#allocation66_spill] sm:$0xff] }
 0x90d   : > { %v6677_v40 = vmul.f32 %v6671_v8, %v10837_v23  ;;  %v11352_v23 = vld [vmem:[#allocation49_spill] sm:$0xff]  ;;  %v6676_v15 = vmul.f32 0.5, %v6675_v35 }
 0x90f   : > { %v11007_v13 = vadd.f32 %v6678_v41, %v6677_v40 }
 0x911   : > { %8682 = vtanh.f32 %v11007_v13 }
 0x914   : > { %v6909_v58 = vpop.f32.mrf.mxu0  ;;  %v6950_v34 = vpop.f32.mrf.mxu1 }
 0x915   : > { %v6957_v5 = vadd.f32 %v6909_v58, %v11350_v29  ;;  %v6959_v62 = vadd.f32 %v6950_v34, %v11352_v23 }
 0x916   : > { %v6911_v51 = vpop.f32.mrf.mxu0  ;;  %v6952_v19 = vpop.f32.mrf.mxu1 }
 0x917   : > { %v6961_v14 = vmul.f32 0.5, %v6957_v5  ;;  %v6958_v10 = vadd.f32 %v6911_v51, %v11351_v59  ;;  %v6960_v48 = vadd.f32 %v6952_v19, %v11353_v43  ;;  %v11368_v5 = vld [vmem:[#allocation41_spill] sm:$0xff]  ;;  %v11369_v19 = vld [vmem:[#allocation43_spill] sm:$0xff] }
 0x918   : > { %v6913_v60 = vpop.f32.mrf.mxu0  ;;  %v6954_v16 = vpop.f32.mrf.mxu1 }
 0x919   : > { %8684 = vtanh.f32 %v6961_v14  ;;  %v6962_v45 = vmul.f32 0.5, %v6958_v10  ;;  %v6970_v49 = vmul.f32 0.5, %v6960_v48 }
 0x91a   : > { %v6914_v3 = vpop.f32.mrf.mxu0  ;;  %v6955_v55 = vpop.f32.mrf.mxu1 }
 0x91b   : > { %8686 = vtanh.f32 %v6962_v45 }
 0x91c   : > { %8688 = vtanh.f32 %v6959_v62 }
 0x91d   : > { %8690 = vtanh.f32 %v6970_v49 }
 0x91e   : > { %v8683_v18 = vpop.eup %8682 }
 0x91f   : > { %v6681_v37 = vmul.f32 %v8683_v18, %v6676_v15 }
 0x921   : > { %8417 = vst [vmem:[%s9552_s10 + $0x80] sm:$0xff] %v6681_v37  ;;  %v6989_v7 = vpack.c.bf16 %v6681_v37, %v6681_v37 }
 0x923   : > { %7215 = vmatmul.mubr.bf16.vlgmr.msra.gmra.mxu0 %v6989_v7  ;;  %7256 = vmatmul.mubr.bf16.vlgmr.msra.gmra.mxu1 %v6989_v7  ;;  %v11370_v7 = vld [vmem:[#allocation44_spill] sm:$0xff] }
 0x924   : > { %7480 = vmatpush1.bf16.msra.mxu0 %v10824_v26  ;;  %7521 = vmatpush1.bf16.msra.mxu1 %v10826_v36  ;;  %v11355_v36 = vld [vmem:[#allocation19_spill] sm:$0xff] }
 0x925   : > { %7481 = vmatprep.subr.bf16.mxu0 %v10849_v53  ;;  %7522 = vmatprep.subr.bf16.mxu1 %v10851_v32 }
 0x926   : > { %v8685_v25 = vpop.eup %8684  ;;  %7511 = vmatprep.mubr.bf16.mxu0 %v11138_v9  ;;  %7552 = vmatprep.mubr.bf16.mxu1 %v11138_v9  ;;  %v11357_v9 = vld [vmem:[#allocation23_spill] sm:$0xff] }
 0x927   : > { %v6965_v20 = vadd.f32 1.0, %v8685_v25 }
 0x928   : > { %v8687_v6 = vpop.eup %8686  ;;  %7482 = vmatpush1.bf16.msra.mxu0 %v10859_v31  ;;  %7523 = vmatpush1.bf16.msra.mxu1 %v11354_v38  ;;  %v11359_v31 = vld [vmem:[#allocation69_spill] sm:$0xff] }
 0x929   : > { %v6967_v39 = vmul.f32 0.5, %v6965_v20  ;;  %v6966_v26 = vadd.f32 1.0, %v8687_v6  ;;  %7483 = vmatprep.subr.bf16.mxu0 %v11355_v36  ;;  %7524 = vmatprep.subr.bf16.mxu1 %v11356_v27  ;;  %v8689_v53 = vpop.eup %8688  ;;  %v11371_v6 = vld [vmem:[#allocation46_spill] sm:$0xff]  ;;  %v11372_v27 = vld [vmem:[#allocation45_spill] sm:$0xff] }
 0x92b   : > { %v6968_v32 = vmul.f32 0.5, %v6966_v26  ;;  %v6975_v50 = vmul.f32 %v8689_v53, %v6967_v39 }
 0x92c   : > { %7484 = vmatpush1.bf16.msra.mxu0 %v10877_v57  ;;  %7525 = vmatpush1.bf16.msra.mxu1 %v10879_v30  ;;  %v11364_v57 = vld [vmem:[#allocation64_spill] sm:$0xff]  ;;  %v8691_v30 = vpop.eup %8690 }
 0x92d   : > { %v6974_v1 = vmul.f32 %v6968_v32, %v11357_v9  ;;  %7485 = vmatprep.subr.bf16.mxu0 %v11358_v61  ;;  %7526 = vmatprep.subr.bf16.mxu1 %v11359_v31  ;;  %v6972_v8 = vadd.f32 1.0, %v8691_v30  ;;  %v11373_v31 = vld [vmem:[#allocation47_spill] sm:$0xff] }
 0x92f   : > { %v11030_v52 = vadd.f32 %v6975_v50, %v6974_v1 }
 0x930   : > { %7486 = vmatpush1.bf16.msra.mxu0 %v11360_v28  ;;  %7527 = vmatpush1.bf16.msra.mxu1 %v11361_v47 }
 0x931   : > { %8692 = vtanh.f32 %v11030_v52  ;;  %7487 = vmatprep.subr.bf16.mxu0 %v11362_v44  ;;  %7528 = vmatprep.subr.bf16.mxu1 %v11363_v54 }
 0x934   : > { %7488 = vmatpush1.bf16.msra.mxu0 %v10912_v22  ;;  %7529 = vmatpush1.bf16.msra.mxu1 %v10914_v56  ;;  %v6973_v22 = vmul.f32 0.5, %v6972_v8 }
 0x935   : > { %7489 = vmatprep.subr.bf16.mxu0 %v10919_v21  ;;  %7530 = vmatprep.subr.bf16.mxu1 %v11364_v57 }
 0x938   : > { %7490 = vmatpush1.bf16.msra.mxu0 %v11365_v46  ;;  %7531 = vmatpush1.bf16.msra.mxu1 %v10931_v4 }
 0x939   : > { %7491 = vmatprep.subr.bf16.mxu0 %v10935_v24  ;;  %7532 = vmatprep.subr.bf16.mxu1 %v10937_v0 }
 0x93c   : > { %7492 = vmatpush1.bf16.msra.mxu0 %v10945_v11  ;;  %7533 = vmatpush1.bf16.msra.mxu1 %v10947_v42  ;;  %v11366_v11 = vld [vmem:[#allocation40_spill] sm:$0xff] }
 0x93d   : > { %7493 = vmatprep.subr.bf16.mxu0 %v10951_v2  ;;  %7534 = vmatprep.subr.bf16.mxu1 %v10953_v63  ;;  %v11367_v2 = vld [vmem:[#allocation42_spill] sm:$0xff] }
 0x93e   : > { %v8693_v56 = vpop.eup %8692 }
 0x93f   : > { %v6978_v21 = vmul.f32 %v8693_v56, %v6973_v22 }
 0x940   : > { %7494 = vmatpush1.bf16.msra.mxu0 %v10957_v17  ;;  %7535 = vmatpush1.bf16.msra.mxu1 %v10959_v33 }
 0x941   : > { %8418 = vst [vmem:[%s9552_s10 + $0x18] sm:$0xff] %v6978_v21  ;;  %v7286_v4 = vpack.c.bf16 %v6978_v21, %v6978_v21 }
 0x943   : > { %7512 = vmatmul.mubr.bf16.vlgmr.msra.gmra.mxu0 %v7286_v4  ;;  %7553 = vmatmul.mubr.bf16.vlgmr.msra.gmra.mxu1 %v7286_v4 }
 0x9e3   : > { %v7216_v24 = vpop.f32.mrf.mxu0  ;;  %v7257_v0 = vpop.f32.mrf.mxu1 }
 0x9e4   : > { %v7264_v41 = vadd.f32 %v7216_v24, %v11366_v11  ;;  %v7266_v17 = vadd.f32 %v7257_v0, %v11368_v5 }
 0x9e5   : > { %v7218_v42 = vpop.f32.mrf.mxu0  ;;  %v7259_v40 = vpop.f32.mrf.mxu1 }
 0x9e6   : > { %v7268_v58 = vmul.f32 0.5, %v7264_v41  ;;  %v7265_v34 = vadd.f32 %v7218_v42, %v11367_v2  ;;  %v7267_v14 = vadd.f32 %v7259_v40, %v11369_v19 }
 0x9e7   : > { %v7220_v63 = vpop.f32.mrf.mxu0  ;;  %v7261_v29 = vpop.f32.mrf.mxu1 }
 0x9e8   : > { %8694 = vtanh.f32 %v7268_v58  ;;  %v7269_v12 = vmul.f32 0.5, %v7265_v34  ;;  %v7277_v59 = vmul.f32 0.5, %v7267_v14 }
 0x9e9   : > { %v7221_v33 = vpop.f32.mrf.mxu0  ;;  %v7262_v51 = vpop.f32.mrf.mxu1 }
 0x9ea   : > { %8696 = vtanh.f32 %v7269_v12 }
 0x9eb   : > { %8698 = vtanh.f32 %v7266_v17 }
 0x9ec   : > { %8700 = vtanh.f32 %v7277_v59 }
 0x9f5   : > { %v8695_v10 = vpop.eup %8694 }
 0x9f6   : > { %v7272_v60 = vadd.f32 1.0, %v8695_v10 }
 0x9f7   : > { %v8697_v16 = vpop.eup %8696 }
 0x9f8   : > { %v7274_v35 = vmul.f32 0.5, %v7272_v60  ;;  %v7273_v23 = vadd.f32 1.0, %v8697_v16  ;;  %v8699_v62 = vpop.eup %8698 }
 0x9f9   : > { %v8701_v48 = vpop.eup %8700 }
 0x9fa   : > { %v7275_v45 = vmul.f32 0.5, %v7273_v23  ;;  %v7282_v3 = vmul.f32 %v8699_v62, %v7274_v35  ;;  %v7279_v36 = vadd.f32 1.0, %v8701_v48 }
 0x9fc   : > { %v7281_v55 = vmul.f32 %v7275_v45, %v11007_v13  ;;  %v7280_v9 = vmul.f32 0.5, %v7279_v36 }
 0x9fe   : > { %v7283_v15 = vadd.f32 %v7282_v3, %v7281_v55 }
 0xa00   : > { %8702 = vtanh.f32 %v7283_v15 }
 0xa03   : > { %v7513_v18 = vpop.f32.mrf.mxu0  ;;  %v7554_v37 = vpop.f32.mrf.mxu1 }
 0xa04   : > { %v7561_v43 = vadd.f32 %v7513_v18, %v11370_v7  ;;  %v7563_v53 = vadd.f32 %v7554_v37, %v11372_v27 }
 0xa05   : > { %v7515_v49 = vpop.f32.mrf.mxu0  ;;  %v7556_v25 = vpop.f32.mrf.mxu1 }
 0xa06   : > { %v7565_v20 = vmul.f32 0.5, %v7561_v43  ;;  %v7562_v38 = vadd.f32 %v7515_v49, %v11371_v6  ;;  %v7564_v28 = vadd.f32 %v7556_v25, %v11373_v31 }
 0xa07   : > { %v7517_v39 = vpop.f32.mrf.mxu0  ;;  %v7558_v26 = vpop.f32.mrf.mxu1 }
 0xa08   : > { %8704 = vtanh.f32 %v7565_v20  ;;  %v7566_v13 = vmul.f32 0.5, %v7562_v38  ;;  %v7574_v47 = vmul.f32 0.5, %v7564_v28 }
 0xa09   : > { %v7518_v32 = vpop.f32.mrf.mxu0  ;;  %v7559_v50 = vpop.f32.mrf.mxu1 }
 0xa0a   : > { %8706 = vtanh.f32 %v7566_v13 }
 0xa0b   : > { %8708 = vtanh.f32 %v7563_v53 }
 0xa0c   : > { %8710 = vtanh.f32 %v7574_v47 }
 0xa0d   : > { %v8703_v1 = vpop.eup %8702 }
 0xa0e   : > { %v7285_v61 = vmul.f32 %v8703_v1, %v7280_v9 }
 0xa10   : > { %8483 = vst [vmem:[%s9552_s10 + $0x90] sm:$0xff] %v7285_v61 }
 0xa15   : > { %v8705_v44 = vpop.eup %8704 }
 0xa16   : > { %v7569_v54 = vadd.f32 1.0, %v8705_v44 }
 0xa17   : > { %v8707_v57 = vpop.eup %8706 }
 0xa18   : > { %v7571_v30 = vmul.f32 0.5, %v7569_v54  ;;  %v7570_v46 = vadd.f32 1.0, %v8707_v57  ;;  %v8709_v8 = vpop.eup %8708 }
 0xa19   : > { %v8711_v24 = vpop.eup %8710 }
 0xa1a   : > { %v7572_v22 = vmul.f32 0.5, %v7570_v46  ;;  %v7579_v56 = vmul.f32 %v8709_v8, %v7571_v30  ;;  %v7576_v0 = vadd.f32 1.0, %v8711_v24 }
 0xa1c   : > { %v7578_v21 = vmul.f32 %v7572_v22, %v11030_v52  ;;  %v7577_v11 = vmul.f32 0.5, %v7576_v0 }
 0xa1e   : > { %v7580_v4 = vadd.f32 %v7579_v56, %v7578_v21 }
 0xa20   : > { %8712 = vtanh.f32 %v7580_v4 }
 0xa2d   : > { %v8713_v41 = vpop.eup %8712 }
 0xa2e   : > { %v7582_v42 = vmul.f32 %v8713_v41, %v7577_v11 }
 0xa30   : > { %7584 = vst [vmem:[%s9552_s10 + $0x8] sm:$0xff] %v7582_v42 }
 0xa31 PF: > { %s14_s15 = sadd.s32 1, %s8720_s15  }
 0xa32   : > { %p11_p4 = scmp.ge.s32.totalorder %s14_s15, 4  }
 0xa34   :  { %13 = sbr.rel (!%p11_p4) target bundleno = 1 (0x1), region = 84 }

</bundles_post_ra>
